<compile_context>
chip_gen: v7x
topology: tpu7x:2x2x1
jax: 0.10.0
libtpu: 0.0.40
codegen_flags: <defaults>
</compile_context>

<pallas_src>
import functools
import math

import jax
import jax.numpy as jnp
from jax.experimental import pallas as pl
from jax.experimental.pallas import tpu as pltpu

MIN_NORM = 1e-15
BALL_EPS = 0.004       # float32 eps used by the module / geoopt projection
ARTANH_EPS = 1e-5      # artanh clamp


def _round_up(x, m):
    return (x + m - 1) // m * m


def _cparams(n_parallel_axes, vmem_bytes=32 * 1024 * 1024):
    # 32 MiB scoped VMEM: >= defaults on all generations, <= v7x's 64 MiB physical.
    return pltpu.CompilerParams(
        dimension_semantics=("parallel",) * n_parallel_axes,
        vmem_limit_bytes=vmem_bytes)


# -----------------------------------------------------------------------------
# Kernel 1: fused n-gram Conv1d (n=1,2,3) + ReLU, channels-first layout.
#   x is fed transposed & length-padded as (B, D, Lpad); each n-gram conv is
#   sum_k  w_k (H,D) @ x (D,Lpad)  rolled left by k on the lane axis (XLU),
#   so no unaligned slices and the output is already (H, Lpad) for the dist kernel.
# -----------------------------------------------------------------------------
def _ngram_conv_fused_kernel(xT_ref, w1_ref, w2_ref, w3_ref, b_ref,
                             o1_ref, o2_ref, o3_ref, *, l_pad):
    xT = xT_ref[0]                                            # (D, Lpad) bf16

    def conv_n(w_ref, b_col, n):
        h = w_ref.shape[1]
        acc = jnp.zeros((h, l_pad), jnp.float32) + b_col      # (H, Lpad)
        for k in range(n):                                    # n in {1,2,3}: unrolled
            y = jnp.dot(w_ref[k], xT, preferred_element_type=jnp.float32)
            if k:
                # roll left by k: out[:, i] accumulates w_k @ x[:, i+k]
                y = pltpu.roll(y, shift=l_pad - k, axis=1)
            acc = acc + y
        return jnp.maximum(acc, 0.0)                          # ReLU; Dropout = identity

    o1_ref[0] = conv_n(w1_ref, b_ref[0], 1).astype(o1_ref.dtype)
    o2_ref[0] = conv_n(w2_ref, b_ref[1], 2).astype(o2_ref.dtype)
    o3_ref[0] = conv_n(w3_ref, b_ref[2], 3).astype(o3_ref.dtype)


def ngram_conv_fused(xT, w1, w2, w3, b_all):
    """xT: (B, D, Lpad) bf16; wN: (n, H, D) bf16; b_all: (3, H, 1) f32.

    Returns three (B, H, Lpad) bf16 feature maps; columns >= L-n+1 are junk and
    must be masked by the consumer.
    """
    B, D, Lp = xT.shape
    H = w1.shape[1]
    kern = functools.partial(_ngram_conv_fused_kernel, l_pad=Lp)
    const3 = lambda i: (0, 0, 0)
    out_sds = jax.ShapeDtypeStruct((B, H, Lp), jnp.bfloat16)
    out_spec = pl.BlockSpec((1, H, Lp), lambda i: (i, 0, 0))
    return pl.pallas_call(
        kern,
        out_shape=(out_sds, out_sds, out_sds),
        grid=(B,),
        in_specs=[pl.BlockSpec((1, D, Lp), lambda i: (i, 0, 0)),
                  pl.BlockSpec((1, H, D), const3),
                  pl.BlockSpec((2, H, D), const3),
                  pl.BlockSpec((3, H, D), const3),
                  pl.BlockSpec((3, H, 1), const3)],
        out_specs=(out_spec, out_spec, out_spec),
        compiler_params=_cparams(1),
    )(xT, w1, w2, w3, b_all)


# -----------------------------------------------------------------------------
# Kernel 2: expmap0 + Einstein midpoint, tiled over N (Poincare ball, c = 1).
#   Padded (all-zero) tokens have lorentz factor 0 (matching the reference's
#   x_norm == 0 mask), so S-padding and N-padding are semantically inert.
# -----------------------------------------------------------------------------
def _proj_ball(x):
    sq = jnp.sum(x * x, -1, keepdims=True)
    maxnorm = 1.0 - BALL_EPS
    inv = jax.lax.rsqrt(jnp.maximum(sq, MIN_NORM * MIN_NORM))
    return jnp.where(sq > maxnorm * maxnorm, x * (maxnorm * inv), x)


def _klein_constraint(x):
    sq = jnp.sum(x * x, -1, keepdims=True)
    maxnorm = 1.0 - BALL_EPS
    inv = jax.lax.rsqrt(jnp.maximum(sq, MIN_NORM * MIN_NORM))
    return jnp.where(sq > maxnorm * maxnorm, x * (maxnorm * inv), x)


def _midpoint_kernel(u_ref, o_ref):
    u = u_ref[...].astype(jnp.float32)                        # (TN, S, D)
    # Poincare expmap0 (c=1), projected onto the ball
    un2 = jnp.sum(u * u, -1, keepdims=True)
    un = jnp.maximum(jnp.sqrt(un2), MIN_NORM)
    x = _proj_ball(jnp.tanh(un) * u * pl.reciprocal(un, approx=True))
    # to_klein
    x2 = jnp.sum(x * x, -1, keepdims=True)
    xk = _klein_constraint(2.0 * x * pl.reciprocal(1.0 + x2, approx=True))
    # lorentz factors (zeroed at the origin)
    xn2 = jnp.sum(xk * xk, -1, keepdims=True)                 # (TN, S, 1)
    gamma = pl.reciprocal(1.0 - xn2 + MIN_NORM, approx=True)
    gamma = jnp.where(xn2 == 0.0, 0.0, gamma)
    gsum = jnp.sum(gamma, axis=1)                             # (TN, 1)
    num = jnp.sum(gamma * xk, axis=1)                         # (TN, D)
    # guard gsum == 0 (all tokens at origin) to avoid 0/0 -> NaN
    mid = num * pl.reciprocal(jnp.maximum(gsum, MIN_NORM), approx=True)
    mid = _klein_constraint(mid)
    # klein -> poincare, projected
    m2 = jnp.sum(mid * mid, -1, keepdims=True)
    p = mid * pl.reciprocal(1.0 + jnp.sqrt(jnp.maximum(1.0 - m2, 0.0)), approx=True)
    o_ref[...] = _proj_ball(p).astype(o_ref.dtype)


def einstein_midpoint(u, tn=8):
    """u: (N, S, D) raw token embeddings -> (N, D) f32 Poincare midpoint."""
    N, S, D = u.shape
    n_pad = _round_up(max(N, 1), tn)
    u = jnp.pad(u.astype(jnp.bfloat16), ((0, n_pad - N), (0, 0), (0, 0)))
    out = pl.pallas_call(
        _midpoint_kernel,
        out_shape=jax.ShapeDtypeStruct((n_pad, D), jnp.float32),
        grid=(n_pad // tn,),
        in_specs=[pl.BlockSpec((tn, S, D), lambda i: (i, 0, 0))],
        out_specs=pl.BlockSpec((tn, D), lambda i: (i, 0)),
        compiler_params=_cparams(1),
    )(u)
    return out[:N]


def einstein_midpoint_multi(token_sets, tn=8):
    """Fuse several (Ni, Si, D) token sets into ONE midpoint kernel call.

    Sequences are zero-padded to a common S (inert: padded tokens get lorentz
    factor 0) and concatenated over N; returns a list of (Ni, D) f32 arrays.
    """
    D = token_sets[0].shape[-1]
    s_max = max(t.shape[1] for t in token_sets)
    padded = [jnp.pad(t.astype(jnp.bfloat16),
                      ((0, 0), (0, s_max - t.shape[1]), (0, 0)))
              for t in token_sets]
    stacked = jnp.concatenate(padded, axis=0)                  # (sum Ni, s_max, D)
    out = einstein_midpoint(stacked, tn=tn)                    # (sum Ni, D) f32
    results, off = [], 0
    for t in token_sets:
        results.append(out[off:off + t.shape[0]])
        off += t.shape[0]
    return results


# -----------------------------------------------------------------------------
# Kernel 3: fused Poincare squared-distance interaction (n=1,2,3) + mean/max
#   pooling + 6->1 classifier.  Candidates are loaded once per batch; doc
#   features arrive pre-transposed as (D, Lpad) so the MXU matmul needs no
#   in-kernel relayout.  Padded doc columns are masked per-n via static l_out.
# -----------------------------------------------------------------------------
def _dist_cls_kernel(cls_ref, cand_ref, d1_ref, d2_ref, d3_ref, o_ref,
                     *, l_outs, inv_sqrt_rank):
    x = cand_ref[0]                                           # (Cp_pad, D) bf16
    xf = x.astype(jnp.float32)
    x2 = jnp.sum(xf * xf, axis=-1, keepdims=True)             # (Cp_pad, 1)
    score = jnp.zeros((x.shape[0], 1), jnp.float32) + cls_ref[6]   # bias
    # column iota hoisted out of the per-n loop (broadcasts are not CSE'd)
    l_pad = d1_ref.shape[2]
    col = jax.lax.broadcasted_iota(jnp.int32, (x.shape[0], l_pad), 1)

    for idx, (d_ref, l_out) in enumerate(zip((d1_ref, d2_ref, d3_ref), l_outs)):
        yT = d_ref[0]                                         # (D, Lpad) bf16
        yf = yT.astype(jnp.float32)
        y2 = jnp.sum(yf * yf, axis=0, keepdims=True)          # (1, Lpad)
        xy = jnp.dot(x, yT, preferred_element_type=jnp.float32)    # (Cp_pad, Lpad)
        sq = x2 - 2.0 * xy + y2                               # ||x - y||^2
        denom = 1.0 - 2.0 * xy + x2 * y2                      # ||(-x) (+) y||^2 denom
        w = jnp.sqrt(jnp.maximum(sq, 0.0) / jnp.maximum(denom, MIN_NORM))
        w = jnp.clip(w, -1.0 + ARTANH_EPS, 1.0 - ARTANH_EPS)
        dist = jnp.log((1.0 + w) / (1.0 - w))                 # 2 * artanh(w)
        s = -(dist * dist) * inv_sqrt_rank                    # -dist2 / sqrt(rank)
        # mask padded doc columns (>= l_out)
        valid = col < l_out
        mx = jnp.max(jnp.where(valid, s, -jnp.inf), axis=-1, keepdims=True)
        mn = jnp.sum(jnp.where(valid, s, 0.0), axis=-1, keepdims=True) * (1.0 / l_out)
        # classifier: feats ordered [max_n, mean_n] for n = 1, 2, 3
        score = score + cls_ref[2 * idx] * mx + cls_ref[2 * idx + 1] * mn

    o_ref[0] = score


def dist_cls_fused(cls_vec, cand, d1, d2, d3, *, l_outs, rank):
    """cls_vec: (8,) f32 [w0..w5, b, 0]; cand: (B, Cp_pad, D) bf16;
    dN: (B, D, Lpad) bf16 -> (B, Cp_pad, 1) f32 final scores."""
    B, Cp, D = cand.shape
    _, H, Lp = d1.shape
    kern = functools.partial(_dist_cls_kernel, l_outs=tuple(l_outs),
                             inv_sqrt_rank=1.0 / math.sqrt(rank))
    doc_spec = pl.BlockSpec((1, H, Lp), lambda i: (i, 0, 0))
    return pl.pallas_call(
        kern,
        out_shape=jax.ShapeDtypeStruct((B, Cp, 1), jnp.float32),
        grid=(B,),
        in_specs=[pl.BlockSpec(memory_space=pltpu.MemorySpace.SMEM),
                  pl.BlockSpec((1, Cp, D), lambda i: (i, 0, 0)),
                  doc_spec, doc_spec, doc_spec],
        out_specs=pl.BlockSpec((1, Cp, 1), lambda i: (i, 0, 0)),
        compiler_params=_cparams(1),
    )(cls_vec, cand, d1, d2, d3)


# -----------------------------------------------------------------------------
# MatchSum forward (glue in plain JAX)
# -----------------------------------------------------------------------------
def matchsum_forward(params, text_id, candidate_id, summary_id):
    B = text_id.shape[0]
    C = candidate_id.shape[1]
    emb = params["emb_table"]                                  # (vocab, D) bf16
    rank = emb.shape[-1]
    H = params["w1"].shape[1]
    assert H == rank, "dist interaction requires cnn_output_size == hidden_size"

    def encode(ids):  # TODO(synk): stand-in encoder (deterministic embedding lookup)
        return emb[ids]

    # --- document n-gram features: one fused conv kernel, channels-first ----
    doc_emb = encode(text_id)[:, 1:-1, :]                      # (B, L, D) bf16
    L = doc_emb.shape[1]
    l_pad = _round_up(L, 128)                                  # lane-dense doc length
    xT = jnp.swapaxes(doc_emb, 1, 2)                           # (B, D, L)
    xT = jnp.pad(xT, ((0, 0), (0, 0), (0, l_pad - L)))
    doc1, doc2, doc3 = ngram_conv_fused(
        xT, params["w1"], params["w2"], params["w3"], params["b_all"])

    # --- summary / candidate hyperbolic midpoints (single fused kernel call) -
    summary_tokens = encode(summary_id)[:, 1:-1, :]            # (B, Ss, D)
    cand_ids = candidate_id.reshape(-1, candidate_id.shape[-1])
    cand_tokens = encode(cand_ids)[:, 1:-1, :]                 # (B*C, Sc, D)
    summary_emb, cand_flat = einstein_midpoint_multi([summary_tokens, cand_tokens])
    cand_emb = cand_flat.reshape(B, C, rank)                   # (B, C, D) f32

    # prepend summary as row 0 so one kernel produces both scores; pad rows to 8
    stacked = jnp.concatenate([summary_emb[:, None, :], cand_emb], axis=1)   # (B, C+1, D)
    cp = C + 1
    cp_pad = _round_up(cp, 8)
    stacked = jnp.pad(stacked, ((0, 0), (0, cp_pad - cp), (0, 0))).astype(jnp.bfloat16)

    cls_vec = jnp.concatenate([params["cls_w"].reshape(-1).astype(jnp.float32),
                               params["cls_b"].reshape(-1).astype(jnp.float32),
                               jnp.zeros((1,), jnp.float32)])   # (8,)

    scores = dist_cls_fused(cls_vec, stacked, doc1, doc2, doc3,
                            l_outs=(L, L - 1, L - 2), rank=rank)  # (B, cp_pad, 1)

    return {"score": scores[:, 1:cp, :], "summary_score": scores[:, :1, :]}


if __name__ == "__main__":
    key = jax.random.PRNGKey(0)
    ks = jax.random.split(key, 12)

    # Small demo shapes (production: hidden = rank = cnn_output_size = 768).
    # D = H = 128 keeps the toy config MXU/lane aligned while staying small.
    D = 128
    H = 128
    vocab = 64
    B, C = 2, 4
    Lt, Lc, Ls = 18, 10, 10

    params = {
        "emb_table": (jax.random.normal(ks[0], (vocab, D)) * 0.1).astype(jnp.bfloat16),
        "cls_w": (jax.random.normal(ks[1], (1, 6)) * 0.3).astype(jnp.float32),
        "cls_b": jnp.zeros((1,), jnp.float32),
    }
    biases = []
    for i, n in enumerate((1, 2, 3)):
        w_torch = jax.random.normal(ks[2 + 2 * i], (H, D, n)) / math.sqrt(D * n)
        b_torch = jax.random.normal(ks[3 + 2 * i], (H,)) * 0.01
        # PyTorch Conv1d weight (H, D, n) -> (n, H, D) for the channels-first kernel
        params[f"w{n}"] = jnp.transpose(w_torch, (2, 0, 1)).astype(jnp.bfloat16)
        biases.append(b_torch.astype(jnp.float32))
    params["b_all"] = jnp.stack(biases).reshape(3, H, 1)

    text_id = jax.random.randint(ks[8], (B, Lt), 2, vocab)
    candidate_id = jax.random.randint(ks[9], (B, C, Lc), 2, vocab)
    summary_id = jax.random.randint(ks[10], (B, Ls), 2, vocab)

    out = jax.jit(matchsum_forward)(params, text_id, candidate_id, summary_id)
    jax.block_until_ready(out)

    assert out["score"].shape == (B, C, 1)
    assert out["summary_score"].shape == (B, 1, 1)
    assert bool(jnp.all(jnp.isfinite(out["score"])))
    assert bool(jnp.all(jnp.isfinite(out["summary_score"])))
    print("KERNEL_OK")
</pallas_src>

<mosaic_0001>
module attributes {stable_mosaic.version = 11 : i64} {
  func.func @_ngram_conv_fused_kernel(%arg0: i32, %arg1: memref<1x128x128xbf16, #tpu.memory_space<vmem>>, %arg2: memref<1x128x128xbf16, #tpu.memory_space<vmem>>, %arg3: memref<2x128x128xbf16, #tpu.memory_space<vmem>>, %arg4: memref<3x128x128xbf16, #tpu.memory_space<vmem>>, %arg5: memref<3x128x1xf32, #tpu.memory_space<vmem>>, %arg6: memref<1x128x128xbf16, #tpu.memory_space<vmem>>, %arg7: memref<1x128x128xbf16, #tpu.memory_space<vmem>>, %arg8: memref<1x128x128xbf16, #tpu.memory_space<vmem>>) attributes {dimension_semantics = [#tpu.dimension_semantics<parallel>], iteration_bounds = array<i64: 2>, scalar_prefetch = 0 : i64, scratch_operands = 0 : i64, tpu.core_type = #tpu.core_type<tc>, window_params = [{transform_indices = @transform_0, window_bounds = array<i64: 1, 128, 128>}, {pipeline_mode = #tpu.pipeline_mode<synchronous>, transform_indices = @transform_1, window_bounds = array<i64: 1, 128, 128>}, {pipeline_mode = #tpu.pipeline_mode<synchronous>, transform_indices = @transform_2, window_bounds = array<i64: 2, 128, 128>}, {pipeline_mode = #tpu.pipeline_mode<synchronous>, transform_indices = @transform_3, window_bounds = array<i64: 3, 128, 128>}, {pipeline_mode = #tpu.pipeline_mode<synchronous>, transform_indices = @transform_4, window_bounds = array<i64: 3, 128, 1>}, {transform_indices = @transform_5, window_bounds = array<i64: 1, 128, 128>}, {transform_indices = @transform_6, window_bounds = array<i64: 1, 128, 128>}, {transform_indices = @transform_7, window_bounds = array<i64: 1, 128, 128>}]} {
    %c0 = arith.constant 0 : index
    %c0_0 = arith.constant 0 : index
    %c0_1 = arith.constant 0 : index
    %0 = vector.load %arg1[%c0, %c0_0, %c0_1] : memref<1x128x128xbf16, #tpu.memory_space<vmem>>, vector<1x128x128xbf16>
    %1 = vector.shape_cast %0 : vector<1x128x128xbf16> to vector<128x128xbf16>
    %c0_2 = arith.constant 0 : index
    %c0_3 = arith.constant 0 : index
    %c0_4 = arith.constant 0 : index
    %2 = vector.load %arg5[%c0_2, %c0_3, %c0_4] : memref<3x128x1xf32, #tpu.memory_space<vmem>>, vector<1x128x1xf32>
    %3 = vector.shape_cast %2 : vector<1x128x1xf32> to vector<128x1xf32>
    %cst = arith.constant 0.000000e+00 : f32
    %4 = vector.broadcast %cst : f32 to vector<128x128xf32>
    %5 = vector.broadcast %3 : vector<128x1xf32> to vector<128x128xf32>
    %6 = arith.addf %4, %5 : vector<128x128xf32>
    %c0_5 = arith.constant 0 : index
    %c0_6 = arith.constant 0 : index
    %c0_7 = arith.constant 0 : index
    %7 = vector.load %arg2[%c0_5, %c0_6, %c0_7] : memref<1x128x128xbf16, #tpu.memory_space<vmem>>, vector<1x128x128xbf16>
    %8 = vector.shape_cast %7 : vector<1x128x128xbf16> to vector<128x128xbf16>
    %cst_8 = arith.constant dense<0.000000e+00> : vector<128x128xf32>
    %9 = tpu.matmul %8, %1, %cst_8 {dimension_numbers = #tpu.dot_dimension_numbers<[1], [0], [0], [1], [0, 0, 1, 1], [], []>} : vector<128x128xbf16>, vector<128x128xbf16>, vector<128x128xf32> -> vector<128x128xf32>
    %10 = arith.addf %6, %9 : vector<128x128xf32>
    %cst_9 = arith.constant 0.000000e+00 : f32
    %11 = vector.broadcast %cst_9 : f32 to vector<128x128xf32>
    %12 = arith.maximumf %10, %11 : vector<128x128xf32>
    %13 = arith.truncf %12 : vector<128x128xf32> to vector<128x128xbf16>
    %c0_10 = arith.constant 0 : index
    %c0_11 = arith.constant 0 : index
    %c0_12 = arith.constant 0 : index
    %14 = vector.load %arg6[%c0_10, %c0_11, %c0_12] : memref<1x128x128xbf16, #tpu.memory_space<vmem>>, vector<1x128x128xbf16>
    %15 = vector.shape_cast %14 : vector<1x128x128xbf16> to vector<128x128xbf16>
    %16 = vector.shape_cast %13 : vector<128x128xbf16> to vector<1x128x128xbf16>
    tpu.vector_store %arg6[%c0_10, %c0_11, %c0_12], %16 {strides = array<i32>} : memref<1x128x128xbf16, #tpu.memory_space<vmem>>, vector<1x128x128xbf16>,
    %c1 = arith.constant 1 : index
    %c0_13 = arith.constant 0 : index
    %c0_14 = arith.constant 0 : index
    %17 = vector.load %arg5[%c1, %c0_13, %c0_14] : memref<3x128x1xf32, #tpu.memory_space<vmem>>, vector<1x128x1xf32>
    %18 = vector.shape_cast %17 : vector<1x128x1xf32> to vector<128x1xf32>
    %cst_15 = arith.constant 0.000000e+00 : f32
    %19 = vector.broadcast %cst_15 : f32 to vector<128x128xf32>
    %20 = vector.broadcast %18 : vector<128x1xf32> to vector<128x128xf32>
    %21 = arith.addf %19, %20 : vector<128x128xf32>
    %c0_16 = arith.constant 0 : index
    %c0_17 = arith.constant 0 : index
    %c0_18 = arith.constant 0 : index
    %22 = vector.load %arg3[%c0_16, %c0_17, %c0_18] : memref<2x128x128xbf16, #tpu.memory_space<vmem>>, vector<1x128x128xbf16>
    %23 = vector.shape_cast %22 : vector<1x128x128xbf16> to vector<128x128xbf16>
    %cst_19 = arith.constant dense<0.000000e+00> : vector<128x128xf32>
    %24 = tpu.matmul %23, %1, %cst_19 {dimension_numbers = #tpu.dot_dimension_numbers<[1], [0], [0], [1], [0, 0, 1, 1], [], []>} : vector<128x128xbf16>, vector<128x128xbf16>, vector<128x128xf32> -> vector<128x128xf32>
    %25 = arith.addf %21, %24 : vector<128x128xf32>
    %c1_20 = arith.constant 1 : index
    %c0_21 = arith.constant 0 : index
    %c0_22 = arith.constant 0 : index
    %26 = vector.load %arg3[%c1_20, %c0_21, %c0_22] : memref<2x128x128xbf16, #tpu.memory_space<vmem>>, vector<1x128x128xbf16>
    %27 = vector.shape_cast %26 : vector<1x128x128xbf16> to vector<128x128xbf16>
    %cst_23 = arith.constant dense<0.000000e+00> : vector<128x128xf32>
    %28 = tpu.matmul %27, %1, %cst_23 {dimension_numbers = #tpu.dot_dimension_numbers<[1], [0], [0], [1], [0, 0, 1, 1], [], []>} : vector<128x128xbf16>, vector<128x128xbf16>, vector<128x128xf32> -> vector<128x128xf32>
    %c127_i32 = arith.constant 127 : i32
    %29 = tpu.dynamic_rotate %28 by %c127_i32 dim 1 : vector<128x128xf32>, i32 -> vector<128x128xf32>
    %30 = arith.addf %25, %29 : vector<128x128xf32>
    %cst_24 = arith.constant 0.000000e+00 : f32
    %31 = vector.broadcast %cst_24 : f32 to vector<128x128xf32>
    %32 = arith.maximumf %30, %31 : vector<128x128xf32>
    %33 = arith.truncf %32 : vector<128x128xf32> to vector<128x128xbf16>
    %c0_25 = arith.constant 0 : index
    %c0_26 = arith.constant 0 : index
    %c0_27 = arith.constant 0 : index
    %34 = vector.load %arg7[%c0_25, %c0_26, %c0_27] : memref<1x128x128xbf16, #tpu.memory_space<vmem>>, vector<1x128x128xbf16>
    %35 = vector.shape_cast %34 : vector<1x128x128xbf16> to vector<128x128xbf16>
    %36 = vector.shape_cast %33 : vector<128x128xbf16> to vector<1x128x128xbf16>
    tpu.vector_store %arg7[%c0_25, %c0_26, %c0_27], %36 {strides = array<i32>} : memref<1x128x128xbf16, #tpu.memory_space<vmem>>, vector<1x128x128xbf16>,
    %c2 = arith.constant 2 : index
    %c0_28 = arith.constant 0 : index
    %c0_29 = arith.constant 0 : index
    %37 = vector.load %arg5[%c2, %c0_28, %c0_29] : memref<3x128x1xf32, #tpu.memory_space<vmem>>, vector<1x128x1xf32>
    %38 = vector.shape_cast %37 : vector<1x128x1xf32> to vector<128x1xf32>
    %cst_30 = arith.constant 0.000000e+00 : f32
    %39 = vector.broadcast %cst_30 : f32 to vector<128x128xf32>
    %40 = vector.broadcast %38 : vector<128x1xf32> to vector<128x128xf32>
    %41 = arith.addf %39, %40 : vector<128x128xf32>
    %c0_31 = arith.constant 0 : index
    %c0_32 = arith.constant 0 : index
    %c0_33 = arith.constant 0 : index
    %42 = vector.load %arg4[%c0_31, %c0_32, %c0_33] : memref<3x128x128xbf16, #tpu.memory_space<vmem>>, vector<1x128x128xbf16>
    %43 = vector.shape_cast %42 : vector<1x128x128xbf16> to vector<128x128xbf16>
    %cst_34 = arith.constant dense<0.000000e+00> : vector<128x128xf32>
    %44 = tpu.matmul %43, %1, %cst_34 {dimension_numbers = #tpu.dot_dimension_numbers<[1], [0], [0], [1], [0, 0, 1, 1], [], []>} : vector<128x128xbf16>, vector<128x128xbf16>, vector<128x128xf32> -> vector<128x128xf32>
    %45 = arith.addf %41, %44 : vector<128x128xf32>
    %c1_35 = arith.constant 1 : index
    %c0_36 = arith.constant 0 : index
    %c0_37 = arith.constant 0 : index
    %46 = vector.load %arg4[%c1_35, %c0_36, %c0_37] : memref<3x128x128xbf16, #tpu.memory_space<vmem>>, vector<1x128x128xbf16>
    %47 = vector.shape_cast %46 : vector<1x128x128xbf16> to vector<128x128xbf16>
    %cst_38 = arith.constant dense<0.000000e+00> : vector<128x128xf32>
    %48 = tpu.matmul %47, %1, %cst_38 {dimension_numbers = #tpu.dot_dimension_numbers<[1], [0], [0], [1], [0, 0, 1, 1], [], []>} : vector<128x128xbf16>, vector<128x128xbf16>, vector<128x128xf32> -> vector<128x128xf32>
    %c127_i32_39 = arith.constant 127 : i32
    %49 = tpu.dynamic_rotate %48 by %c127_i32_39 dim 1 : vector<128x128xf32>, i32 -> vector<128x128xf32>
    %50 = arith.addf %45, %49 : vector<128x128xf32>
    %c2_40 = arith.constant 2 : index
    %c0_41 = arith.constant 0 : index
    %c0_42 = arith.constant 0 : index
    %51 = vector.load %arg4[%c2_40, %c0_41, %c0_42] : memref<3x128x128xbf16, #tpu.memory_space<vmem>>, vector<1x128x128xbf16>
    %52 = vector.shape_cast %51 : vector<1x128x128xbf16> to vector<128x128xbf16>
    %cst_43 = arith.constant dense<0.000000e+00> : vector<128x128xf32>
    %53 = tpu.matmul %52, %1, %cst_43 {dimension_numbers = #tpu.dot_dimension_numbers<[1], [0], [0], [1], [0, 0, 1, 1], [], []>} : vector<128x128xbf16>, vector<128x128xbf16>, vector<128x128xf32> -> vector<128x128xf32>
    %c126_i32 = arith.constant 126 : i32
    %54 = tpu.dynamic_rotate %53 by %c126_i32 dim 1 : vector<128x128xf32>, i32 -> vector<128x128xf32>
    %55 = arith.addf %50, %54 : vector<128x128xf32>
    %cst_44 = arith.constant 0.000000e+00 : f32
    %56 = vector.broadcast %cst_44 : f32 to vector<128x128xf32>
    %57 = arith.maximumf %55, %56 : vector<128x128xf32>
    %58 = arith.truncf %57 : vector<128x128xf32> to vector<128x128xbf16>
    %c0_45 = arith.constant 0 : index
    %c0_46 = arith.constant 0 : index
    %c0_47 = arith.constant 0 : index
    %59 = vector.load %arg8[%c0_45, %c0_46, %c0_47] : memref<1x128x128xbf16, #tpu.memory_space<vmem>>, vector<1x128x128xbf16>
    %60 = vector.shape_cast %59 : vector<1x128x128xbf16> to vector<128x128xbf16>
    %61 = vector.shape_cast %58 : vector<128x128xbf16> to vector<1x128x128xbf16>
    tpu.vector_store %arg8[%c0_45, %c0_46, %c0_47], %61 {strides = array<i32>} : memref<1x128x128xbf16, #tpu.memory_space<vmem>>, vector<1x128x128xbf16>,
    return
  }
  func.func @transform_0(%arg0: i32) -> (i32, i32, i32) {
    %c0_i32 = arith.constant 0 : i32
    %c0_i32_0 = arith.constant 0 : i32
    %c0_i32_1 = arith.constant 0 : i32
    return %arg0, %c0_i32, %c0_i32_0 : i32, i32, i32
  }
  func.func @transform_1(%arg0: i32) -> (i32, i32, i32) {
    %c0_i32 = arith.constant 0 : i32
    %c0_i32_0 = arith.constant 0 : i32
    %c0_i32_1 = arith.constant 0 : i32
    %c0_i32_2 = arith.constant 0 : i32
    return %c0_i32, %c0_i32_0, %c0_i32_1 : i32, i32, i32
  }
  func.func @transform_2(%arg0: i32) -> (i32, i32, i32) {
    %c0_i32 = arith.constant 0 : i32
    %c0_i32_0 = arith.constant 0 : i32
    %c0_i32_1 = arith.constant 0 : i32
    %c0_i32_2 = arith.constant 0 : i32
    return %c0_i32, %c0_i32_0, %c0_i32_1 : i32, i32, i32
  }
  func.func @transform_3(%arg0: i32) -> (i32, i32, i32) {
    %c0_i32 = arith.constant 0 : i32
    %c0_i32_0 = arith.constant 0 : i32
    %c0_i32_1 = arith.constant 0 : i32
    %c0_i32_2 = arith.constant 0 : i32
    return %c0_i32, %c0_i32_0, %c0_i32_1 : i32, i32, i32
  }
  func.func @transform_4(%arg0: i32) -> (i32, i32, i32) {
    %c0_i32 = arith.constant 0 : i32
    %c0_i32_0 = arith.constant 0 : i32
    %c0_i32_1 = arith.constant 0 : i32
    %c0_i32_2 = arith.constant 0 : i32
    return %c0_i32, %c0_i32_0, %c0_i32_1 : i32, i32, i32
  }
  func.func @transform_5(%arg0: i32) -> (i32, i32, i32) {
    %c0_i32 = arith.constant 0 : i32
    %c0_i32_0 = arith.constant 0 : i32
    %c0_i32_1 = arith.constant 0 : i32
    return %arg0, %c0_i32, %c0_i32_0 : i32, i32, i32
  }
  func.func @transform_6(%arg0: i32) -> (i32, i32, i32) {
    %c0_i32 = arith.constant 0 : i32
    %c0_i32_0 = arith.constant 0 : i32
    %c0_i32_1 = arith.constant 0 : i32
    return %arg0, %c0_i32, %c0_i32_0 : i32, i32, i32
  }
  func.func @transform_7(%arg0: i32) -> (i32, i32, i32) {
    %c0_i32 = arith.constant 0 : i32
    %c0_i32_0 = arith.constant 0 : i32
    %c0_i32_1 = arith.constant 0 : i32
    return %arg0, %c0_i32, %c0_i32_0 : i32, i32, i32
  }
}

module attributes {stable_mosaic.version = 11 : i64} {
  func.func @_midpoint_kernel(%arg0: i32, %arg1: memref<8x8x128xbf16, #tpu.memory_space<vmem>>, %arg2: memref<8x128xf32, #tpu.memory_space<vmem>>) attributes {dimension_semantics = [#tpu.dimension_semantics<parallel>], iteration_bounds = array<i64: 2>, scalar_prefetch = 0 : i64, scratch_operands = 0 : i64, tpu.core_type = #tpu.core_type<tc>, window_params = [{transform_indices = @transform_0, window_bounds = array<i64: 8, 8, 128>}, {transform_indices = @transform_1, window_bounds = array<i64: 8, 128>}]} {
    %c0 = arith.constant 0 : index
    %c0_0 = arith.constant 0 : index
    %c0_1 = arith.constant 0 : index
    %0 = vector.load %arg1[%c0, %c0_0, %c0_1] : memref<8x8x128xbf16, #tpu.memory_space<vmem>>, vector<8x8x128xbf16>
    %1 = arith.extf %0 : vector<8x8x128xbf16> to vector<8x8x128xf32>
    %2 = arith.mulf %1, %1 : vector<8x8x128xf32>
    %cst = arith.constant dense<0.000000e+00> : vector<8x8xf32>
    %3 = vector.multi_reduction <add>, %2, %cst [2] : vector<8x8x128xf32> to vector<8x8xf32>
    %4 = vector.shape_cast %3 : vector<8x8xf32> to vector<8x8x1xf32>
    %5 = math.sqrt %4 : vector<8x8x1xf32>
    %cst_2 = arith.constant 1.000000e-15 : f32
    %6 = vector.broadcast %cst_2 : f32 to vector<8x8x1xf32>
    %7 = arith.maximumf %5, %6 : vector<8x8x1xf32>
    %8 = math.tanh %7 : vector<8x8x1xf32>
    %9 = vector.broadcast %8 : vector<8x8x1xf32> to vector<8x8x128xf32>
    %10 = arith.mulf %9, %1 : vector<8x8x128xf32>
    %11 = tpu.reciprocal %7 {approx = true} : vector<8x8x1xf32> -> vector<8x8x1xf32>
    %12 = vector.broadcast %11 : vector<8x8x1xf32> to vector<8x8x128xf32>
    %13 = arith.mulf %10, %12 : vector<8x8x128xf32>
    %14 = arith.mulf %13, %13 : vector<8x8x128xf32>
    %cst_3 = arith.constant dense<0.000000e+00> : vector<8x8xf32>
    %15 = vector.multi_reduction <add>, %14, %cst_3 [2] : vector<8x8x128xf32> to vector<8x8xf32>
    %16 = vector.shape_cast %15 : vector<8x8xf32> to vector<8x8x1xf32>
    %cst_4 = arith.constant 1.000000e-30 : f32
    %17 = vector.broadcast %cst_4 : f32 to vector<8x8x1xf32>
    %18 = arith.maximumf %16, %17 : vector<8x8x1xf32>
    %19 = math.rsqrt %18 : vector<8x8x1xf32>
    %cst_5 = arith.constant 9.920160e-01 : f32
    %20 = vector.broadcast %cst_5 : f32 to vector<8x8x1xf32>
    %21 = arith.cmpf ogt, %16, %20 : vector<8x8x1xf32>
    %cst_6 = arith.constant 0.995999991 : f32
    %22 = vector.broadcast %cst_6 : f32 to vector<8x8x1xf32>
    %23 = arith.mulf %22, %19 : vector<8x8x1xf32>
    %24 = vector.broadcast %23 : vector<8x8x1xf32> to vector<8x8x128xf32>
    %25 = arith.mulf %13, %24 : vector<8x8x128xf32>
    %26 = vector.shape_cast %21 : vector<8x8x1xi1> to vector<8x8x1xi1>
    %27 = vector.broadcast %26 : vector<8x8x1xi1> to vector<8x8x128xi1>
    %28 = arith.select %27, %25, %13 : vector<8x8x128xi1>, vector<8x8x128xf32>
    %29 = arith.mulf %28, %28 : vector<8x8x128xf32>
    %cst_7 = arith.constant dense<0.000000e+00> : vector<8x8xf32>
    %30 = vector.multi_reduction <add>, %29, %cst_7 [2] : vector<8x8x128xf32> to vector<8x8xf32>
    %31 = vector.shape_cast %30 : vector<8x8xf32> to vector<8x8x1xf32>
    %cst_8 = arith.constant 2.000000e+00 : f32
    %32 = vector.broadcast %cst_8 : f32 to vector<8x8x128xf32>
    %33 = arith.mulf %32, %28 : vector<8x8x128xf32>
    %cst_9 = arith.constant 1.000000e+00 : f32
    %34 = vector.broadcast %cst_9 : f32 to vector<8x8x1xf32>
    %35 = arith.addf %34, %31 : vector<8x8x1xf32>
    %36 = tpu.reciprocal %35 {approx = true} : vector<8x8x1xf32> -> vector<8x8x1xf32>
    %37 = vector.broadcast %36 : vector<8x8x1xf32> to vector<8x8x128xf32>
    %38 = arith.mulf %33, %37 : vector<8x8x128xf32>
    %39 = arith.mulf %38, %38 : vector<8x8x128xf32>
    %cst_10 = arith.constant dense<0.000000e+00> : vector<8x8xf32>
    %40 = vector.multi_reduction <add>, %39, %cst_10 [2] : vector<8x8x128xf32> to vector<8x8xf32>
    %41 = vector.shape_cast %40 : vector<8x8xf32> to vector<8x8x1xf32>
    %cst_11 = arith.constant 1.000000e-30 : f32
    %42 = vector.broadcast %cst_11 : f32 to vector<8x8x1xf32>
    %43 = arith.maximumf %41, %42 : vector<8x8x1xf32>
    %44 = math.rsqrt %43 : vector<8x8x1xf32>
    %cst_12 = arith.constant 9.920160e-01 : f32
    %45 = vector.broadcast %cst_12 : f32 to vector<8x8x1xf32>
    %46 = arith.cmpf ogt, %41, %45 : vector<8x8x1xf32>
    %cst_13 = arith.constant 0.995999991 : f32
    %47 = vector.broadcast %cst_13 : f32 to vector<8x8x1xf32>
    %48 = arith.mulf %47, %44 : vector<8x8x1xf32>
    %49 = vector.broadcast %48 : vector<8x8x1xf32> to vector<8x8x128xf32>
    %50 = arith.mulf %38, %49 : vector<8x8x128xf32>
    %51 = vector.shape_cast %46 : vector<8x8x1xi1> to vector<8x8x1xi1>
    %52 = vector.broadcast %51 : vector<8x8x1xi1> to vector<8x8x128xi1>
    %53 = arith.select %52, %50, %38 : vector<8x8x128xi1>, vector<8x8x128xf32>
    %54 = arith.mulf %53, %53 : vector<8x8x128xf32>
    %cst_14 = arith.constant dense<0.000000e+00> : vector<8x8xf32>
    %55 = vector.multi_reduction <add>, %54, %cst_14 [2] : vector<8x8x128xf32> to vector<8x8xf32>
    %56 = vector.shape_cast %55 : vector<8x8xf32> to vector<8x8x1xf32>
    %cst_15 = arith.constant 1.000000e+00 : f32
    %57 = vector.broadcast %cst_15 : f32 to vector<8x8x1xf32>
    %58 = arith.subf %57, %56 : vector<8x8x1xf32>
    %cst_16 = arith.constant 1.000000e-15 : f32
    %59 = vector.broadcast %cst_16 : f32 to vector<8x8x1xf32>
    %60 = arith.addf %58, %59 : vector<8x8x1xf32>
    %61 = tpu.reciprocal %60 {approx = true} : vector<8x8x1xf32> -> vector<8x8x1xf32>
    %cst_17 = arith.constant 0.000000e+00 : f32
    %62 = vector.broadcast %cst_17 : f32 to vector<8x8x1xf32>
    %63 = arith.cmpf oeq, %56, %62 : vector<8x8x1xf32>
    %cst_18 = arith.constant 0.000000e+00 : f32
    %64 = vector.broadcast %cst_18 : f32 to vector<8x8x1xf32>
    %65 = arith.select %63, %64, %61 : vector<8x8x1xi1>, vector<8x8x1xf32>
    %cst_19 = arith.constant dense<0.000000e+00> : vector<8x1xf32>
    %66 = vector.multi_reduction <add>, %65, %cst_19 [1] : vector<8x8x1xf32> to vector<8x1xf32>
    %67 = vector.broadcast %65 : vector<8x8x1xf32> to vector<8x8x128xf32>
    %68 = arith.mulf %67, %53 : vector<8x8x128xf32>
    %cst_20 = arith.constant dense<0.000000e+00> : vector<8x128xf32>
    %69 = vector.multi_reduction <add>, %68, %cst_20 [1] : vector<8x8x128xf32> to vector<8x128xf32>
    %cst_21 = arith.constant 1.000000e-15 : f32
    %70 = vector.broadcast %cst_21 : f32 to vector<8x1xf32>
    %71 = arith.maximumf %66, %70 : vector<8x1xf32>
    %72 = tpu.reciprocal %71 {approx = true} : vector<8x1xf32> -> vector<8x1xf32>
    %73 = vector.broadcast %72 : vector<8x1xf32> to vector<8x128xf32>
    %74 = arith.mulf %69, %73 : vector<8x128xf32>
    %75 = arith.mulf %74, %74 : vector<8x128xf32>
    %cst_22 = arith.constant dense<0.000000e+00> : vector<8xf32>
    %76 = vector.multi_reduction <add>, %75, %cst_22 [1] : vector<8x128xf32> to vector<8xf32>
    %77 = vector.shape_cast %76 : vector<8xf32> to vector<8x1xf32>
    %cst_23 = arith.constant 1.000000e-30 : f32
    %78 = vector.broadcast %cst_23 : f32 to vector<8x1xf32>
    %79 = arith.maximumf %77, %78 : vector<8x1xf32>
    %80 = math.rsqrt %79 : vector<8x1xf32>
    %cst_24 = arith.constant 9.920160e-01 : f32
    %81 = vector.broadcast %cst_24 : f32 to vector<8x1xf32>
    %82 = arith.cmpf ogt, %77, %81 : vector<8x1xf32>
    %cst_25 = arith.constant 0.995999991 : f32
    %83 = vector.broadcast %cst_25 : f32 to vector<8x1xf32>
    %84 = arith.mulf %83, %80 : vector<8x1xf32>
    %85 = vector.broadcast %84 : vector<8x1xf32> to vector<8x128xf32>
    %86 = arith.mulf %74, %85 : vector<8x128xf32>
    %87 = vector.shape_cast %82 : vector<8x1xi1> to vector<8x1xi1>
    %88 = vector.broadcast %87 : vector<8x1xi1> to vector<8x128xi1>
    %89 = arith.select %88, %86, %74 : vector<8x128xi1>, vector<8x128xf32>
    %90 = arith.mulf %89, %89 : vector<8x128xf32>
    %cst_26 = arith.constant dense<0.000000e+00> : vector<8xf32>
    %91 = vector.multi_reduction <add>, %90, %cst_26 [1] : vector<8x128xf32> to vector<8xf32>
    %92 = vector.shape_cast %91 : vector<8xf32> to vector<8x1xf32>
    %cst_27 = arith.constant 1.000000e+00 : f32
    %93 = vector.broadcast %cst_27 : f32 to vector<8x1xf32>
    %94 = arith.subf %93, %92 : vector<8x1xf32>
    %cst_28 = arith.constant 0.000000e+00 : f32
    %95 = vector.broadcast %cst_28 : f32 to vector<8x1xf32>
    %96 = arith.maximumf %94, %95 : vector<8x1xf32>
    %97 = math.sqrt %96 : vector<8x1xf32>
    %cst_29 = arith.constant 1.000000e+00 : f32
    %98 = vector.broadcast %cst_29 : f32 to vector<8x1xf32>
    %99 = arith.addf %98, %97 : vector<8x1xf32>
    %100 = tpu.reciprocal %99 {approx = true} : vector<8x1xf32> -> vector<8x1xf32>
    %101 = vector.broadcast %100 : vector<8x1xf32> to vector<8x128xf32>
    %102 = arith.mulf %89, %101 : vector<8x128xf32>
    %103 = arith.mulf %102, %102 : vector<8x128xf32>
    %cst_30 = arith.constant dense<0.000000e+00> : vector<8xf32>
    %104 = vector.multi_reduction <add>, %103, %cst_30 [1] : vector<8x128xf32> to vector<8xf32>
    %105 = vector.shape_cast %104 : vector<8xf32> to vector<8x1xf32>
    %cst_31 = arith.constant 1.000000e-30 : f32
    %106 = vector.broadcast %cst_31 : f32 to vector<8x1xf32>
    %107 = arith.maximumf %105, %106 : vector<8x1xf32>
    %108 = math.rsqrt %107 : vector<8x1xf32>
    %cst_32 = arith.constant 9.920160e-01 : f32
    %109 = vector.broadcast %cst_32 : f32 to vector<8x1xf32>
    %110 = arith.cmpf ogt, %105, %109 : vector<8x1xf32>
    %cst_33 = arith.constant 0.995999991 : f32
    %111 = vector.broadcast %cst_33 : f32 to vector<8x1xf32>
    %112 = arith.mulf %111, %108 : vector<8x1xf32>
    %113 = vector.broadcast %112 : vector<8x1xf32> to vector<8x128xf32>
    %114 = arith.mulf %102, %113 : vector<8x128xf32>
    %115 = vector.shape_cast %110 : vector<8x1xi1> to vector<8x1xi1>
    %116 = vector.broadcast %115 : vector<8x1xi1> to vector<8x128xi1>
    %117 = arith.select %116, %114, %102 : vector<8x128xi1>, vector<8x128xf32>
    %c0_34 = arith.constant 0 : index
    %c0_35 = arith.constant 0 : index
    %118 = vector.load %arg2[%c0_34, %c0_35] : memref<8x128xf32, #tpu.memory_space<vmem>>, vector<8x128xf32>
    tpu.vector_store %arg2[%c0_34, %c0_35], %117 {strides = array<i32>} : memref<8x128xf32, #tpu.memory_space<vmem>>, vector<8x128xf32>,
    return
  }
  func.func @transform_0(%arg0: i32) -> (i32, i32, i32) {
    %c0_i32 = arith.constant 0 : i32
    %c0_i32_0 = arith.constant 0 : i32
    %c0_i32_1 = arith.constant 0 : i32
    return %arg0, %c0_i32, %c0_i32_0 : i32, i32, i32
  }
  func.func @transform_1(%arg0: i32) -> (i32, i32) {
    %c0_i32 = arith.constant 0 : i32
    %c0_i32_0 = arith.constant 0 : i32
    return %arg0, %c0_i32 : i32, i32
  }
}

module attributes {stable_mosaic.version = 11 : i64} {
  func.func @_dist_cls_kernel(%arg0: i32, %arg1: memref<8xf32, #tpu.memory_space<smem>>, %arg2: memref<1x8x128xbf16, #tpu.memory_space<vmem>>, %arg3: memref<1x128x128xbf16, #tpu.memory_space<vmem>>, %arg4: memref<1x128x128xbf16, #tpu.memory_space<vmem>>, %arg5: memref<1x128x128xbf16, #tpu.memory_space<vmem>>, %arg6: memref<1x8x1xf32, #tpu.memory_space<vmem>>) attributes {dimension_semantics = [#tpu.dimension_semantics<parallel>], iteration_bounds = array<i64: 2>, scalar_prefetch = 0 : i64, scratch_operands = 0 : i64, tpu.core_type = #tpu.core_type<tc>, window_params = [{transform_indices = @transform_0, window_bounds = array<i64: 8>}, {transform_indices = @transform_1, window_bounds = array<i64: 1, 8, 128>}, {transform_indices = @transform_2, window_bounds = array<i64: 1, 128, 128>}, {transform_indices = @transform_3, window_bounds = array<i64: 1, 128, 128>}, {transform_indices = @transform_4, window_bounds = array<i64: 1, 128, 128>}, {transform_indices = @transform_5, window_bounds = array<i64: 1, 8, 1>}]} {
    %c0 = arith.constant 0 : index
    %c0_0 = arith.constant 0 : index
    %c0_1 = arith.constant 0 : index
    %0 = vector.load %arg2[%c0, %c0_0, %c0_1] : memref<1x8x128xbf16, #tpu.memory_space<vmem>>, vector<1x8x128xbf16>
    %1 = vector.shape_cast %0 : vector<1x8x128xbf16> to vector<8x128xbf16>
    %2 = arith.extf %1 : vector<8x128xbf16> to vector<8x128xf32>
    %3 = arith.mulf %2, %2 : vector<8x128xf32>
    %cst = arith.constant dense<0.000000e+00> : vector<8xf32>
    %4 = vector.multi_reduction <add>, %3, %cst [1] : vector<8x128xf32> to vector<8xf32>
    %5 = vector.shape_cast %4 : vector<8xf32> to vector<8x1xf32>
    %cst_2 = arith.constant 0.000000e+00 : f32
    %6 = vector.broadcast %cst_2 : f32 to vector<8x1xf32>
    %c6 = arith.constant 6 : index
    %7 = memref.load %arg1[%c6] : memref<8xf32, #tpu.memory_space<smem>>
    %8 = vector.broadcast %7 : f32 to vector<8x1xf32>
    %9 = arith.addf %6, %8 : vector<8x1xf32>
    %10 = tpu.iota {dimensions = array<i32: 1>} : vector<8x128xi32>
    %c0_3 = arith.constant 0 : index
    %c0_4 = arith.constant 0 : index
    %c0_5 = arith.constant 0 : index
    %11 = vector.load %arg3[%c0_3, %c0_4, %c0_5] : memref<1x128x128xbf16, #tpu.memory_space<vmem>>, vector<1x128x128xbf16>
    %12 = vector.shape_cast %11 : vector<1x128x128xbf16> to vector<128x128xbf16>
    %13 = arith.extf %12 : vector<128x128xbf16> to vector<128x128xf32>
    %14 = arith.mulf %13, %13 : vector<128x128xf32>
    %cst_6 = arith.constant dense<0.000000e+00> : vector<128xf32>
    %15 = vector.multi_reduction <add>, %14, %cst_6 [0] : vector<128x128xf32> to vector<128xf32>
    %16 = vector.shape_cast %15 : vector<128xf32> to vector<1x128xf32>
    %cst_7 = arith.constant dense<0.000000e+00> : vector<8x128xf32>
    %17 = tpu.matmul %1, %12, %cst_7 {dimension_numbers = #tpu.dot_dimension_numbers<[1], [0], [0], [1], [0, 0, 1, 1], [], []>} : vector<8x128xbf16>, vector<128x128xbf16>, vector<8x128xf32> -> vector<8x128xf32>
    %cst_8 = arith.constant 2.000000e+00 : f32
    %18 = vector.broadcast %cst_8 : f32 to vector<8x128xf32>
    %19 = arith.mulf %18, %17 : vector<8x128xf32>
    %20 = vector.broadcast %5 : vector<8x1xf32> to vector<8x128xf32>
    %21 = arith.subf %20, %19 : vector<8x128xf32>
    %22 = vector.broadcast %16 : vector<1x128xf32> to vector<8x128xf32>
    %23 = arith.addf %21, %22 : vector<8x128xf32>
    %cst_9 = arith.constant 2.000000e+00 : f32
    %24 = vector.broadcast %cst_9 : f32 to vector<8x128xf32>
    %25 = arith.mulf %24, %17 : vector<8x128xf32>
    %cst_10 = arith.constant 1.000000e+00 : f32
    %26 = vector.broadcast %cst_10 : f32 to vector<8x128xf32>
    %27 = arith.subf %26, %25 : vector<8x128xf32>
    %28 = vector.broadcast %5 : vector<8x1xf32> to vector<8x128xf32>
    %29 = vector.broadcast %16 : vector<1x128xf32> to vector<8x128xf32>
    %30 = arith.mulf %28, %29 : vector<8x128xf32>
    %31 = arith.addf %27, %30 : vector<8x128xf32>
    %cst_11 = arith.constant 0.000000e+00 : f32
    %32 = vector.broadcast %cst_11 : f32 to vector<8x128xf32>
    %33 = arith.maximumf %23, %32 : vector<8x128xf32>
    %cst_12 = arith.constant 1.000000e-15 : f32
    %34 = vector.broadcast %cst_12 : f32 to vector<8x128xf32>
    %35 = arith.maximumf %31, %34 : vector<8x128xf32>
    %36 = arith.divf %33, %35 : vector<8x128xf32>
    %37 = math.sqrt %36 : vector<8x128xf32>
    %cst_13 = arith.constant -0.999989986 : f32
    %cst_14 = arith.constant 0.999989986 : f32
    %38 = vector.broadcast %cst_13 : f32 to vector<8x128xf32>
    %39 = arith.maximumf %38, %37 : vector<8x128xf32>
    %40 = vector.broadcast %cst_14 : f32 to vector<8x128xf32>
    %41 = arith.minimumf %40, %39 : vector<8x128xf32>
    %cst_15 = arith.constant 1.000000e+00 : f32
    %42 = vector.broadcast %cst_15 : f32 to vector<8x128xf32>
    %43 = arith.addf %42, %41 : vector<8x128xf32>
    %cst_16 = arith.constant 1.000000e+00 : f32
    %44 = vector.broadcast %cst_16 : f32 to vector<8x128xf32>
    %45 = arith.subf %44, %41 : vector<8x128xf32>
    %46 = arith.divf %43, %45 : vector<8x128xf32>
    %47 = math.log %46 : vector<8x128xf32>
    %48 = arith.mulf %47, %47 : vector<8x128xf32>
    %cst_17 = arith.constant 0.000000e+00 : f32
    %49 = vector.broadcast %cst_17 : f32 to vector<8x128xf32>
    %50 = arith.subf %49, %48 : vector<8x128xf32>
    %cst_18 = arith.constant 0.0883883461 : f32
    %51 = vector.broadcast %cst_18 : f32 to vector<8x128xf32>
    %52 = arith.mulf %50, %51 : vector<8x128xf32>
    %c16_i32 = arith.constant 16 : i32
    %53 = vector.broadcast %c16_i32 : i32 to vector<8x128xi32>
    %54 = arith.cmpi slt, %10, %53 : vector<8x128xi32>
    %cst_19 = arith.constant 0xFF800000 : f32
    %55 = vector.broadcast %cst_19 : f32 to vector<8x128xf32>
    %56 = arith.select %54, %52, %55 : vector<8x128xi1>, vector<8x128xf32>
    %cst_20 = arith.constant dense<0xFF800000> : vector<8xf32>
    %57 = vector.multi_reduction <maximumf>, %56, %cst_20 [1] : vector<8x128xf32> to vector<8xf32>
    %58 = vector.shape_cast %57 : vector<8xf32> to vector<8x1xf32>
    %cst_21 = arith.constant 0.000000e+00 : f32
    %59 = vector.broadcast %cst_21 : f32 to vector<8x128xf32>
    %60 = arith.select %54, %52, %59 : vector<8x128xi1>, vector<8x128xf32>
    %cst_22 = arith.constant dense<0.000000e+00> : vector<8xf32>
    %61 = vector.multi_reduction <add>, %60, %cst_22 [1] : vector<8x128xf32> to vector<8xf32>
    %62 = vector.shape_cast %61 : vector<8xf32> to vector<8x1xf32>
    %cst_23 = arith.constant 6.250000e-02 : f32
    %63 = vector.broadcast %cst_23 : f32 to vector<8x1xf32>
    %64 = arith.mulf %62, %63 : vector<8x1xf32>
    %c0_24 = arith.constant 0 : index
    %65 = memref.load %arg1[%c0_24] : memref<8xf32, #tpu.memory_space<smem>>
    %66 = vector.broadcast %65 : f32 to vector<8x1xf32>
    %67 = arith.mulf %66, %58 : vector<8x1xf32>
    %68 = arith.addf %9, %67 : vector<8x1xf32>
    %c1 = arith.constant 1 : index
    %69 = memref.load %arg1[%c1] : memref<8xf32, #tpu.memory_space<smem>>
    %70 = vector.broadcast %69 : f32 to vector<8x1xf32>
    %71 = arith.mulf %70, %64 : vector<8x1xf32>
    %72 = arith.addf %68, %71 : vector<8x1xf32>
    %c0_25 = arith.constant 0 : index
    %c0_26 = arith.constant 0 : index
    %c0_27 = arith.constant 0 : index
    %73 = vector.load %arg4[%c0_25, %c0_26, %c0_27] : memref<1x128x128xbf16, #tpu.memory_space<vmem>>, vector<1x128x128xbf16>
    %74 = vector.shape_cast %73 : vector<1x128x128xbf16> to vector<128x128xbf16>
    %75 = arith.extf %74 : vector<128x128xbf16> to vector<128x128xf32>
    %76 = arith.mulf %75, %75 : vector<128x128xf32>
    %cst_28 = arith.constant dense<0.000000e+00> : vector<128xf32>
    %77 = vector.multi_reduction <add>, %76, %cst_28 [0] : vector<128x128xf32> to vector<128xf32>
    %78 = vector.shape_cast %77 : vector<128xf32> to vector<1x128xf32>
    %cst_29 = arith.constant dense<0.000000e+00> : vector<8x128xf32>
    %79 = tpu.matmul %1, %74, %cst_29 {dimension_numbers = #tpu.dot_dimension_numbers<[1], [0], [0], [1], [0, 0, 1, 1], [], []>} : vector<8x128xbf16>, vector<128x128xbf16>, vector<8x128xf32> -> vector<8x128xf32>
    %cst_30 = arith.constant 2.000000e+00 : f32
    %80 = vector.broadcast %cst_30 : f32 to vector<8x128xf32>
    %81 = arith.mulf %80, %79 : vector<8x128xf32>
    %82 = vector.broadcast %5 : vector<8x1xf32> to vector<8x128xf32>
    %83 = arith.subf %82, %81 : vector<8x128xf32>
    %84 = vector.broadcast %78 : vector<1x128xf32> to vector<8x128xf32>
    %85 = arith.addf %83, %84 : vector<8x128xf32>
    %cst_31 = arith.constant 2.000000e+00 : f32
    %86 = vector.broadcast %cst_31 : f32 to vector<8x128xf32>
    %87 = arith.mulf %86, %79 : vector<8x128xf32>
    %cst_32 = arith.constant 1.000000e+00 : f32
    %88 = vector.broadcast %cst_32 : f32 to vector<8x128xf32>
    %89 = arith.subf %88, %87 : vector<8x128xf32>
    %90 = vector.broadcast %5 : vector<8x1xf32> to vector<8x128xf32>
    %91 = vector.broadcast %78 : vector<1x128xf32> to vector<8x128xf32>
    %92 = arith.mulf %90, %91 : vector<8x128xf32>
    %93 = arith.addf %89, %92 : vector<8x128xf32>
    %cst_33 = arith.constant 0.000000e+00 : f32
    %94 = vector.broadcast %cst_33 : f32 to vector<8x128xf32>
    %95 = arith.maximumf %85, %94 : vector<8x128xf32>
    %cst_34 = arith.constant 1.000000e-15 : f32
    %96 = vector.broadcast %cst_34 : f32 to vector<8x128xf32>
    %97 = arith.maximumf %93, %96 : vector<8x128xf32>
    %98 = arith.divf %95, %97 : vector<8x128xf32>
    %99 = math.sqrt %98 : vector<8x128xf32>
    %cst_35 = arith.constant -0.999989986 : f32
    %cst_36 = arith.constant 0.999989986 : f32
    %100 = vector.broadcast %cst_35 : f32 to vector<8x128xf32>
    %101 = arith.maximumf %100, %99 : vector<8x128xf32>
    %102 = vector.broadcast %cst_36 : f32 to vector<8x128xf32>
    %103 = arith.minimumf %102, %101 : vector<8x128xf32>
    %cst_37 = arith.constant 1.000000e+00 : f32
    %104 = vector.broadcast %cst_37 : f32 to vector<8x128xf32>
    %105 = arith.addf %104, %103 : vector<8x128xf32>
    %cst_38 = arith.constant 1.000000e+00 : f32
    %106 = vector.broadcast %cst_38 : f32 to vector<8x128xf32>
    %107 = arith.subf %106, %103 : vector<8x128xf32>
    %108 = arith.divf %105, %107 : vector<8x128xf32>
    %109 = math.log %108 : vector<8x128xf32>
    %110 = arith.mulf %109, %109 : vector<8x128xf32>
    %cst_39 = arith.constant 0.000000e+00 : f32
    %111 = vector.broadcast %cst_39 : f32 to vector<8x128xf32>
    %112 = arith.subf %111, %110 : vector<8x128xf32>
    %cst_40 = arith.constant 0.0883883461 : f32
    %113 = vector.broadcast %cst_40 : f32 to vector<8x128xf32>
    %114 = arith.mulf %112, %113 : vector<8x128xf32>
    %c15_i32 = arith.constant 15 : i32
    %115 = vector.broadcast %c15_i32 : i32 to vector<8x128xi32>
    %116 = arith.cmpi slt, %10, %115 : vector<8x128xi32>
    %cst_41 = arith.constant 0xFF800000 : f32
    %117 = vector.broadcast %cst_41 : f32 to vector<8x128xf32>
    %118 = arith.select %116, %114, %117 : vector<8x128xi1>, vector<8x128xf32>
    %cst_42 = arith.constant dense<0xFF800000> : vector<8xf32>
    %119 = vector.multi_reduction <maximumf>, %118, %cst_42 [1] : vector<8x128xf32> to vector<8xf32>
    %120 = vector.shape_cast %119 : vector<8xf32> to vector<8x1xf32>
    %cst_43 = arith.constant 0.000000e+00 : f32
    %121 = vector.broadcast %cst_43 : f32 to vector<8x128xf32>
    %122 = arith.select %116, %114, %121 : vector<8x128xi1>, vector<8x128xf32>
    %cst_44 = arith.constant dense<0.000000e+00> : vector<8xf32>
    %123 = vector.multi_reduction <add>, %122, %cst_44 [1] : vector<8x128xf32> to vector<8xf32>
    %124 = vector.shape_cast %123 : vector<8xf32> to vector<8x1xf32>
    %cst_45 = arith.constant 0.0666666701 : f32
    %125 = vector.broadcast %cst_45 : f32 to vector<8x1xf32>
    %126 = arith.mulf %124, %125 : vector<8x1xf32>
    %c2 = arith.constant 2 : index
    %127 = memref.load %arg1[%c2] : memref<8xf32, #tpu.memory_space<smem>>
    %128 = vector.broadcast %127 : f32 to vector<8x1xf32>
    %129 = arith.mulf %128, %120 : vector<8x1xf32>
    %130 = arith.addf %72, %129 : vector<8x1xf32>
    %c3 = arith.constant 3 : index
    %131 = memref.load %arg1[%c3] : memref<8xf32, #tpu.memory_space<smem>>
    %132 = vector.broadcast %131 : f32 to vector<8x1xf32>
    %133 = arith.mulf %132, %126 : vector<8x1xf32>
    %134 = arith.addf %130, %133 : vector<8x1xf32>
    %c0_46 = arith.constant 0 : index
    %c0_47 = arith.constant 0 : index
    %c0_48 = arith.constant 0 : index
    %135 = vector.load %arg5[%c0_46, %c0_47, %c0_48] : memref<1x128x128xbf16, #tpu.memory_space<vmem>>, vector<1x128x128xbf16>
    %136 = vector.shape_cast %135 : vector<1x128x128xbf16> to vector<128x128xbf16>
    %137 = arith.extf %136 : vector<128x128xbf16> to vector<128x128xf32>
    %138 = arith.mulf %137, %137 : vector<128x128xf32>
    %cst_49 = arith.constant dense<0.000000e+00> : vector<128xf32>
    %139 = vector.multi_reduction <add>, %138, %cst_49 [0] : vector<128x128xf32> to vector<128xf32>
    %140 = vector.shape_cast %139 : vector<128xf32> to vector<1x128xf32>
    %cst_50 = arith.constant dense<0.000000e+00> : vector<8x128xf32>
    %141 = tpu.matmul %1, %136, %cst_50 {dimension_numbers = #tpu.dot_dimension_numbers<[1], [0], [0], [1], [0, 0, 1, 1], [], []>} : vector<8x128xbf16>, vector<128x128xbf16>, vector<8x128xf32> -> vector<8x128xf32>
    %cst_51 = arith.constant 2.000000e+00 : f32
    %142 = vector.broadcast %cst_51 : f32 to vector<8x128xf32>
    %143 = arith.mulf %142, %141 : vector<8x128xf32>
    %144 = vector.broadcast %5 : vector<8x1xf32> to vector<8x128xf32>
    %145 = arith.subf %144, %143 : vector<8x128xf32>
    %146 = vector.broadcast %140 : vector<1x128xf32> to vector<8x128xf32>
    %147 = arith.addf %145, %146 : vector<8x128xf32>
    %cst_52 = arith.constant 2.000000e+00 : f32
    %148 = vector.broadcast %cst_52 : f32 to vector<8x128xf32>
    %149 = arith.mulf %148, %141 : vector<8x128xf32>
    %cst_53 = arith.constant 1.000000e+00 : f32
    %150 = vector.broadcast %cst_53 : f32 to vector<8x128xf32>
    %151 = arith.subf %150, %149 : vector<8x128xf32>
    %152 = vector.broadcast %5 : vector<8x1xf32> to vector<8x128xf32>
    %153 = vector.broadcast %140 : vector<1x128xf32> to vector<8x128xf32>
    %154 = arith.mulf %152, %153 : vector<8x128xf32>
    %155 = arith.addf %151, %154 : vector<8x128xf32>
    %cst_54 = arith.constant 0.000000e+00 : f32
    %156 = vector.broadcast %cst_54 : f32 to vector<8x128xf32>
    %157 = arith.maximumf %147, %156 : vector<8x128xf32>
    %cst_55 = arith.constant 1.000000e-15 : f32
    %158 = vector.broadcast %cst_55 : f32 to vector<8x128xf32>
    %159 = arith.maximumf %155, %158 : vector<8x128xf32>
    %160 = arith.divf %157, %159 : vector<8x128xf32>
    %161 = math.sqrt %160 : vector<8x128xf32>
    %cst_56 = arith.constant -0.999989986 : f32
    %cst_57 = arith.constant 0.999989986 : f32
    %162 = vector.broadcast %cst_56 : f32 to vector<8x128xf32>
    %163 = arith.maximumf %162, %161 : vector<8x128xf32>
    %164 = vector.broadcast %cst_57 : f32 to vector<8x128xf32>
    %165 = arith.minimumf %164, %163 : vector<8x128xf32>
    %cst_58 = arith.constant 1.000000e+00 : f32
    %166 = vector.broadcast %cst_58 : f32 to vector<8x128xf32>
    %167 = arith.addf %166, %165 : vector<8x128xf32>
    %cst_59 = arith.constant 1.000000e+00 : f32
    %168 = vector.broadcast %cst_59 : f32 to vector<8x128xf32>
    %169 = arith.subf %168, %165 : vector<8x128xf32>
    %170 = arith.divf %167, %169 : vector<8x128xf32>
    %171 = math.log %170 : vector<8x128xf32>
    %172 = arith.mulf %171, %171 : vector<8x128xf32>
    %cst_60 = arith.constant 0.000000e+00 : f32
    %173 = vector.broadcast %cst_60 : f32 to vector<8x128xf32>
    %174 = arith.subf %173, %172 : vector<8x128xf32>
    %cst_61 = arith.constant 0.0883883461 : f32
    %175 = vector.broadcast %cst_61 : f32 to vector<8x128xf32>
    %176 = arith.mulf %174, %175 : vector<8x128xf32>
    %c14_i32 = arith.constant 14 : i32
    %177 = vector.broadcast %c14_i32 : i32 to vector<8x128xi32>
    %178 = arith.cmpi slt, %10, %177 : vector<8x128xi32>
    %cst_62 = arith.constant 0xFF800000 : f32
    %179 = vector.broadcast %cst_62 : f32 to vector<8x128xf32>
    %180 = arith.select %178, %176, %179 : vector<8x128xi1>, vector<8x128xf32>
    %cst_63 = arith.constant dense<0xFF800000> : vector<8xf32>
    %181 = vector.multi_reduction <maximumf>, %180, %cst_63 [1] : vector<8x128xf32> to vector<8xf32>
    %182 = vector.shape_cast %181 : vector<8xf32> to vector<8x1xf32>
    %cst_64 = arith.constant 0.000000e+00 : f32
    %183 = vector.broadcast %cst_64 : f32 to vector<8x128xf32>
    %184 = arith.select %178, %176, %183 : vector<8x128xi1>, vector<8x128xf32>
    %cst_65 = arith.constant dense<0.000000e+00> : vector<8xf32>
    %185 = vector.multi_reduction <add>, %184, %cst_65 [1] : vector<8x128xf32> to vector<8xf32>
    %186 = vector.shape_cast %185 : vector<8xf32> to vector<8x1xf32>
    %cst_66 = arith.constant 0.0714285746 : f32
    %187 = vector.broadcast %cst_66 : f32 to vector<8x1xf32>
    %188 = arith.mulf %186, %187 : vector<8x1xf32>
    %c4 = arith.constant 4 : index
    %189 = memref.load %arg1[%c4] : memref<8xf32, #tpu.memory_space<smem>>
    %190 = vector.broadcast %189 : f32 to vector<8x1xf32>
    %191 = arith.mulf %190, %182 : vector<8x1xf32>
    %192 = arith.addf %134, %191 : vector<8x1xf32>
    %c5 = arith.constant 5 : index
    %193 = memref.load %arg1[%c5] : memref<8xf32, #tpu.memory_space<smem>>
    %194 = vector.broadcast %193 : f32 to vector<8x1xf32>
    %195 = arith.mulf %194, %188 : vector<8x1xf32>
    %196 = arith.addf %192, %195 : vector<8x1xf32>
    %c0_67 = arith.constant 0 : index
    %c0_68 = arith.constant 0 : index
    %c0_69 = arith.constant 0 : index
    %197 = vector.load %arg6[%c0_67, %c0_68, %c0_69] : memref<1x8x1xf32, #tpu.memory_space<vmem>>, vector<1x8x1xf32>
    %198 = vector.shape_cast %197 : vector<1x8x1xf32> to vector<8x1xf32>
    %199 = vector.shape_cast %196 : vector<8x1xf32> to vector<1x8x1xf32>
    tpu.vector_store %arg6[%c0_67, %c0_68, %c0_69], %199 {strides = array<i32>} : memref<1x8x1xf32, #tpu.memory_space<vmem>>, vector<1x8x1xf32>,
    return
  }
  func.func @transform_0(%arg0: i32) -> i32 {
    %c0_i32 = arith.constant 0 : i32
    %c0_i32_0 = arith.constant 0 : i32
    return %c0_i32 : i32
  }
  func.func @transform_1(%arg0: i32) -> (i32, i32, i32) {
    %c0_i32 = arith.constant 0 : i32
    %c0_i32_0 = arith.constant 0 : i32
    %c0_i32_1 = arith.constant 0 : i32
    return %arg0, %c0_i32, %c0_i32_0 : i32, i32, i32
  }
  func.func @transform_2(%arg0: i32) -> (i32, i32, i32) {
    %c0_i32 = arith.constant 0 : i32
    %c0_i32_0 = arith.constant 0 : i32
    %c0_i32_1 = arith.constant 0 : i32
    return %arg0, %c0_i32, %c0_i32_0 : i32, i32, i32
  }
  func.func @transform_3(%arg0: i32) -> (i32, i32, i32) {
    %c0_i32 = arith.constant 0 : i32
    %c0_i32_0 = arith.constant 0 : i32
    %c0_i32_1 = arith.constant 0 : i32
    return %arg0, %c0_i32, %c0_i32_0 : i32, i32, i32
  }
  func.func @transform_4(%arg0: i32) -> (i32, i32, i32) {
    %c0_i32 = arith.constant 0 : i32
    %c0_i32_0 = arith.constant 0 : i32
    %c0_i32_1 = arith.constant 0 : i32
    return %arg0, %c0_i32, %c0_i32_0 : i32, i32, i32
  }
  func.func @transform_5(%arg0: i32) -> (i32, i32, i32) {
    %c0_i32 = arith.constant 0 : i32
    %c0_i32_0 = arith.constant 0 : i32
    %c0_i32_1 = arith.constant 0 : i32
    return %arg0, %c0_i32, %c0_i32_0 : i32, i32, i32
  }
}

</mosaic_0001>

<bundles_post_ra>
// kernel: matchsum_forward.4
= control target key start
LH: loop header
LB: loop body
LE: loop exit
PB: predicated region body
PF: predicated region fallthrough
CT: control target
= control target key end

     0   :  { %s1051_s6 = smov 0   ;;  %s1347_s0 = inlined_call_operand.vmem [shape: bf16[16,8,128], index: 0, kind: input, shape index: {}]   ;;  %s1348_s1 = inlined_call_operand.vmem [shape: f32[16,128], index: 1, kind: output, shape index: {}]  }
   0x1 LB: > { %s1057_s7 = sadd.s32 4294967295, %s1039_s6   ;;  %p864_p0 = scmp.ge.s32.totalorder %s1039_s6, 1  ;;  %s1039_s6 = sphi %s1051_s6, %s11_s6  }
   0x2   : > { %p88_p1 = scmp.lt.s32.totalorder %s1039_s6, 3 }
   0x4   : > { %p89_p2 = pnand %p864_p0, %p88_p1 }
   0x5   : > { %s865_s8 = sshll.u32 (!%p89_p2), %s1057_s7, 3  ;;  %p113_p4 = scmp.lt.s32.totalorder (!%p89_p2), %s1057_s7, 1 }
   0x6   : > { %92 = sbr.rel (%p89_p2) target bundleno = 1403 (0x57b), region = 24  ;;  %p108_p3 = scmp.lt.s32.totalorder (!%p89_p2), %s865_s8, 15 }
   0xd   : > { %s1350_s8 = smov (!%p108_p3, %s865_s8), 15  ;;  %s1352_s7 = smov (!%p113_p4, %s1057_s7), 1 }
   0xe   : > { %s866_s9 = sshll.u32 %s1350_s8, 2  ;;  %s867_s13 = sshll.u32 %s1352_s7, 3 }
   0xf   : > { %s111_s12 = scalar_lea.vmem %s1347_s0, %s866_s9  ;;  %s116_s16 = scalar_lea.vmem %s1348_s1, %s867_s13 }
  0x10   : > { %v886_v0 = vld [vmem:[%s111_s12 + $0x8] sm:$0xff]   ;;  %v871_v1 = vld [vmem:[%s111_s12] sm:$0xff]   ;;  %v887_v6 = vld [vmem:[%s111_s12 + $0x10] sm:$0xff]  }
  0x11   : > { %v1065_v2 = vunpack.c.l.bf16 %v886_v0  ;;  %v1067_v3 = vunpack.c.l.bf16 %v871_v1  ;;  %v1069_v4 = vunpack.c.h.bf16 %v886_v0  ;;  %v1071_v5 = vunpack.c.h.bf16 %v871_v1  ;;  %v888_v13 = vld [vmem:[%s111_s12 + $0x18] sm:$0xff]  }
  0x12   : > { %v1081_v11 = vunpack.c.h.bf16 %v887_v6  ;;  %v1083_v12 = vunpack.c.l.bf16 %v887_v6  ;;  %v1089_v16 = vunpack.c.h.bf16 %v888_v13  ;;  %v1091_v17 = vunpack.c.l.bf16 %v888_v13 }
  0x13   : > { %v135_v7 = vmul.f32 %v1065_v2, %v1065_v2  ;;  %v133_v8 = vmul.f32 %v1067_v3, %v1067_v3  ;;  %v136_v9 = vmul.f32 %v1069_v4, %v1069_v4  ;;  %v134_v10 = vmul.f32 %v1071_v5, %v1071_v5 }
  0x14   : > { %v138_v14 = vmul.f32 %v1081_v11, %v1081_v11  ;;  %v137_v15 = vmul.f32 %v1083_v12, %v1083_v12  ;;  %v140_v18 = vmul.f32 %v1089_v16, %v1089_v16  ;;  %v139_v19 = vmul.f32 %v1091_v17, %v1091_v17 }
  0x15   : > { %145 = vadd.xlane.f32.xlu1 %v135_v7  ;;  %141 = vadd.xlane.f32.xlu0 %v133_v8 }
  0x19   : > { %147 = vadd.xlane.f32.xlu1 %v136_v9  ;;  %143 = vadd.xlane.f32.xlu0 %v134_v10 }
  0x1d   : > { %151 = vadd.xlane.f32.xlu1 %v138_v14  ;;  %149 = vadd.xlane.f32.xlu0 %v137_v15 }
  0x21   : > { %155 = vadd.xlane.f32.xlu1 %v140_v18  ;;  %153 = vadd.xlane.f32.xlu0 %v139_v19 }
  0xa2   : > { %v146_v20 = vpop.xlane.xlu1 %145  ;;  %v142_v21 = vpop.xlane.xlu0 %141 }
  0xa3   : > { %897 = vrsqrt.f32 %v146_v20  ;;  %vm173_vm0 = vcmp.eq.f32.partialorder %v146_v20, inf  ;;  %vm175_vm1 = vcmp.eq.f32.partialorder %v146_v20, 0.0  ;;  %v176_v29 = vand.u32 2147483648, %v146_v20 }
  0xa4   : > { %899 = vrsqrt.f32 %v142_v21  ;;  %vm159_vm2 = vcmp.eq.f32.partialorder %v142_v21, inf  ;;  %vm161_vm3 = vcmp.eq.f32.partialorder %v142_v21, 0.0  ;;  %v162_v34 = vand.u32 2147483648, %v142_v21 }
  0xa6   : > { %v148_v22 = vpop.xlane.xlu1 %147  ;;  %v144_v23 = vpop.xlane.xlu0 %143 }
  0xa7   : > { %901 = vrsqrt.f32 %v148_v22  ;;  %vm180_vm4 = vcmp.eq.f32.partialorder %v148_v22, inf  ;;  %vm182_vm5 = vcmp.eq.f32.partialorder %v148_v22, 0.0  ;;  %v183_v38 = vand.u32 2147483648, %v148_v22 }
  0xa8   : > { %903 = vrsqrt.f32 %v144_v23  ;;  %vm166_vm6 = vcmp.eq.f32.partialorder %v144_v23, inf  ;;  %vm168_vm7 = vcmp.eq.f32.partialorder %v144_v23, 0.0  ;;  %v169_v45 = vand.u32 2147483648, %v144_v23 }
  0xaa   : > { %v152_v24 = vpop.xlane.xlu1 %151  ;;  %v1097_v25 = vpop.xlane.xlu0 %149 }
  0xab   : > { %905 = vrsqrt.f32 %v152_v24  ;;  %vm194_vm8 = vcmp.eq.f32.partialorder %v152_v24, inf  ;;  %vm196_vm9 = vcmp.eq.f32.partialorder %v152_v24, 0.0  ;;  %v197_v50 = vand.u32 2147483648, %v152_v24 }
  0xac   : > { %907 = vrsqrt.f32 %v1097_v25  ;;  %vm187_vm10 = vcmp.eq.f32.partialorder %v1097_v25, inf  ;;  %vm189_vm11 = vcmp.eq.f32.partialorder %v1097_v25, 0.0  ;;  %v190_v58 = vand.u32 2147483648, %v1097_v25 }
  0xad   : > { %v898_v26 = vpop.eup %897 }
  0xae   : > { %v900_v27 = vpop.eup %899  ;;  %v172_v28 = vmul.f32 %v898_v26, %v146_v20  ;;  %v1100_v30 = vpop.xlane.xlu1 %155 }
  0xaf   : > { %v1102_v31 = vpop.xlane.xlu0 %153  ;;  %v158_v32 = vmul.f32 %v900_v27, %v142_v21  ;;  %909 = vrsqrt.f32 %v1100_v30  ;;  %vm208_vm12 = vcmp.eq.f32.partialorder %v1100_v30, inf  ;;  %vm210_vm13 = vcmp.eq.f32.partialorder %v1100_v30, 0.0 }
  0xb0   : > { %v174_v33 = vsel %vm173_vm0, %v146_v20, %v172_v28  ;;  %911 = vrsqrt.f32 %v1102_v31  ;;  %v211_v7 = vand.u32 2147483648, %v1100_v30  ;;  %vm201_vm14 = vcmp.eq.f32.partialorder %v1102_v31, inf }
  0xb1   : > { %v902_v35 = vpop.eup %901  ;;  %v177_v36 = vsel %vm175_vm1, %v176_v29, %v174_v33  ;;  %v160_v37 = vsel %vm159_vm2, %v142_v21, %v158_v32  ;;  %v204_v10 = vand.u32 2147483648, %v1102_v31  ;;  %vm203_vm15 = vcmp.eq.f32.partialorder %v1102_v31, 0.0 }
  0xb2   : > { %v904_v39 = vpop.eup %903  ;;  %v215_v40 = vmax.f32 %v177_v36, 1e-15  ;;  %v163_v41 = vsel %vm161_vm3, %v162_v34, %v160_v37  ;;  %v179_v42 = vmul.f32 %v902_v35, %v148_v22 }
  0xb3   : > { %v213_v43 = vmax.f32 %v163_v41, 1e-15  ;;  %v165_v44 = vmul.f32 %v904_v39, %v144_v23 }
  0xb4   : > { %913 = vtanh.f32 %v215_v40  ;;  %v181_v46 = vsel %vm180_vm4, %v148_v22, %v179_v42 }
  0xb5   : > { %v906_v47 = vpop.eup %905  ;;  %v184_v48 = vsel %vm182_vm5, %v183_v38, %v181_v46  ;;  %v167_v49 = vsel %vm166_vm6, %v144_v23, %v165_v44  ;;  %915 = vtanh.f32 %v213_v43 }
  0xb6   : > { %v908_v51 = vpop.eup %907  ;;  %v216_v52 = vmax.f32 %v184_v48, 1e-15  ;;  %v170_v53 = vsel %vm168_vm7, %v169_v45, %v167_v49  ;;  %v193_v54 = vmul.f32 %v906_v47, %v152_v24  ;;  %917 = vrcp.f32 %v213_v43 }
  0xb7   : > { %v214_v55 = vmax.f32 %v170_v53, 1e-15  ;;  %v186_v56 = vmul.f32 %v908_v51, %v1097_v25 }
  0xb8   : > { %919 = vtanh.f32 %v216_v52  ;;  %v195_v57 = vsel %vm194_vm8, %v152_v24, %v193_v54 }
  0xb9   : > { %v910_v59 = vpop.eup %909  ;;  %921 = vrcp.f32 %v215_v40  ;;  %v198_v60 = vsel %vm196_vm9, %v197_v50, %v195_v57  ;;  %v188_v61 = vsel %vm187_vm10, %v1097_v25, %v186_v56 }
  0xba   : > { %v912_v62 = vpop.eup %911  ;;  %923 = vtanh.f32 %v214_v55  ;;  %v218_v63 = vmax.f32 %v198_v60, 1e-15  ;;  %v191_v0 = vsel %vm189_vm11, %v190_v58, %v188_v61  ;;  %v207_v1 = vmul.f32 %v910_v59, %v1100_v30 }
  0xbb   : > { %925 = vrcp.f32 %v214_v55  ;;  %v217_v6 = vmax.f32 %v191_v0, 1e-15  ;;  %v200_v8 = vmul.f32 %v912_v62, %v1102_v31 }
  0xbc   : > { %927 = vtanh.f32 %v218_v63  ;;  %v209_v9 = vsel %vm208_vm12, %v1100_v30, %v207_v1 }
  0xbd   : > { %929 = vrcp.f32 %v216_v52  ;;  %v212_v13 = vsel %vm210_vm13, %v211_v7, %v209_v9  ;;  %v202_v14 = vsel %vm201_vm14, %v1102_v31, %v200_v8 }
  0xbe   : > { %v914_v15 = vpop.eup %913  ;;  %931 = vtanh.f32 %v217_v6  ;;  %v220_v18 = vmax.f32 %v212_v13, 1e-15  ;;  %v205_v19 = vsel %vm203_vm15, %v204_v10, %v202_v14 }
  0xbf   : > { %933 = vrcp.f32 %v217_v6  ;;  %v219_v20 = vmax.f32 %v205_v19, 1e-15  ;;  %v916_v21 = vpop.eup %915  ;;  %v231_v24 = vmul.f32 %v914_v15, %v1065_v2 }
  0xc0   : > { %935 = vtanh.f32 %v220_v18  ;;  %v918_v22 = vpop.eup %917  ;;  %v229_v23 = vmul.f32 %v916_v21, %v1067_v3 }
  0xc1   : > { %937 = vrcp.f32 %v218_v63 }
  0xc2   : > { %v920_v25 = vpop.eup %919  ;;  %939 = vtanh.f32 %v219_v20  ;;  %v1131_v27 = vmul.f32 %v918_v22, %v229_v23 }
  0xc3   : > { %v922_v26 = vpop.eup %921  ;;  %941 = vrcp.f32 %v219_v20  ;;  %v232_v29 = vmul.f32 %v920_v25, %v1069_v4 }
  0xc4   : > { %v924_v28 = vpop.eup %923  ;;  %v253_v31 = vmul.f32 %v1131_v27, %v1131_v27  ;;  %v1136_v32 = vmul.f32 %v922_v26, %v231_v24  ;;  %943 = vrcp.f32 %v220_v18 }
  0xc5   : > { %v926_v30 = vpop.eup %925  ;;  %v230_v33 = vmul.f32 %v924_v28, %v1071_v5 }
  0xc6   : > { %v928_v3 = vpop.eup %927  ;;  %261 = vadd.xlane.f32.xlu0 %v253_v31  ;;  %v255_v4 = vmul.f32 %v1136_v32, %v1136_v32 }
  0xc7   : > { %v930_v2 = vpop.eup %929  ;;  %v1139_v34 = vmul.f32 %v926_v30, %v230_v33  ;;  %v234_v5 = vmul.f32 %v928_v3, %v1081_v11 }
  0xc8   : > { %v932_v35 = vpop.eup %931  ;;  %v1141_v36 = vmul.f32 %v930_v2, %v232_v29 }
  0xc9   : > { %v934_v37 = vpop.eup %933  ;;  %v254_v38 = vmul.f32 %v1139_v34, %v1139_v34  ;;  %v233_v39 = vmul.f32 %v932_v35, %v1083_v12 }
  0xca   : > { %v936_v40 = vpop.eup %935  ;;  %265 = vadd.xlane.f32.xlu0 %v255_v4  ;;  %v256_v44 = vmul.f32 %v1141_v36, %v1141_v36 }
  0xcb   : > { %v938_v41 = vpop.eup %937  ;;  %263 = vadd.xlane.f32.xlu1 %v254_v38  ;;  %v1149_v42 = vmul.f32 %v934_v37, %v233_v39  ;;  %v236_v12 = vmul.f32 %v936_v40, %v1089_v16 }
  0xcc   : > { %v940_v43 = vpop.eup %939  ;;  %v1155_v46 = vmul.f32 %v938_v41, %v234_v5 }
  0xcd   : > { %v257_v45 = vmul.f32 %v1149_v42, %v1149_v42  ;;  %v235_v47 = vmul.f32 %v940_v43, %v1091_v17  ;;  %v942_v11 = vpop.eup %941 }
  0xce   : > { %v944_v49 = vpop.eup %943  ;;  %v258_v50 = vmul.f32 %v1155_v46, %v1155_v46 }
  0xcf   : > { %267 = vadd.xlane.f32.xlu1 %v256_v44  ;;  %269 = vadd.xlane.f32.xlu0 %v257_v45  ;;  %v1159_v48 = vmul.f32 %v942_v11, %v235_v47  ;;  %v1165_v52 = vmul.f32 %v944_v49, %v236_v12 }
  0xd1   : > { %v259_v51 = vmul.f32 %v1159_v48, %v1159_v48  ;;  %v260_v17 = vmul.f32 %v1165_v52, %v1165_v52 }
  0xd3   : > { %271 = vadd.xlane.f32.xlu1 %v258_v50  ;;  %273 = vadd.xlane.f32.xlu0 %v259_v51 }
  0xd7   : > { %275 = vadd.xlane.f32.xlu1 %v260_v17 }
 0x153   : > { %v262_v16 = vpop.xlane.xlu0 %261 }
 0x154   : > { %v277_v53 = vmax.f32 %v262_v16, 1e-30  ;;  %vm293_vm0 = vcmp.gt.f32.partialorder %v262_v16, 0.992016 }
 0x156   : > { %945 = vrsqrt.f32 %v277_v53 }
 0x157   : > { %v266_v55 = vpop.xlane.xlu0 %265 }
 0x158   : > { %v264_v54 = vpop.xlane.xlu1 %263  ;;  %v279_v57 = vmax.f32 %v266_v55, 1e-30  ;;  %vm295_vm2 = vcmp.gt.f32.partialorder %v266_v55, 0.992016 }
 0x159   : > { %v278_v56 = vmax.f32 %v264_v54, 1e-30  ;;  %vm294_vm1 = vcmp.gt.f32.partialorder %v264_v54, 0.992016 }
 0x15b   : > { %947 = vrsqrt.f32 %v278_v56 }
 0x15c   : > { %949 = vrsqrt.f32 %v279_v57  ;;  %v268_v58 = vpop.xlane.xlu1 %267  ;;  %v270_v59 = vpop.xlane.xlu0 %269 }
 0x15d   : > { %v280_v60 = vmax.f32 %v268_v58, 1e-30  ;;  %v281_v61 = vmax.f32 %v270_v59, 1e-30  ;;  %vm296_vm3 = vcmp.gt.f32.partialorder %v268_v58, 0.992016 }
 0x15e   : > { %vm297_vm4 = vcmp.gt.f32.partialorder %v270_v59, 0.992016 }
 0x15f   : > { %951 = vrsqrt.f32 %v280_v60 }
 0x160   : > { %953 = vrsqrt.f32 %v281_v61  ;;  %v272_v62 = vpop.xlane.xlu1 %271  ;;  %v274_v63 = vpop.xlane.xlu0 %273 }
 0x161   : > { %v946_v0 = vpop.eup %945  ;;  %v282_v1 = vmax.f32 %v272_v62, 1e-30  ;;  %v283_v6 = vmax.f32 %v274_v63, 1e-30  ;;  %vm298_vm5 = vcmp.gt.f32.partialorder %v272_v62, 0.992016 }
 0x162   : > { %v301_v7 = vmul.f32 0.996, %v946_v0  ;;  %vm299_vm6 = vcmp.gt.f32.partialorder %v274_v63, 0.992016 }
 0x163   : > { %955 = vrsqrt.f32 %v282_v1 }
 0x164   : > { %957 = vrsqrt.f32 %v283_v6  ;;  %v276_v8 = vpop.xlane.xlu1 %275  ;;  %v309_v9 = vmul.f32 %v301_v7, %v1131_v27 }
 0x165   : > { %v948_v10 = vpop.eup %947  ;;  %v284_v13 = vmax.f32 %v276_v8, 1e-30  ;;  %vm300_vm7 = vcmp.gt.f32.partialorder %v276_v8, 0.992016 }
 0x166   : > { %v950_v14 = vpop.eup %949  ;;  %v302_v15 = vmul.f32 0.996, %v948_v10  ;;  %v1171_v18 = vsel %vm293_vm0, %v309_v9, %v1131_v27 }
 0x167   : > { %v303_v19 = vmul.f32 0.996, %v950_v14  ;;  %959 = vrsqrt.f32 %v284_v13  ;;  %v341_v20 = vmul.f32 %v1171_v18, %v1171_v18  ;;  %v365_v55 = vmul.f32 2.0, %v1171_v18 }
 0x168   : > { %v310_v21 = vmul.f32 %v302_v15, %v1139_v34 }
 0x169   : > { %v952_v22 = vpop.eup %951  ;;  %349 = vadd.xlane.f32.xlu0 %v341_v20  ;;  %v311_v23 = vmul.f32 %v303_v19, %v1136_v32 }
 0x16a   : > { %v954_v24 = vpop.eup %953  ;;  %v304_v25 = vmul.f32 0.996, %v952_v22  ;;  %v334_v26 = vsel %vm294_vm1, %v310_v21, %v1139_v34 }
 0x16b   : > { %v305_v28 = vmul.f32 0.996, %v954_v24  ;;  %v342_v27 = vmul.f32 %v334_v26, %v334_v26  ;;  %v335_v29 = vsel %vm295_vm2, %v311_v23, %v1136_v32  ;;  %v366_v61 = vmul.f32 2.0, %v334_v26 }
 0x16c   : > { %v343_v30 = vmul.f32 %v335_v29, %v335_v29  ;;  %v312_v31 = vmul.f32 %v304_v25, %v1141_v36  ;;  %v367_v1 = vmul.f32 2.0, %v335_v29 }
 0x16d   : > { %v956_v33 = vpop.eup %955  ;;  %351 = vadd.xlane.f32.xlu1 %v342_v27  ;;  %v313_v3 = vmul.f32 %v305_v28, %v1149_v42 }
 0x16e   : > { %v958_v2 = vpop.eup %957  ;;  %v306_v35 = vmul.f32 0.996, %v956_v33  ;;  %353 = vadd.xlane.f32.xlu0 %v343_v30  ;;  %v336_v37 = vsel %vm296_vm3, %v312_v31, %v1141_v36 }
 0x16f   : > { %v307_v4 = vmul.f32 0.996, %v958_v2  ;;  %v344_v34 = vmul.f32 %v336_v37, %v336_v37  ;;  %v337_v38 = vsel %vm297_vm4, %v313_v3, %v1149_v42  ;;  %v368_v10 = vmul.f32 2.0, %v336_v37 }
 0x170   : > { %v345_v39 = vmul.f32 %v337_v38, %v337_v38  ;;  %v314_v32 = vmul.f32 %v306_v35, %v1155_v46  ;;  %v369_v15 = vmul.f32 2.0, %v337_v38 }
 0x171   : > { %v960_v5 = vpop.eup %959  ;;  %355 = vadd.xlane.f32.xlu1 %v344_v34  ;;  %v315_v40 = vmul.f32 %v307_v4, %v1159_v48 }
 0x172   : > { %v308_v41 = vmul.f32 0.996, %v960_v5  ;;  %357 = vadd.xlane.f32.xlu0 %v345_v39  ;;  %v338_v43 = vsel %vm298_vm5, %v314_v32, %v1155_v46 }
 0x173   : > { %v346_v44 = vmul.f32 %v338_v43, %v338_v43  ;;  %v339_v36 = vsel %vm299_vm6, %v315_v40, %v1159_v48  ;;  %v370_v22 = vmul.f32 2.0, %v338_v43 }
 0x174   : > { %v347_v45 = vmul.f32 %v339_v36, %v339_v36  ;;  %v316_v47 = vmul.f32 %v308_v41, %v1165_v52  ;;  %v371_v25 = vmul.f32 2.0, %v339_v36 }
 0x175   : > { %359 = vadd.xlane.f32.xlu1 %v346_v44 }
 0x176   : > { %361 = vadd.xlane.f32.xlu0 %v347_v45  ;;  %v340_v42 = vsel %vm300_vm7, %v316_v47, %v1165_v52 }
 0x177   : > { %v348_v12 = vmul.f32 %v340_v42, %v340_v42  ;;  %v372_v30 = vmul.f32 2.0, %v340_v42 }
 0x179   : > { %363 = vadd.xlane.f32.xlu1 %v348_v12 }
 0x1f6   : > { %v350_v11 = vpop.xlane.xlu0 %349 }
 0x1f7   : > { %v373_v49 = vadd.f32 1.0, %v350_v11 }
 0x1f9   : > { %961 = vrcp.f32 %v373_v49 }
 0x1fa   : > { %v352_v50 = vpop.xlane.xlu1 %351 }
 0x1fb   : > { %v374_v51 = vadd.f32 1.0, %v352_v50  ;;  %v354_v17 = vpop.xlane.xlu0 %353 }
 0x1fc   : > { %v375_v46 = vadd.f32 1.0, %v354_v17 }
 0x1fd   : > { %963 = vrcp.f32 %v374_v51 }
 0x1fe   : > { %965 = vrcp.f32 %v375_v46  ;;  %v356_v48 = vpop.xlane.xlu1 %355 }
 0x1ff   : > { %v376_v16 = vadd.f32 1.0, %v356_v48  ;;  %v358_v53 = vpop.xlane.xlu0 %357 }
 0x200   : > { %v377_v54 = vadd.f32 1.0, %v358_v53 }
 0x201   : > { %967 = vrcp.f32 %v376_v16 }
 0x202   : > { %969 = vrcp.f32 %v377_v54  ;;  %v360_v52 = vpop.xlane.xlu1 %359 }
 0x203   : > { %v962_v56 = vpop.eup %961  ;;  %v378_v57 = vadd.f32 1.0, %v360_v52  ;;  %v362_v58 = vpop.xlane.xlu0 %361 }
 0x204   : > { %v379_v59 = vadd.f32 1.0, %v362_v58  ;;  %v1190_v60 = vmul.f32 %v962_v56, %v365_v55 }
 0x205   : > { %971 = vrcp.f32 %v378_v57 }
 0x206   : > { %973 = vrcp.f32 %v379_v59  ;;  %v364_v62 = vpop.xlane.xlu1 %363  ;;  %v397_v63 = vmul.f32 %v1190_v60, %v1190_v60 }
 0x207   : > { %v964_v0 = vpop.eup %963  ;;  %v380_v6 = vadd.f32 1.0, %v364_v62 }
 0x208   : > { %v966_v7 = vpop.eup %965  ;;  %405 = vadd.xlane.f32.xlu0 %v397_v63  ;;  %v1194_v8 = vmul.f32 %v964_v0, %v366_v61 }
 0x209   : > { %975 = vrcp.f32 %v380_v6  ;;  %v1196_v9 = vmul.f32 %v966_v7, %v367_v1 }
 0x20a   : > { %v398_v13 = vmul.f32 %v1194_v8, %v1194_v8 }
 0x20b   : > { %v968_v14 = vpop.eup %967  ;;  %v399_v18 = vmul.f32 %v1196_v9, %v1196_v9 }
 0x20c   : > { %v970_v19 = vpop.eup %969  ;;  %407 = vadd.xlane.f32.xlu1 %v398_v13  ;;  %v1202_v20 = vmul.f32 %v968_v14, %v368_v10 }
 0x20d   : > { %409 = vadd.xlane.f32.xlu0 %v399_v18  ;;  %v1204_v21 = vmul.f32 %v970_v19, %v369_v15 }
 0x20e   : > { %v400_v23 = vmul.f32 %v1202_v20, %v1202_v20 }
 0x20f   : > { %v972_v24 = vpop.eup %971  ;;  %v401_v26 = vmul.f32 %v1204_v21, %v1204_v21 }
 0x210   : > { %v974_v28 = vpop.eup %973  ;;  %411 = vadd.xlane.f32.xlu1 %v400_v23  ;;  %v1210_v27 = vmul.f32 %v972_v24, %v370_v22 }
 0x211   : > { %413 = vadd.xlane.f32.xlu0 %v401_v26  ;;  %v1212_v29 = vmul.f32 %v974_v28, %v371_v25 }
 0x212   : > { %v402_v31 = vmul.f32 %v1210_v27, %v1210_v27 }
 0x213   : > { %v976_v33 = vpop.eup %975  ;;  %v403_v3 = vmul.f32 %v1212_v29, %v1212_v29 }
 0x214   : > { %415 = vadd.xlane.f32.xlu1 %v402_v31  ;;  %v1218_v2 = vmul.f32 %v976_v33, %v372_v30 }
 0x215   : > { %417 = vadd.xlane.f32.xlu0 %v403_v3 }
 0x216   : > { %v404_v35 = vmul.f32 %v1218_v2, %v1218_v2 }
 0x218   : > { %419 = vadd.xlane.f32.xlu1 %v404_v35 }
 0x295   : > { %v406_v37 = vpop.xlane.xlu0 %405 }
 0x296   : > { %v421_v4 = vmax.f32 %v406_v37, 1e-30  ;;  %vm437_vm8 = vcmp.gt.f32.partialorder %v406_v37, 0.992016 }
 0x298   : > { %977 = vrsqrt.f32 %v421_v4 }
 0x299   : > { %v408_v34 = vpop.xlane.xlu1 %407 }
 0x29a   : > { %v422_v38 = vmax.f32 %v408_v34, 1e-30  ;;  %v410_v39 = vpop.xlane.xlu0 %409  ;;  %vm438_vm9 = vcmp.gt.f32.partialorder %v408_v34, 0.992016 }
 0x29b   : > { %v423_v32 = vmax.f32 %v410_v39, 1e-30  ;;  %vm439_vm10 = vcmp.gt.f32.partialorder %v410_v39, 0.992016 }
 0x29c   : > { %979 = vrsqrt.f32 %v422_v38 }
 0x29d   : > { %981 = vrsqrt.f32 %v423_v32  ;;  %v412_v5 = vpop.xlane.xlu1 %411 }
 0x29e   : > { %v424_v40 = vmax.f32 %v412_v5, 1e-30  ;;  %v414_v41 = vpop.xlane.xlu0 %413  ;;  %vm440_vm11 = vcmp.gt.f32.partialorder %v412_v5, 0.992016 }
 0x29f   : > { %v425_v43 = vmax.f32 %v414_v41, 1e-30  ;;  %vm441_vm12 = vcmp.gt.f32.partialorder %v414_v41, 0.992016 }
 0x2a0   : > { %983 = vrsqrt.f32 %v424_v40 }
 0x2a1   : > { %985 = vrsqrt.f32 %v425_v43  ;;  %v416_v44 = vpop.xlane.xlu1 %415 }
 0x2a2   : > { %v978_v36 = vpop.eup %977  ;;  %v426_v45 = vmax.f32 %v416_v44, 1e-30  ;;  %v418_v47 = vpop.xlane.xlu0 %417  ;;  %vm442_vm13 = vcmp.gt.f32.partialorder %v416_v44, 0.992016 }
 0x2a3   : > { %v445_v42 = vmul.f32 0.996, %v978_v36  ;;  %v427_v12 = vmax.f32 %v418_v47, 1e-30  ;;  %vm443_vm14 = vcmp.gt.f32.partialorder %v418_v47, 0.992016 }
 0x2a4   : > { %987 = vrsqrt.f32 %v426_v45 }
 0x2a5   : > { %989 = vrsqrt.f32 %v427_v12  ;;  %v420_v11 = vpop.xlane.xlu1 %419  ;;  %v453_v49 = vmul.f32 %v445_v42, %v1190_v60 }
 0x2a6   : > { %v980_v50 = vpop.eup %979  ;;  %v428_v51 = vmax.f32 %v420_v11, 1e-30  ;;  %vm444_vm15 = vcmp.gt.f32.partialorder %v420_v11, 0.992016 }
 0x2a7   : > { %v982_v17 = vpop.eup %981  ;;  %v446_v46 = vmul.f32 0.996, %v980_v50  ;;  %v1224_v48 = vsel %vm437_vm8, %v453_v49, %v1190_v60  ;;  %vm693_vm8 = vcmask 1041409  }
 0x2a8   : > { %v447_v16 = vmul.f32 0.996, %v982_v17  ;;  %991 = vrsqrt.f32 %v428_v51  ;;  %v485_v53 = vmul.f32 %v1224_v48, %v1224_v48 }
 0x2a9   : > { %v454_v54 = vmul.f32 %v446_v46, %v1194_v8 }
 0x2aa   : > { %v984_v55 = vpop.eup %983  ;;  %493 = vadd.xlane.f32.xlu0 %v485_v53  ;;  %v455_v52 = vmul.f32 %v447_v16, %v1196_v9 }
 0x2ab   : > { %v986_v56 = vpop.eup %985  ;;  %v448_v57 = vmul.f32 0.996, %v984_v55  ;;  %v1231_v58 = vsel %vm438_vm9, %v454_v54, %v1194_v8  ;;  %vm695_vm9 = vcmask 1042434  }
 0x2ac   : > { %v449_v59 = vmul.f32 0.996, %v986_v56  ;;  %v486_v60 = vmul.f32 %v1231_v58, %v1231_v58  ;;  %v1236_v61 = vsel %vm439_vm10, %v455_v52, %v1196_v9  ;;  %vm697_vm10 = vcmask 1043459  }
 0x2ad   : > { %v487_v62 = vmul.f32 %v1236_v61, %v1236_v61  ;;  %v456_v63 = vmul.f32 %v448_v57, %v1202_v20 }
 0x2ae   : > { %v988_v0 = vpop.eup %987  ;;  %495 = vadd.xlane.f32.xlu1 %v486_v60  ;;  %v457_v1 = vmul.f32 %v449_v59, %v1204_v21 }
 0x2af   : > { %v990_v6 = vpop.eup %989  ;;  %v450_v7 = vmul.f32 0.996, %v988_v0  ;;  %497 = vadd.xlane.f32.xlu0 %v487_v62  ;;  %v1243_v8 = vsel %vm440_vm11, %v456_v63, %v1202_v20  ;;  %vm699_vm11 = vcmask 1044484  }
 0x2b0   : > { %v451_v10 = vmul.f32 0.996, %v990_v6  ;;  %v488_v9 = vmul.f32 %v1243_v8, %v1243_v8  ;;  %v1248_v13 = vsel %vm441_vm12, %v457_v1, %v1204_v21  ;;  %vm701_vm12 = vcmask 1045509  }
 0x2b1   : > { %v489_v14 = vmul.f32 %v1248_v13, %v1248_v13  ;;  %v458_v15 = vmul.f32 %v450_v7, %v1210_v27 }
 0x2b2   : > { %v992_v18 = vpop.eup %991  ;;  %499 = vadd.xlane.f32.xlu1 %v488_v9  ;;  %v459_v19 = vmul.f32 %v451_v10, %v1212_v29 }
 0x2b3   : > { %v452_v20 = vmul.f32 0.996, %v992_v18  ;;  %501 = vadd.xlane.f32.xlu0 %v489_v14  ;;  %v1255_v22 = vsel %vm442_vm13, %v458_v15, %v1210_v27  ;;  %vm703_vm13 = vcmask 1046534  }
 0x2b4   : > { %v490_v21 = vmul.f32 %v1255_v22, %v1255_v22  ;;  %v1260_v23 = vsel %vm443_vm14, %v459_v19, %v1212_v29  ;;  %vm705_vm14 = vcmask 1047559  }
 0x2b5   : > { %v491_v24 = vmul.f32 %v1260_v23, %v1260_v23  ;;  %v460_v25 = vmul.f32 %v452_v20, %v1218_v2 }
 0x2b6   : > { %503 = vadd.xlane.f32.xlu1 %v490_v21 }
 0x2b7   : > { %505 = vadd.xlane.f32.xlu0 %v491_v24  ;;  %v1266_v26 = vsel %vm444_vm15, %v460_v25, %v1218_v2 }
 0x2b8   : > { %v492_v28 = vmul.f32 %v1266_v26, %v1266_v26 }
 0x2ba   : > { %507 = vadd.xlane.f32.xlu1 %v492_v28 }
 0x337   : > { %v494_v27 = vpop.xlane.xlu0 %493 }
 0x338   : > { %v509_v30 = vsub.f32 1.0, %v494_v27  ;;  %vm533_vm0 = vcmp.eq.f32.partialorder %v494_v27, 0.0 }
 0x33a   : > { %v517_v31 = vadd.f32 1e-15, %v509_v30 }
 0x33b   : > { %v496_v29 = vpop.xlane.xlu1 %495 }
 0x33c   : > { %993 = vrcp.f32 %v517_v31  ;;  %v510_v33 = vsub.f32 1.0, %v496_v29  ;;  %v498_v3 = vpop.xlane.xlu0 %497  ;;  %vm534_vm1 = vcmp.eq.f32.partialorder %v496_v29, 0.0 }
 0x33d   : > { %v511_v35 = vsub.f32 1.0, %v498_v3  ;;  %vm535_vm2 = vcmp.eq.f32.partialorder %v498_v3, 0.0 }
 0x33e   : > { %v518_v37 = vadd.f32 1e-15, %v510_v33 }
 0x33f   : > { %v519_v4 = vadd.f32 1e-15, %v511_v35  ;;  %v500_v34 = vpop.xlane.xlu1 %499 }
 0x340   : > { %995 = vrcp.f32 %v518_v37  ;;  %v512_v38 = vsub.f32 1.0, %v500_v34  ;;  %v1270_v39 = vpop.xlane.xlu0 %501  ;;  %vm536_vm3 = vcmp.eq.f32.partialorder %v500_v34, 0.0 }
 0x341   : > { %997 = vrcp.f32 %v519_v4  ;;  %v513_v2 = vsub.f32 1.0, %v1270_v39  ;;  %vm537_vm4 = vcmp.eq.f32.partialorder %v1270_v39, 0.0 }
 0x342   : > { %v520_v32 = vadd.f32 1e-15, %v512_v38 }
 0x343   : > { %v1273_v5 = vpop.xlane.xlu1 %503  ;;  %v521_v40 = vadd.f32 1e-15, %v513_v2 }
 0x344   : > { %999 = vrcp.f32 %v520_v32  ;;  %v514_v41 = vsub.f32 1.0, %v1273_v5  ;;  %v1276_v43 = vpop.xlane.xlu0 %505  ;;  %vm538_vm5 = vcmp.eq.f32.partialorder %v1273_v5, 0.0 }
 0x345   : > { %v515_v42 = vsub.f32 1.0, %v1276_v43  ;;  %1001 = vrcp.f32 %v521_v40  ;;  %vm539_vm6 = vcmp.eq.f32.partialorder %v1276_v43, 0.0 }
 0x346   : > { %v994_v44 = vpop.eup %993  ;;  %v522_v12 = vadd.f32 1e-15, %v514_v41 }
 0x347   : > { %v541_v36 = vsel %vm533_vm0, 0.0, %v994_v44  ;;  %v1278_v45 = vpop.xlane.xlu1 %507  ;;  %v523_v55 = vadd.f32 1e-15, %v515_v42 }
 0x348   : > { %v549_v47 = vrot.slane %v541_v36, 4  ;;  %v597_v50 = vmul.f32 %v541_v36, %v1224_v48  ;;  %v516_v51 = vsub.f32 1.0, %v1278_v45  ;;  %1003 = vrcp.f32 %v522_v12 }
 0x349   : > { %1005 = vrcp.f32 %v523_v55  ;;  %vm540_vm7 = vcmp.eq.f32.partialorder %v1278_v45, 0.0 }
 0x34a   : > { %v996_v11 = vpop.eup %995  ;;  %v550_v49 = vadd.f32 %v549_v47, %v541_v36  ;;  %v605_v59 = vrot.slane %v597_v50, 4  ;;  %v524_v62 = vadd.f32 1e-15, %v516_v51 }
 0x34b   : > { %v998_v17 = vpop.eup %997  ;;  %v542_v46 = vsel %vm534_vm1, 0.0, %v996_v11 }
 0x34c   : > { %v551_v16 = vrot.slane %v550_v49, 2  ;;  %v555_v53 = vrot.slane %v542_v46, 4  ;;  %v598_v54 = vmul.f32 %v542_v46, %v1231_v58  ;;  %v543_v52 = vsel %vm535_vm2, 0.0, %v998_v17 }
 0x34d   : > { %v561_v63 = vrot.slane %v543_v52, 4  ;;  %v599_v7 = vmul.f32 %v543_v52, %v1236_v61  ;;  %v606_v58 = vadd.f32 %v605_v59, %v597_v50  ;;  %1007 = vrcp.f32 %v524_v62 }
 0x34e   : > { %v1000_v56 = vpop.eup %999  ;;  %v552_v57 = vadd.f32 %v551_v16, %v550_v49  ;;  %v556_v60 = vadd.f32 %v555_v53, %v542_v46  ;;  %v611_v48 = vrot.slane %v598_v54, 4 }
 0x34f   : > { %v544_v0 = vsel %vm536_vm3, 0.0, %v1000_v56  ;;  %v562_v6 = vadd.f32 %v561_v63, %v543_v52  ;;  %v1002_v15 = vpop.eup %1001  ;;  %v617_v28 = vrot.slane %v599_v7, 4  ;;  %v607_v30 = vrot.slane %v606_v58, 2 }
 0x350   : > { %v557_v1 = vrot.slane %v556_v60, 2  ;;  %v567_v10 = vrot.slane %v544_v0, 4  ;;  %v553_v9 = vrot.slane %v552_v57, 1  ;;  %v612_v18 = vadd.f32 %v611_v48, %v598_v54 }
 0x351   : > { %v563_v19 = vrot.slane %v562_v6, 2  ;;  %v600_v21 = vmul.f32 %v544_v0, %v1243_v8  ;;  %v545_v29 = vsel %vm537_vm4, 0.0, %v1002_v15  ;;  %v618_v2 = vadd.f32 %v617_v28, %v599_v7 }
 0x352   : > { %v558_v14 = vadd.f32 %v557_v1, %v556_v60  ;;  %v568_v20 = vadd.f32 %v567_v10, %v544_v0  ;;  %v554_v61 = vadd.f32 %v553_v9, %v552_v57  ;;  %v1004_v33 = vpop.eup %1003  ;;  %v613_v3 = vrot.slane %v612_v18, 2 }
 0x353   : > { %v564_v25 = vadd.f32 %v563_v19, %v562_v6  ;;  %v623_v4 = vrot.slane %v600_v21, 4  ;;  %v573_v34 = vrot.slane %v545_v29, 4  ;;  %v601_v8 = vmul.f32 %v545_v29, %v1248_v13  ;;  %v1006_v40 = vpop.eup %1005 }
 0x354   : > { %v559_v24 = vrot.slane %v558_v14, 1  ;;  %v569_v27 = vrot.slane %v568_v20, 2  ;;  %v653_v41 = vmax.f32 %v554_v61, 1e-15  ;;  %v546_v47 = vsel %vm538_vm5, 0.0, %v1004_v33 }
 0x355   : > { %v565_v35 = vrot.slane %v564_v25, 1  ;;  %v574_v44 = vadd.f32 %v573_v34, %v545_v29  ;;  %v629_v36 = vrot.slane %v601_v8, 4  ;;  %v608_v42 = vadd.f32 %v607_v30, %v606_v58 }
 0x356   : > { %v560_v31 = vadd.f32 %v559_v24, %v558_v14  ;;  %v570_v37 = vadd.f32 %v569_v27, %v568_v20  ;;  %v614_v12 = vadd.f32 %v613_v3, %v612_v18  ;;  %v624_v49 = vadd.f32 %v623_v4, %v600_v21 }
 0x357   : > { %v566_v39 = vadd.f32 %v565_v35, %v564_v25  ;;  %v1008_v13 = vpop.eup %1007  ;;  %v575_v51 = vrot.slane %v574_v44, 2  ;;  %v579_v17 = vrot.slane %v546_v47, 4  ;;  %v602_v46 = vmul.f32 %v546_v47, %v1255_v22 }
 0x358   : > { %v654_v38 = vmax.f32 %v560_v31, 1e-15  ;;  %v571_v32 = vrot.slane %v570_v37, 1  ;;  %v619_v16 = vrot.slane %v618_v2, 2  ;;  %v547_v54 = vsel %vm539_vm6, 0.0, %v1006_v40 }
 0x359   : > { %v655_v50 = vmax.f32 %v566_v39, 1e-15  ;;  %v576_v55 = vadd.f32 %v575_v51, %v574_v44  ;;  %v630_v5 = vadd.f32 %v629_v36, %v601_v8  ;;  %v580_v52 = vadd.f32 %v579_v17, %v546_v47 }
 0x35a   : > { %v572_v11 = vadd.f32 %v571_v32, %v570_v37  ;;  %1009 = vrcp.f32 %v654_v38  ;;  %v635_v56 = vrot.slane %v602_v46, 4  ;;  %v585_v57 = vrot.slane %v547_v54, 4 }
 0x35b   : > { %1011 = vrcp.f32 %v653_v41  ;;  %v603_v59 = vmul.f32 %v547_v54, %v1260_v23  ;;  %v548_v60 = vsel %vm540_vm7, 0.0, %v1008_v13  ;;  %v625_v62 = vrot.slane %v624_v49, 2 }
 0x35c   : > { %v656_v53 = vmax.f32 %v572_v11, 1e-15  ;;  %1013 = vrcp.f32 %v655_v50  ;;  %v577_v22 = vrot.slane %v576_v55, 1  ;;  %v581_v48 = vrot.slane %v580_v52, 2 }
 0x35d   : > { %v620_v63 = vadd.f32 %v619_v16, %v618_v2  ;;  %v586_v0 = vadd.f32 %v585_v57, %v547_v54  ;;  %v591_v43 = vrot.slane %v548_v60, 4  ;;  %v641_v7 = vrot.slane %v603_v59, 4 }
 0x35e   : > { %1015 = vrcp.f32 %v656_v53  ;;  %v578_v1 = vadd.f32 %v577_v22, %v576_v55  ;;  %v582_v6 = vadd.f32 %v581_v48, %v580_v52  ;;  %v631_v10 = vrot.slane %v630_v5, 2 }
 0x35f   : > { %v636_v9 = vadd.f32 %v635_v56, %v602_v46  ;;  %v587_v58 = vrot.slane %v586_v0, 2  ;;  %v592_v14 = vadd.f32 %v591_v43, %v548_v60  ;;  %v615_v15 = vrot.slane %v614_v12, 1 }
 0x360   : > { %v626_v23 = vadd.f32 %v625_v62, %v624_v49  ;;  %v657_v18 = vmax.f32 %v578_v1, 1e-15  ;;  %v583_v45 = vrot.slane %v582_v6, 1  ;;  %v609_v19 = vrot.slane %v608_v42, 1 }
 0x361   : > { %v621_v20 = vrot.slane %v620_v63, 1  ;;  %v588_v21 = vadd.f32 %v587_v58, %v586_v0  ;;  %v593_v24 = vrot.slane %v592_v14, 2  ;;  %v642_v28 = vadd.f32 %v641_v7, %v603_v59 }
 0x362   : > { %1017 = vrcp.f32 %v657_v18  ;;  %v584_v25 = vadd.f32 %v583_v45, %v582_v6  ;;  %v604_v27 = vmul.f32 %v548_v60, %v1266_v26  ;;  %v632_v30 = vadd.f32 %v631_v10, %v630_v5 }
 0x363   : > { %v637_v31 = vrot.slane %v636_v9, 2  ;;  %v589_v29 = vrot.slane %v588_v21, 1  ;;  %v594_v33 = vadd.f32 %v593_v24, %v592_v14  ;;  %v616_v35 = vadd.f32 %v615_v15, %v614_v12 }
 0x364   : > { %v1010_v61 = vpop.eup %1009  ;;  %v627_v37 = vrot.slane %v626_v23, 1  ;;  %v658_v4 = vmax.f32 %v584_v25, 1e-15  ;;  %v647_v34 = vrot.slane %v604_v27, 4  ;;  %v610_v8 = vadd.f32 %v609_v19, %v608_v42 }
 0x365   : > { %v1012_v3 = vpop.eup %1011  ;;  %v622_v38 = vadd.f32 %v621_v20, %v620_v63  ;;  %v590_v39 = vadd.f32 %v589_v29, %v588_v21  ;;  %v595_v2 = vrot.slane %v594_v33, 1  ;;  %v1300_v40 = vmul.f32 %v1010_v61, %v616_v35 }
 0x366   : > { %v1014_v32 = vpop.eup %1013  ;;  %1019 = vrcp.f32 %v658_v4  ;;  %v643_v41 = vrot.slane %v642_v28, 2  ;;  %v648_v26 = vadd.f32 %v647_v34, %v604_v27  ;;  %v633_v36 = vrot.slane %v632_v30, 1 }
 0x367   : > { %v638_v47 = vadd.f32 %v637_v31, %v636_v9  ;;  %v659_v11 = vmax.f32 %v590_v39, 1e-15  ;;  %v596_v49 = vadd.f32 %v595_v2, %v594_v33  ;;  %v1302_v13 = vmul.f32 %v1012_v3, %v610_v8 }
 0x368   : > { %v1016_v44 = vpop.eup %1015  ;;  %v628_v12 = vadd.f32 %v627_v37, %v626_v23  ;;  %v649_v50 = vrot.slane %v648_v26, 2  ;;  %v671_v51 = vmul.f32 %v1014_v32, %v622_v38  ;;  %v678_v17 = vmul.f32 %v1300_v40, %v1300_v40 }
 0x369   : > { %1021 = vrcp.f32 %v659_v11  ;;  %v660_v42 = vmax.f32 %v596_v49, 1e-15  ;;  %v644_v16 = vadd.f32 %v643_v41, %v642_v28  ;;  %v634_v53 = vadd.f32 %v633_v36, %v632_v30 }
 0x36a   : > { %v672_v46 = vmul.f32 %v1016_v44, %v628_v12  ;;  %v639_v54 = vrot.slane %v638_v47, 1  ;;  %v677_v5 = vmul.f32 %v1302_v13, %v1302_v13  ;;  %v650_v52 = vadd.f32 %v649_v50, %v648_v26 }
 0x36b   : > { %1023 = vrcp.f32 %v660_v42  ;;  %v679_v57 = vmul.f32 %v671_v51, %v671_v51  ;;  %v645_v59 = vrot.slane %v644_v16, 1  ;;  %v771_v30 = vsel %vm693_vm8, %v1300_v40, %v1302_v13 }
 0x36c   : > { %v1018_v55 = vpop.eup %1017  ;;  %v680_v60 = vmul.f32 %v672_v46, %v672_v46  ;;  %v694_v62 = vsel %vm693_vm8, %v678_v17, %v677_v5  ;;  %v640_v22 = vadd.f32 %v639_v54, %v638_v47  ;;  %v651_v63 = vrot.slane %v650_v52, 1 }
 0x36d   : > { %v1308_v56 = vmul.f32 %v1018_v55, %v634_v53  ;;  %v696_v1 = vsel %vm695_vm9, %v679_v57, %v694_v62  ;;  %v646_v6 = vadd.f32 %v645_v59, %v644_v16  ;;  %v772_v4 = vsel %vm695_vm9, %v671_v51, %v771_v30 }
 0x36e   : > { %v698_v7 = vsel %vm697_vm10, %v680_v60, %v696_v1  ;;  %v652_v58 = vadd.f32 %v651_v63, %v650_v52  ;;  %v773_v32 = vsel %vm697_vm10, %v672_v46, %v772_v4 }
 0x36f   : > { %v681_v43 = vmul.f32 %v1308_v56, %v1308_v56 }
 0x370   : > { %v1020_v48 = vpop.eup %1019 }
 0x371   : > { %v674_v0 = vmul.f32 %v1020_v48, %v640_v22  ;;  %v700_v23 = vsel %vm699_vm11, %v681_v43, %v698_v7 }
 0x373   : > { %v1022_v10 = vpop.eup %1021  ;;  %v682_v9 = vmul.f32 %v674_v0, %v674_v0 }
 0x374   : > { %v675_v14 = vmul.f32 %v1022_v10, %v646_v6 }
 0x375   : > { %v1024_v15 = vpop.eup %1023  ;;  %v702_v19 = vsel %vm701_vm12, %v682_v9, %v700_v23 }
 0x376   : > { %v676_v18 = vmul.f32 %v1024_v15, %v652_v58  ;;  %v683_v45 = vmul.f32 %v675_v14, %v675_v14 }
 0x378   : > { %v684_v20 = vmul.f32 %v676_v18, %v676_v18  ;;  %v704_v21 = vsel %vm703_vm13, %v683_v45, %v702_v19 }
 0x37a   : > { %v706_v24 = vsel %vm705_vm14, %v684_v20, %v704_v21 }
 0x37b   : > { %708 = vadd.xlane.f32.xlu0 %v706_v24 }
 0x408   : > { %v709_v25 = vpop.xlane.xlu0 %708 }
 0x409   : > { %v710_v28 = vmax.f32 %v709_v25, 1e-30  ;;  %vm712_vm15 = vcmp.gt.f32.partialorder %v709_v25, 0.992016 }
 0x40b   : > { %1025 = vrsqrt.f32 %v710_v28 }
 0x415   : > { %v1026_v27 = vpop.eup %1025 }
 0x416   : > { %v713_v61 = vmul.f32 0.996, %v1026_v27 }
 0x418   : > { %v715_v31 = vrot.slane %v713_v61, 1  ;;  %v716_v29 = vrot.slane %v713_v61, 2  ;;  %v717_v33 = vrot.slane %v713_v61, 3  ;;  %v718_v3 = vrot.slane %v713_v61, 4 }
 0x419   : > { %v719_v35 = vrot.slane %v713_v61, 5  ;;  %v720_v37 = vrot.slane %v713_v61, 6  ;;  %v721_v34 = vrot.slane %v713_v61, 7  ;;  %v730_v41 = vmul.f32 %v713_v61, %v1302_v13 }
 0x41a   : > { %v731_v8 = vmul.f32 %v715_v31, %v1300_v40  ;;  %v732_v38 = vmul.f32 %v716_v29, %v671_v51  ;;  %v733_v39 = vmul.f32 %v717_v33, %v672_v46  ;;  %v734_v2 = vmul.f32 %v718_v3, %v1308_v56 }
 0x41b   : > { %v735_v26 = vmul.f32 %v719_v35, %v674_v0  ;;  %v736_v47 = vmul.f32 %v720_v37, %v675_v14  ;;  %v737_v11 = vmul.f32 %v721_v34, %v676_v18  ;;  %v774_v40 = vsel %vm699_vm11, %v1308_v56, %v773_v32 }
 0x41c   : > { %v748_v44 = vrot.slane %v731_v8, 7  ;;  %v750_v36 = vrot.slane %v732_v38, 6  ;;  %v752_v12 = vrot.slane %v733_v39, 5  ;;  %v754_v42 = vrot.slane %v734_v2, 4 }
 0x41d   : > { %v756_v17 = vrot.slane %v735_v26, 3  ;;  %v775_v46 = vsel %vm701_vm12, %v674_v0, %v774_v40  ;;  %v758_v16 = vrot.slane %v736_v47, 2  ;;  %v760_v54 = vrot.slane %v737_v11, 1 }
 0x41e   : > { %v749_v49 = vsel %vm693_vm8, %v748_v44, %v730_v41  ;;  %v776_v5 = vsel %vm703_vm13, %v675_v14, %v775_v46 }
 0x41f   : > { %v751_v50 = vsel %vm695_vm9, %v750_v36, %v749_v49  ;;  %v777_v56 = vsel %vm705_vm14, %v676_v18, %v776_v5 }
 0x420   : > { %v753_v51 = vsel %vm697_vm10, %v752_v12, %v751_v50 }
 0x421   : > { %v755_v13 = vsel %vm699_vm11, %v754_v42, %v753_v51 }
 0x422   : > { %v757_v53 = vsel %vm701_vm12, %v756_v17, %v755_v13 }
 0x423   : > { %v759_v55 = vsel %vm703_vm13, %v758_v16, %v757_v53 }
 0x424   : > { %v761_v52 = vsel %vm705_vm14, %v760_v54, %v759_v55 }
 0x425   : > { %v779_v57 = vsel %vm712_vm15, %v761_v52, %v777_v56 }
 0x426   : > { %v780_v59 = vmul.f32 %v779_v57, %v779_v57 }
 0x428   : > { %781 = vadd.xlane.f32.xlu1 %v780_v59 }
 0x4b5   : > { %v782_v60 = vpop.xlane.xlu1 %781 }
 0x4b6   : > { %v783_v62 = vsub.f32 1.0, %v782_v60 }
 0x4b8   : > { %v784_v22 = vmax.f32 %v783_v62, 0.0 }
 0x4ba   : > { %1027 = vrsqrt.f32 %v784_v22  ;;  %vm787_vm0 = vcmp.eq.f32.partialorder %v784_v22, inf  ;;  %v790_v0 = vand.u32 2147483648, %v784_v22  ;;  %vm789_vm1 = vcmp.eq.f32.partialorder %v784_v22, 0.0 }
 0x4c4   : > { %v1028_v48 = vpop.eup %1027 }
 0x4c5   : > { %v786_v63 = vmul.f32 %v1028_v48, %v784_v22 }
 0x4c7   : > { %v788_v43 = vsel %vm787_vm0, %v784_v22, %v786_v63 }
 0x4c8   : > { %v791_v1 = vsel %vm789_vm1, %v790_v0, %v788_v43 }
 0x4c9   : > { %v792_v6 = vadd.f32 1.0, %v791_v1 }
 0x4cb   : > { %1029 = vrcp.f32 %v792_v6 }
 0x4d5   : > { %v1030_v7 = vpop.eup %1029 }
 0x4d6   : > { %v794_v10 = vmul.f32 %v1030_v7, %v779_v57 }
 0x4d8   : > { %v795_v9 = vmul.f32 %v794_v10, %v794_v10 }
 0x4da   : > { %796 = vadd.xlane.f32.xlu0 %v795_v9 }
 0x567   : > { %v797_v58 = vpop.xlane.xlu0 %796 }
 0x568   : > { %v798_v14 = vmax.f32 %v797_v58, 1e-30  ;;  %vm800_vm2 = vcmp.gt.f32.partialorder %v797_v58, 0.992016 }
 0x56a   : > { %1031 = vrsqrt.f32 %v798_v14 }
 0x574   : > { %v1032_v15 = vpop.eup %1031 }
 0x575   : > { %v801_v23 = vmul.f32 0.996, %v1032_v15 }
 0x577   : > { %v802_v18 = vmul.f32 %v801_v23, %v794_v10 }
 0x579   : > { %v805_v45 = vsel %vm800_vm2, %v802_v18, %v794_v10 }
 0x57a   : > { %806 = vst [vmem:[%s116_s16] sm:$0xff] %v805_v45 }
 0x57b PF: > { %s11_s6 = sadd.s32 1, %s1039_s6  }
 0x57c   : > { %p8_p5 = scmp.ge.s32.totalorder %s11_s6, 4  }
 0x57e   :  { %10 = sbr.rel (!%p8_p5) target bundleno = 1 (0x1), region = 54 }

// kernel: matchsum_forward.5
= control target key start
LH: loop header
LB: loop body
LE: loop exit
PB: predicated region body
PF: predicated region fallthrough
CT: control target
= control target key end

     0   :  { %10 = vsyncpa [#allocation3], 0  ;;  %s1304_s18 = smov 0   ;;  %s1428_s0 = inlined_call_operand.vmem [shape: f32[8], index: 0, kind: input, shape index: {}]   ;;  %s1429_s1 = inlined_call_operand.vmem [shape: bf16[2,8,128], index: 1, kind: input, shape index: {}]   ;;  %s1430_s2 = inlined_call_operand.vmem [shape: bf16[2,128,128], index: 2, kind: input, shape index: {}]   ;;  %s1431_s3 = inlined_call_operand.vmem [shape: bf16[2,128,128], index: 3, kind: input, shape index: {}]   ;;  %s1432_s4 = inlined_call_operand.vmem [shape: bf16[2,128,128], index: 4, kind: input, shape index: {}]   ;;  %s1433_s5 = inlined_call_operand.vmem [shape: f32[2,8,1], index: 5, kind: output, shape index: {}]  }
   0x1 LB: > { %s1011_s19 = sadd.s32 4294967295, %s1269_s18   ;;  %p1013_p0 = scmp.ge.s32.totalorder %s1269_s18, 1  ;;  %s1269_s18 = sphi %s1304_s18, %s16_s18  }
   0x2   : > { %p172_p1 = scmp.lt.s32.totalorder %s1269_s18, 3  ;;  %s185_s22 = sshll.u32 %s1428_s0, 4  ;;  %s186_s22 = int_to_ptr.vmem [resolvable:$true] %s185_s22 }
   0x3   : > { %p1159_p3 = scmp.eq.s32.totalorder %s1011_s19, 0  ;;  %s1244_s24 = scalar_lea.vmem %s186_s22, 16 }
   0x4   : > { %p1315_p2 = pnand %p1013_p0, %p172_p1  ;;  %p1245_p6 = scmp.ne.s32.totalorder %s186_s22, %s1244_s24 }
   0x5   : > { %p1252_p10 = scmp.lt.s32.totalorder %s186_s22, %s186_s22  ;;  %p1253_p11 = scmp.lt.s32.totalorder %s1244_s24, %s1244_s24 }
   0x6   : > { %p1155_p4 = pneg %p1315_p2 }
   0x7   : > { %p1254_p12 = por %p1253_p11, %p1252_p10 }
   0x8   : > { %p1156_p5 = pnand %p1159_p3, %p1155_p4 }
   0xa   : > { %p1246_p7 = pneg %p1156_p5 }
   0xc   : > { %p1247_p8 = pnand %p1246_p7, %p1245_p6 }
   0xe   : > { %p1248_p9 = pneg %p1247_p8 }
  0x10   : > { %p1255_p13 = pnand %p1254_p12, %p1248_p9 }
  0x12   : > { %1258 = shalt.err (!%p1255_p13)
}
  0x13   : > { %s1271_s25 = smov [#allocation2]   ;;  %229 = sbr.rel (%p1315_p2) target bundleno = 532 (0x214), region = 40 }
  0x14   : > { %1158 = dma.vmem_to_smem (!%p1156_p5), %s186_s22, 16, %s1271_s25, [#allocation3]  }
  0x1a   : > { %1264 = dma.done.wait (%p1159_p3), [#allocation3], 16  }
  0x1b   : > { %1266 = vsyncadd (%p1159_p3), [#allocation3], 4294967280 }
  0x1c   : > { %235 = sfence }
  0x1d   : > { %p271_p0 = scmp.lt.s32.totalorder %s1011_s19, 1  ;;  %v1272_v0 = vmov 0.0   ;;  %vm1273_vm0 = vmmov 0   ;;  %s498_s15 = sld [smem:[#allocation2]]  ;;  %vm908_vm10 = vcmask 7168  }
  0x1e   : > { %1091 = vmatprep.subr.bf16.mxu0 %v1272_v0  ;;  %1111 = vmatprep.subr.bf16.mxu1 %v1272_v0  ;;  %s1036_s16 = sld [smem:[#allocation2 + $0x1]]  ;;  %s1026_s17 = sld [smem:[#allocation2 + $0x6]] }
  0x1f   : > { %s1436_s19 = smov (!%p271_p0, %s1011_s19), 1  ;;  %1107 = vmatprep.mubr.msk.bf16.mxu0 %vm1273_vm0, %v1272_v0  ;;  %1127 = vmatprep.mubr.msk.bf16.mxu1 %vm1273_vm0, %v1272_v0  ;;  %s1046_s20 = sld [smem:[#allocation2 + $0x2]] }
  0x20   : > { %s1335_s26 = sshll.u32 %s1436_s19, 6  ;;  %s1018_s11 = sshll.u32 %s1436_s19, 2 }
  0x21   : > { %s1341_s29 = scalar_lea.vmem %s1430_s2, %s1335_s26  ;;  %s1348_s7 = scalar_lea.vmem %s1431_s3, %s1335_s26 }
  0x22   : > { %v305_v1 = vld [vmem:[%s1341_s29] sm:$0xff]   ;;  %v307_v2 = vld [vmem:[%s1341_s29 + $0x8] sm:$0xff]   ;;  %v309_v14 = vld [vmem:[%s1341_s29 + $0x10] sm:$0xff]   ;;  %s1376_s10 = scalar_lea.vmem %s1432_s4, %s1335_s26  ;;  %s274_s14 = scalar_lea.vmem %s1429_s1, %s1018_s11 }
  0x23   : > { %v321_v3 = vunpack.c.l.bf16 %v305_v1  ;;  %v322_v4 = vunpack.c.h.bf16 %v305_v1  ;;  %v506_v5 = vld [vmem:[%s1348_s7] sm:$0xff]   ;;  %v323_v6 = vunpack.c.l.bf16 %v307_v2  ;;  %v324_v9 = vunpack.c.h.bf16 %v307_v2  ;;  %v508_v10 = vld [vmem:[%s1348_s7 + $0x8] sm:$0xff]   ;;  %1092 = vmatpush3.bf16.msra.mxu0 %v305_v1  ;;  %v510_v22 = vld [vmem:[%s1348_s7 + $0x10] sm:$0xff]   ;;  %s1047_s21 = sld [smem:[#allocation2 + $0x3]]  ;;  %s1057_s22 = sld [smem:[#allocation2 + $0x4]] }
  0x24   : > { %v522_v7 = vunpack.c.l.bf16 %v506_v5  ;;  %v523_v8 = vunpack.c.h.bf16 %v506_v5  ;;  %1112 = vmatpush3.bf16.msra.mxu1 %v506_v5  ;;  %1093 = vmatprep.subr.bf16.mxu0 %v1272_v0  ;;  %v524_v18 = vunpack.c.l.bf16 %v508_v10  ;;  %v525_v20 = vunpack.c.h.bf16 %v508_v10  ;;  %v311_v33 = vld [vmem:[%s1341_s29 + $0x18] sm:$0xff]   ;;  %v313_v45 = vld [vmem:[%s1341_s29 + $0x20] sm:$0xff]   ;;  %v315_v57 = vld [vmem:[%s1341_s29 + $0x28] sm:$0xff]   ;;  %s1058_s23 = sld [smem:[#allocation2 + $0x5]]  ;;  %s1025_s24 = sshll.u32 %s1436_s19, 3 }
  0x25   : > { %v337_v11 = vmul.f32 %v321_v3, %v321_v3  ;;  %v338_v12 = vmul.f32 %v322_v4, %v322_v4  ;;  %v339_v13 = vmul.f32 %v323_v6, %v323_v6  ;;  %v340_v17 = vmul.f32 %v324_v9, %v324_v9  ;;  %1113 = vmatprep.subr.bf16.mxu1 %v1272_v0  ;;  %v512_v38 = vld [vmem:[%s1348_s7 + $0x18] sm:$0xff]   ;;  %v514_v52 = vld [vmem:[%s1348_s7 + $0x20] sm:$0xff]   ;;  %v516_v63 = vld [vmem:[%s1348_s7 + $0x28] sm:$0xff]   ;;  %s293_s27 = scalar_lea.vmem %s1433_s5, %s1025_s24 }
  0x26   : > { %v538_v15 = vmul.f32 %v522_v7, %v522_v7  ;;  %v539_v16 = vmul.f32 %v523_v8, %v523_v8  ;;  %v325_v21 = vunpack.c.l.bf16 %v309_v14  ;;  %v540_v24 = vmul.f32 %v524_v18, %v524_v18  ;;  %v317_v9 = vld [vmem:[%s1341_s29 + $0x30] sm:$0xff]  }
  0x27   : > { %v353_v19 = vadd.f32 %v338_v12, %v337_v11  ;;  %v326_v25 = vunpack.c.h.bf16 %v309_v14  ;;  %1094 = vmatpush3.bf16.msra.mxu0 %v307_v2  ;;  %v541_v27 = vmul.f32 %v525_v20, %v525_v20  ;;  %v526_v29 = vunpack.c.l.bf16 %v510_v22 }
  0x28   : > { %v554_v23 = vadd.f32 %v539_v16, %v538_v15  ;;  %v341_v28 = vmul.f32 %v325_v21, %v325_v21  ;;  %1114 = vmatpush3.bf16.msra.mxu1 %v508_v10  ;;  %1095 = vmatprep.subr.bf16.mxu0 %v1272_v0  ;;  %v527_v32 = vunpack.c.h.bf16 %v510_v22  ;;  %v327_v36 = vunpack.c.l.bf16 %v311_v33  ;;  %v319_v21 = vld [vmem:[%s1341_s29 + $0x38] sm:$0xff]  }
  0x29   : > { %v354_v26 = vadd.f32 %v353_v19, %v339_v13  ;;  %v342_v31 = vmul.f32 %v326_v25, %v326_v25  ;;  %1115 = vmatprep.subr.bf16.mxu1 %v1272_v0  ;;  %v542_v35 = vmul.f32 %v526_v29, %v526_v29  ;;  %v328_v37 = vunpack.c.h.bf16 %v311_v33  ;;  %v518_v13 = vld [vmem:[%s1348_s7 + $0x30] sm:$0xff]   ;;  %v520_v29 = vld [vmem:[%s1348_s7 + $0x38] sm:$0xff]  }
  0x2a   : > { %v555_v30 = vadd.f32 %v554_v23, %v540_v24  ;;  %v543_v40 = vmul.f32 %v527_v32, %v527_v32  ;;  %v528_v41 = vunpack.c.l.bf16 %v512_v38  ;;  %v343_v43 = vmul.f32 %v327_v36, %v327_v36 }
  0x2b   : > { %v355_v34 = vadd.f32 %v354_v26, %v340_v17  ;;  %1096 = vmatpush3.bf16.msra.mxu0 %v309_v14  ;;  %v529_v44 = vunpack.c.h.bf16 %v512_v38  ;;  %v329_v48 = vunpack.c.l.bf16 %v313_v45  ;;  %v344_v50 = vmul.f32 %v328_v37, %v328_v37 }
  0x2c   : > { %v556_v39 = vadd.f32 %v555_v30, %v541_v27  ;;  %1116 = vmatpush3.bf16.msra.mxu1 %v510_v22  ;;  %1097 = vmatprep.subr.bf16.mxu0 %v1272_v0  ;;  %v544_v47 = vmul.f32 %v528_v41, %v528_v41  ;;  %v330_v51 = vunpack.c.h.bf16 %v313_v45  ;;  %v530_v55 = vunpack.c.l.bf16 %v514_v52  ;;  %v709_v41 = vld [vmem:[%s1376_s10 + $0x8] sm:$0xff]  }
  0x2d   : > { %v356_v42 = vadd.f32 %v355_v34, %v341_v28  ;;  %1117 = vmatprep.subr.bf16.mxu1 %v1272_v0  ;;  %v545_v54 = vmul.f32 %v529_v44, %v529_v44  ;;  %v531_v56 = vunpack.c.h.bf16 %v514_v52  ;;  %v345_v59 = vmul.f32 %v329_v48, %v329_v48 }
  0x2e   : > { %v557_v46 = vadd.f32 %v556_v39, %v542_v35  ;;  %v331_v60 = vunpack.c.l.bf16 %v315_v57  ;;  %v546_v62 = vmul.f32 %v530_v55, %v530_v55  ;;  %v346_v2 = vmul.f32 %v330_v51, %v330_v51 }
  0x2f   : > { %v357_v49 = vadd.f32 %v356_v42, %v342_v31  ;;  %1098 = vmatpush3.bf16.msra.mxu0 %v311_v33  ;;  %v332_v3 = vunpack.c.h.bf16 %v315_v57  ;;  %v532_v4 = vunpack.c.l.bf16 %v516_v63  ;;  %v547_v6 = vmul.f32 %v531_v56, %v531_v56  ;;  %v707_v33 = vld [vmem:[%s1376_s10] sm:$0xff]  }
  0x30   : > { %v558_v53 = vadd.f32 %v557_v46, %v543_v40  ;;  %1118 = vmatpush3.bf16.msra.mxu1 %v512_v38  ;;  %1099 = vmatprep.subr.bf16.mxu0 %v1272_v0  ;;  %v347_v7 = vmul.f32 %v331_v60, %v331_v60  ;;  %v533_v8 = vunpack.c.h.bf16 %v516_v63  ;;  %v333_v11 = vunpack.c.l.bf16 %v317_v9  ;;  %v713_v60 = vld [vmem:[%s1376_s10 + $0x18] sm:$0xff]  }
  0x31   : > { %v358_v58 = vadd.f32 %v357_v49, %v343_v43  ;;  %1119 = vmatprep.subr.bf16.mxu1 %v1272_v0  ;;  %v334_v12 = vunpack.c.h.bf16 %v317_v9  ;;  %v548_v15 = vmul.f32 %v532_v4, %v532_v4  ;;  %v534_v16 = vunpack.c.l.bf16 %v518_v13  ;;  %v711_v49 = vld [vmem:[%s1376_s10 + $0x10] sm:$0xff]  }
  0x32   : > { %v559_v61 = vadd.f32 %v558_v53, %v544_v47  ;;  %v348_v18 = vmul.f32 %v332_v3, %v332_v3  ;;  %v549_v19 = vmul.f32 %v533_v8, %v533_v8  ;;  %v535_v20 = vunpack.c.h.bf16 %v518_v13 }
  0x33   : > { %v359_v1 = vadd.f32 %v358_v58, %v344_v50  ;;  %1100 = vmatpush3.bf16.msra.mxu0 %v313_v45  ;;  %v349_v23 = vmul.f32 %v333_v11, %v333_v11  ;;  %v335_v24 = vunpack.c.l.bf16 %v319_v21  ;;  %v350_v26 = vmul.f32 %v334_v12, %v334_v12 }
  0x34   : > { %v560_v5 = vadd.f32 %v559_v61, %v545_v54  ;;  %1120 = vmatpush3.bf16.msra.mxu1 %v514_v52  ;;  %1101 = vmatprep.subr.bf16.mxu0 %v1272_v0  ;;  %v550_v27 = vmul.f32 %v534_v16, %v534_v16  ;;  %v336_v28 = vunpack.c.h.bf16 %v319_v21  ;;  %v551_v31 = vmul.f32 %v535_v20, %v535_v20 }
  0x35   : > { %v360_v10 = vadd.f32 %v359_v1, %v345_v59  ;;  %1121 = vmatprep.subr.bf16.mxu1 %v1272_v0  ;;  %v536_v32 = vunpack.c.l.bf16 %v520_v29  ;;  %v537_v35 = vunpack.c.h.bf16 %v520_v29  ;;  %v723_v36 = vunpack.c.l.bf16 %v707_v33  ;;  %v1392_v59 = vld [vmem:[%s274_s14] sm:$0xf] }
  0x36   : > { %v561_v14 = vadd.f32 %v560_v5, %v546_v62  ;;  %v351_v38 = vmul.f32 %v335_v24, %v335_v24  ;;  %v352_v39 = vmul.f32 %v336_v28, %v336_v28  ;;  %v724_v40 = vunpack.c.h.bf16 %v707_v33 }
  0x37   : > { %v361_v17 = vadd.f32 %v360_v10, %v346_v2  ;;  %1102 = vmatpush3.bf16.msra.mxu0 %v315_v57  ;;  %v739_v43 = vmul.f32 %v723_v36, %v723_v36  ;;  %v725_v44 = vunpack.c.l.bf16 %v709_v41  ;;  %v552_v46 = vmul.f32 %v536_v32, %v536_v32 }
  0x38   : > { %v562_v22 = vadd.f32 %v561_v14, %v547_v6  ;;  %1122 = vmatpush3.bf16.msra.mxu1 %v516_v63  ;;  %1103 = vmatprep.subr.bf16.mxu0 %v1272_v0  ;;  %v740_v47 = vmul.f32 %v724_v40, %v724_v40  ;;  %v726_v48 = vunpack.c.h.bf16 %v709_v41  ;;  %v553_v51 = vmul.f32 %v537_v35, %v537_v35  ;;  %v717_v14 = vld [vmem:[%s1376_s10 + $0x28] sm:$0xff]  }
  0x39   : > { %v362_v25 = vadd.f32 %v361_v17, %v347_v7  ;;  %1123 = vmatprep.subr.bf16.mxu1 %v1272_v0  ;;  %v741_v52 = vmul.f32 %v725_v44, %v725_v44  ;;  %v727_v53 = vunpack.c.l.bf16 %v711_v49  ;;  %v728_v57 = vunpack.c.h.bf16 %v711_v49  ;;  %v715_v7 = vld [vmem:[%s1376_s10 + $0x20] sm:$0xff]  }
  0x3a   : > { %v563_v30 = vadd.f32 %v562_v22, %v548_v15  ;;  %v755_v55 = vadd.f32 %v740_v47, %v739_v43  ;;  %v742_v56 = vmul.f32 %v726_v48, %v726_v48  ;;  %v729_v1 = vunpack.c.l.bf16 %v713_v60  ;;  %v719_v22 = vld [vmem:[%s1376_s10 + $0x30] sm:$0xff]  }
  0x3b   : > { %v363_v34 = vadd.f32 %v362_v25, %v348_v18  ;;  %1104 = vmatpush3.bf16.msra.mxu0 %v317_v9  ;;  %v743_v63 = vmul.f32 %v727_v53, %v727_v53  ;;  %v744_v5 = vmul.f32 %v728_v57, %v728_v57  ;;  %v730_v6 = vunpack.c.h.bf16 %v713_v60 }
  0x3c   : > { %v564_v37 = vadd.f32 %v563_v30, %v549_v19  ;;  %1124 = vmatpush3.bf16.msra.mxu1 %v518_v13  ;;  %1105 = vmatprep.subr.bf16.mxu0 %v1272_v0  ;;  %v756_v62 = vadd.f32 %v755_v55, %v741_v52  ;;  %v745_v9 = vmul.f32 %v729_v1, %v729_v1  ;;  %v731_v10 = vunpack.c.l.bf16 %v715_v7  ;;  %v721_v30 = vld [vmem:[%s1376_s10 + $0x38] sm:$0xff]  }
  0x3d   : > { %v364_v42 = vadd.f32 %v363_v34, %v349_v23  ;;  %1125 = vmatprep.subr.bf16.mxu1 %v1272_v0  ;;  %v746_v12 = vmul.f32 %v730_v6, %v730_v6  ;;  %v732_v13 = vunpack.c.h.bf16 %v715_v7  ;;  %v733_v17 = vunpack.c.l.bf16 %v717_v14 }
  0x3e   : > { %v565_v45 = vadd.f32 %v564_v37, %v550_v27  ;;  %v757_v4 = vadd.f32 %v756_v62, %v742_v56  ;;  %v747_v16 = vmul.f32 %v731_v10, %v731_v10  ;;  %v296_v18 = vunpack.c.l.bf16 %v1392_v59 }
  0x3f   : > { %v365_v50 = vadd.f32 %v364_v42, %v350_v26  ;;  %1106 = vmatpush3.bf16.msra.mxu0 %v319_v21  ;;  %v748_v20 = vmul.f32 %v732_v13, %v732_v13  ;;  %v734_v21 = vunpack.c.h.bf16 %v717_v14  ;;  %v749_v25 = vmul.f32 %v733_v17, %v733_v17 }
  0x40   : > { %v566_v54 = vadd.f32 %v565_v45, %v551_v31  ;;  %1126 = vmatpush3.bf16.msra.mxu1 %v520_v29  ;;  %1131 = vmatprep.subr.bf16.mxu0 %v1272_v0  ;;  %v758_v8 = vadd.f32 %v757_v4, %v743_v63  ;;  %v297_v23 = vmul.f32 %v296_v18, %v296_v18  ;;  %v735_v26 = vunpack.c.l.bf16 %v719_v22 }
  0x41   : > { %v366_v58 = vadd.f32 %v365_v50, %v351_v38  ;;  %v750_v28 = vmul.f32 %v734_v21, %v734_v21  ;;  %v736_v29 = vunpack.c.h.bf16 %v719_v22  ;;  %v738_v36 = vunpack.c.h.bf16 %v721_v30 }
  0x42   : > { %v567_v61 = vadd.f32 %v566_v54, %v552_v46  ;;  %1108 = vmatmul.mubr.bf16.vlgmr.msra.gmra.mrb[0].mxu0 %v1392_v59  ;;  %v759_v11 = vadd.f32 %v758_v8, %v744_v5  ;;  %298 = vadd.xlane.f32.xlu0 %v297_v23  ;;  %v751_v32 = vmul.f32 %v735_v26, %v735_v26 }
  0x43   : > { %v1396_v2 = vadd.f32 %v366_v58, %v352_v39  ;;  %1128 = vmatmul.mubr.bf16.vlgmr.msra.gmra.mrb[0].mxu1 %v1392_v59  ;;  %1132 = vmatpush3.bf16.msra.mxu0 %v707_v33  ;;  %v737_v33 = vunpack.c.l.bf16 %v721_v30  ;;  %v752_v35 = vmul.f32 %v736_v29, %v736_v29  ;;  %v754_v40 = vmul.f32 %v738_v36, %v738_v36 }
  0x44   : > { %v1398_v3 = vadd.f32 %v567_v61, %v553_v51  ;;  %1133 = vmatprep.subr.bf16.mxu0 %v1272_v0  ;;  %1147 = vmatprep.mubr.msk.bf16.mxu0 %vm1273_vm0, %v1272_v0  ;;  %v760_v15 = vadd.f32 %v759_v11, %v745_v9 }
  0x45   : > { %v753_v38 = vmul.f32 %v737_v33, %v737_v33  ;;  %v368_v43 = vrot.slane %v1396_v2, 4 }
  0x46   : > { %v761_v19 = vadd.f32 %v760_v15, %v746_v12  ;;  %v569_v44 = vrot.slane %v1398_v3, 4 }
  0x47   : > { %1134 = vmatpush3.bf16.msra.mxu0 %v709_v41  ;;  %v369_v45 = vadd.f32 %v368_v43, %v1396_v2 }
  0x48   : > { %1135 = vmatprep.subr.bf16.mxu0 %v1272_v0  ;;  %v762_v24 = vadd.f32 %v761_v19, %v747_v16  ;;  %v570_v46 = vadd.f32 %v569_v44, %v1398_v3 }
  0x49   : > { %v370_v47 = vrot.slane %v369_v45, 2 }
  0x4a   : > { %v763_v27 = vadd.f32 %v762_v24, %v748_v20  ;;  %v571_v48 = vrot.slane %v570_v46, 2 }
  0x4b   : > { %1136 = vmatpush3.bf16.msra.mxu0 %v711_v49  ;;  %v371_v49 = vadd.f32 %v370_v47, %v369_v45 }
  0x4c   : > { %1137 = vmatprep.subr.bf16.mxu0 %v1272_v0  ;;  %v764_v31 = vadd.f32 %v763_v27, %v749_v25  ;;  %v572_v50 = vadd.f32 %v571_v48, %v570_v46 }
  0x4d   : > { %v372_v51 = vrot.slane %v371_v49, 1 }
  0x4e   : > { %v765_v34 = vadd.f32 %v764_v31, %v750_v28  ;;  %v573_v52 = vrot.slane %v572_v50, 1 }
  0x4f   : > { %1138 = vmatpush3.bf16.msra.mxu0 %v713_v60  ;;  %v373_v53 = vadd.f32 %v372_v51, %v371_v49 }
  0x50   : > { %1139 = vmatprep.subr.bf16.mxu0 %v1272_v0  ;;  %v766_v37 = vadd.f32 %v765_v34, %v751_v32  ;;  %v574_v54 = vadd.f32 %v573_v52, %v572_v50 }
  0x52   : > { %v767_v39 = vadd.f32 %v766_v37, %v752_v35 }
  0x53   : > { %1140 = vmatpush3.bf16.msra.mxu0 %v715_v7 }
  0x54   : > { %1141 = vmatprep.subr.bf16.mxu0 %v1272_v0  ;;  %v768_v41 = vadd.f32 %v767_v39, %v753_v38 }
  0x56   : > { %v769_v42 = vadd.f32 %v768_v41, %v754_v40 }
  0x57   : > { %1142 = vmatpush3.bf16.msra.mxu0 %v717_v14 }
  0x58   : > { %1143 = vmatprep.subr.bf16.mxu0 %v1272_v0  ;;  %v770_v14 = vrot.slane %v769_v42, 4 }
  0x5a   : > { %v771_v15 = vadd.f32 %v770_v14, %v769_v42 }
  0x5b   : > { %1144 = vmatpush3.bf16.msra.mxu0 %v719_v22 }
  0x5c   : > { %1145 = vmatprep.subr.bf16.mxu0 %v1272_v0  ;;  %v772_v16 = vrot.slane %v771_v15, 2 }
  0x5e   : > { %v773_v22 = vadd.f32 %v772_v16, %v771_v15 }
  0x5f   : > { %1146 = vmatpush3.bf16.msra.mxu0 %v721_v30 }
  0x60   : > { %v774_v24 = vrot.slane %v773_v22, 1 }
  0x62   : > { %1148 = vmatmul.mubr.bf16.vlgmr.msra.gmra.mrb[4].mxu0 %v1392_v59  ;;  %v775_v25 = vadd.f32 %v774_v24, %v773_v22 }
  0xcf   : > { %v299_v0 = vpop.xlane.xlu0 %298 }
  0xd0   : > { %v466_v59 = vmul.f32 %v373_v53, %v299_v0  ;;  %v667_v62 = vmul.f32 %v574_v54, %v299_v0  ;;  %v868_v28 = vmul.f32 %v775_v25, %v299_v0 }
 0x115   : > { %v456_v55 = vpop.f32.mrb[0].mxu0 }
 0x116   : > { %v462_v56 = vmul.f32 2.0, %v456_v55  ;;  %v657_v57 = vpop.f32.mrb[0].mxu1  ;;  %v1109_v58 = vpop.f32.mrb[1].mxu0 }
 0x117   : > { %v663_v60 = vmul.f32 2.0, %v657_v57  ;;  %v459_v61 = vpop.f32.mrb[2].mxu0  ;;  %v1129_v63 = vpop.f32.mrb[1].mxu1 }
 0x118   : > { %v465_v1 = vsub.f32 1.0, %v462_v56  ;;  %v463_v2 = vsub.f32 %v299_v0, %v462_v56  ;;  %v1110_v3 = vpop.f32.mrb[3].mxu0  ;;  %v660_v4 = vpop.f32.mrb[2].mxu1 }
 0x119   : > { %v666_v5 = vsub.f32 1.0, %v663_v60  ;;  %v664_v6 = vsub.f32 %v299_v0, %v663_v60  ;;  %v1130_v7 = vpop.f32.mrb[3].mxu1 }
 0x11a   : > { %v464_v8 = vadd.f32 %v463_v2, %v373_v53  ;;  %v467_v9 = vadd.f32 %v466_v59, %v465_v1  ;;  %v303_v59 = vlaneseq }
 0x11b   : > { %v665_v10 = vadd.f32 %v664_v6, %v574_v54  ;;  %v668_v11 = vadd.f32 %v667_v62, %v666_v5 }
 0x11c   : > { %v469_v12 = vmax.f32 %v467_v9, 1e-15  ;;  %v468_v18 = vmax.f32 %v464_v8, 0.0  ;;  %v304_v3 = vand.u32 127, %v303_v59 }
 0x11d   : > { %v670_v13 = vmax.f32 %v668_v11, 1e-15  ;;  %v669_v17 = vmax.f32 %v665_v10, 0.0 }
 0x11e   : > { %1220 = vrcp.f32 %v469_v12  ;;  %vm490_vm7 = vcmp.lt.s32.totalorder %v304_v3, 16  ;;  %vm691_vm8 = vcmp.lt.s32.totalorder %v304_v3, 15  ;;  %vm892_vm9 = vcmp.lt.s32.totalorder %v304_v3, 14 }
 0x11f   : > { %1222 = vrcp.f32 %v670_v13 }
 0x128   : > { %v1221_v19 = vpop.eup %1220 }
 0x129   : > { %v1223_v20 = vpop.eup %1222  ;;  %v471_v21 = vmul.f32 %v1221_v19, %v468_v18 }
 0x12a   : > { %v672_v23 = vmul.f32 %v1223_v20, %v669_v17 }
 0x12b   : > { %1224 = vrsqrt.f32 %v471_v21  ;;  %vm474_vm2 = vcmp.eq.f32.partialorder %v471_v21, inf  ;;  %v477_v35 = vand.u32 2147483648, %v471_v21  ;;  %vm476_vm4 = vcmp.eq.f32.partialorder %v471_v21, 0.0 }
 0x12c   : > { %1226 = vrsqrt.f32 %v672_v23  ;;  %vm675_vm1 = vcmp.eq.f32.partialorder %v672_v23, inf  ;;  %v678_v33 = vand.u32 2147483648, %v672_v23  ;;  %vm677_vm3 = vcmp.eq.f32.partialorder %v672_v23, 0.0 }
 0x135   : > { %v1225_v26 = vpop.eup %1224  ;;  %v858_v27 = vpop.f32.mrb[4].mxu0 }
 0x136   : > { %v1227_v29 = vpop.eup %1226  ;;  %v864_v30 = vmul.f32 2.0, %v858_v27  ;;  %v1149_v31 = vpop.f32.mrb[5].mxu0  ;;  %v473_v32 = vmul.f32 %v1225_v26, %v471_v21 }
 0x137   : > { %v861_v34 = vpop.f32.mrb[6].mxu0  ;;  %v674_v36 = vmul.f32 %v1227_v29, %v672_v23 }
 0x138   : > { %v865_v37 = vsub.f32 %v299_v0, %v864_v30  ;;  %v867_v38 = vsub.f32 1.0, %v864_v30  ;;  %v1150_v39 = vpop.f32.mrb[7].mxu0  ;;  %v475_v40 = vsel %vm474_vm2, %v471_v21, %v473_v32  ;;  %v499_v30 = vstv %s498_s15 }
 0x139   : > { %v478_v41 = vsel %vm476_vm4, %v477_v35, %v475_v40  ;;  %v676_v42 = vsel %vm675_vm1, %v672_v23, %v674_v36  ;;  %v503_v34 = vstv %s1036_s16  ;;  %v301_v35 = vstv %s1026_s17 }
 0x13a   : > { %v866_v43 = vadd.f32 %v865_v37, %v775_v25  ;;  %v869_v44 = vadd.f32 %v868_v28, %v867_v38  ;;  %v1035_v45 = vclamps-f32 %v478_v41, 0.99999  ;;  %v679_v46 = vsel %vm677_vm3, %v678_v33, %v676_v42 }
 0x13b   : > { %v1045_v47 = vclamps-f32 %v679_v46, 0.99999  ;;  %v700_v38 = vstv %s1046_s20 }
 0x13c   : > { %v871_v48 = vmax.f32 %v869_v44, 1e-15  ;;  %v482_v49 = vsub.f32 1.0, %v1035_v45  ;;  %v870_v51 = vmax.f32 %v866_v43, 0.0  ;;  %v481_v53 = vadd.f32 1.0, %v1035_v45 }
 0x13d   : > { %v683_v50 = vsub.f32 1.0, %v1045_v47  ;;  %v682_v55 = vadd.f32 1.0, %v1045_v47  ;;  %v704_v44 = vstv %s1047_s21  ;;  %v901_v47 = vstv %s1057_s22 }
 0x13e   : > { %1228 = vrcp.f32 %v871_v48 }
 0x13f   : > { %1230 = vrcp.f32 %v482_v49  ;;  %v905_v49 = vstv %s1058_s23 }
 0x140   : > { %1232 = vrcp.f32 %v683_v50 }
 0x148   : > { %v1229_v52 = vpop.eup %1228 }
 0x149   : > { %v1231_v54 = vpop.eup %1230  ;;  %v873_v0 = vmul.f32 %v1229_v52, %v870_v51 }
 0x14a   : > { %v1233_v56 = vpop.eup %1232  ;;  %v484_v57 = vmul.f32 %v1231_v54, %v481_v53 }
 0x14b   : > { %1234 = vrsqrt.f32 %v873_v0  ;;  %v685_v58 = vmul.f32 %v1233_v56, %v682_v55  ;;  %vm876_vm5 = vcmp.eq.f32.partialorder %v873_v0, inf  ;;  %v879_v2 = vand.u32 2147483648, %v873_v0 }
 0x14c   : > { %1236 = vlog2.f32 %v484_v57  ;;  %vm878_vm6 = vcmp.eq.f32.partialorder %v873_v0, 0.0 }
 0x14d   : > { %1238 = vlog2.f32 %v685_v58 }
 0x155   : > { %v1235_v60 = vpop.eup %1234 }
 0x156   : > { %v1237_v61 = vpop.eup %1236  ;;  %v875_v62 = vmul.f32 %v1235_v60, %v873_v0 }
 0x157   : > { %v1239_v63 = vpop.eup %1238  ;;  %v486_v1 = vmul.f32 0.6931472, %v1237_v61 }
 0x158   : > { %v687_v4 = vmul.f32 0.6931472, %v1239_v63  ;;  %v877_v5 = vsel %vm876_vm5, %v873_v0, %v875_v62 }
 0x159   : > { %v487_v6 = vmul.f32 %v486_v1, %v486_v1  ;;  %v880_v7 = vsel %vm878_vm6, %v879_v2, %v877_v5 }
 0x15a   : > { %v688_v8 = vmul.f32 %v687_v4, %v687_v4  ;;  %v1056_v9 = vclamps-f32 %v880_v7, 0.99999 }
 0x15b   : > { %v488_v10 = vsub.f32 0.0, %v487_v6 }
 0x15c   : > { %v689_v11 = vsub.f32 0.0, %v688_v8  ;;  %v884_v12 = vsub.f32 1.0, %v1056_v9  ;;  %v883_v19 = vadd.f32 1.0, %v1056_v9 }
 0x15d   : > { %v489_v13 = vmul.f32 0.088388346, %v488_v10 }
 0x15e   : > { %1240 = vrcp.f32 %v884_v12  ;;  %v690_v16 = vmul.f32 0.088388346, %v689_v11 }
 0x15f   : > { %v494_v14 = vsel %vm490_vm7, %v489_v13, 0.0  ;;  %v491_v15 = vsel %vm490_vm7, %v489_v13, -inf }
 0x160   : > { %495 = vadd.xlane.f32.xlu1 %v494_v14  ;;  %492 = vmax.xlane.f32.xlu0 %v491_v15  ;;  %v692_v17 = vsel %vm691_vm8, %v690_v16, -inf  ;;  %v695_v18 = vsel %vm691_vm8, %v690_v16, 0.0 }
 0x164   : > { %693 = vmax.xlane.f32.xlu1 %v692_v17  ;;  %696 = vadd.xlane.f32.xlu0 %v695_v18 }
 0x168   : > { %v1241_v20 = vpop.eup %1240 }
 0x169   : > { %v886_v21 = vmul.f32 %v1241_v20, %v883_v19 }
 0x16b   : > { %1242 = vlog2.f32 %v886_v21 }
 0x175   : > { %v1243_v22 = vpop.eup %1242 }
 0x176   : > { %v888_v23 = vmul.f32 0.6931472, %v1243_v22 }
 0x178   : > { %v889_v24 = vmul.f32 %v888_v23, %v888_v23 }
 0x17a   : > { %v890_v25 = vsub.f32 0.0, %v889_v24 }
 0x17c   : > { %v891_v26 = vmul.f32 0.088388346, %v890_v25 }
 0x17e   : > { %v893_v27 = vsel %vm892_vm9, %v891_v26, -inf  ;;  %v896_v28 = vsel %vm892_vm9, %v891_v26, 0.0 }
 0x17f   : > { %894 = vmax.xlane.f32.xlu1 %v893_v27  ;;  %897 = vadd.xlane.f32.xlu0 %v896_v28 }
 0x1ed   : > { %v496_v29 = vpop.xlane.xlu1 %495  ;;  %v493_v31 = vpop.xlane.xlu0 %492 }
 0x1ee   : > { %v497_v32 = vmul.f32 0.0625, %v496_v29  ;;  %v500_v33 = vmul.f32 %v499_v30, %v493_v31 }
 0x1f0   : > { %v504_v36 = vmul.f32 %v503_v34, %v497_v32  ;;  %v501_v37 = vadd.f32 %v500_v33, %v301_v35 }
 0x1f1   : > { %v694_v39 = vpop.xlane.xlu1 %693  ;;  %v697_v40 = vpop.xlane.xlu0 %696 }
 0x1f2   : > { %v505_v41 = vadd.f32 %v504_v36, %v501_v37  ;;  %v701_v42 = vmul.f32 %v700_v38, %v694_v39  ;;  %v698_v43 = vmul.f32 0.06666667, %v697_v40 }
 0x1f4   : > { %v702_v45 = vadd.f32 %v701_v42, %v505_v41  ;;  %v705_v46 = vmul.f32 %v704_v44, %v698_v43 }
 0x1f6   : > { %v706_v51 = vadd.f32 %v705_v46, %v702_v45 }
 0x20c   : > { %v895_v48 = vpop.xlane.xlu1 %894  ;;  %v898_v50 = vpop.xlane.xlu0 %897 }
 0x20d   : > { %v902_v52 = vmul.f32 %v901_v47, %v895_v48  ;;  %v899_v53 = vmul.f32 0.071428575, %v898_v50 }
 0x20f   : > { %v903_v54 = vadd.f32 %v902_v52, %v706_v51  ;;  %v906_v0 = vmul.f32 %v905_v49, %v899_v53 }
 0x211   : > { %v907_v55 = vadd.f32 %v906_v0, %v903_v54 }
 0x213   : > { %909 = vst.msk [vmem:[%s293_s27] sm:$0xff] %vm908_vm10, %v907_v55 }
 0x214 PF: > { %s16_s18 = sadd.s32 1, %s1269_s18  }
 0x215   : > { %p13_p1 = scmp.ge.s32.totalorder %s16_s18, 4  }
 0x217   :  { %15 = sbr.rel (!%p13_p1) target bundleno = 1 (0x1), region = 84 }
 0x21e   :  { %929 = vsyncpa [#allocation3], 1 }
 0x21f   :  { %931 = vsyncpa [#allocation3 + $0x1], 1 }

// kernel: matchsum_forward.3
= control target key start
LH: loop header
LB: loop body
LE: loop exit
PB: predicated region body
PF: predicated region fallthrough
CT: control target
= control target key end

     0   :  { %s3077_s24 = smov 0   ;;  %s3765_s0 = inlined_call_operand.vmem [shape: bf16[2,128,128], index: 0, kind: input, shape index: {}]   ;;  %s3766_s1 = inlined_call_operand.vmem [shape: bf16[1,128,128], index: 1, kind: input, shape index: {}]   ;;  %s3767_s2 = inlined_call_operand.vmem [shape: bf16[2,128,128], index: 2, kind: input, shape index: {}]   ;;  %s3768_s3 = inlined_call_operand.vmem [shape: bf16[3,128,128], index: 3, kind: input, shape index: {}]   ;;  %s3769_s4 = inlined_call_operand.vmem [shape: f32[3,128,1], index: 4, kind: input, shape index: {}]   ;;  %s3770_s5 = inlined_call_operand.vmem [shape: bf16[2,128,128], index: 5, kind: output, shape index: {0}]   ;;  %s3771_s6 = inlined_call_operand.vmem [shape: bf16[2,128,128], index: 6, kind: output, shape index: {1}]   ;;  %s3772_s7 = inlined_call_operand.vmem [shape: bf16[2,128,128], index: 7, kind: output, shape index: {2}]  }
   0x1 LB: > { %s2277_s25 = sadd.s32 4294967295, %s3032_s24   ;;  %p2281_p0 = scmp.ge.s32.totalorder %s3032_s24, 1  ;;  %s3032_s24 = sphi %s3077_s24, %s18_s24  }
   0x2   : > { %p242_p1 = scmp.lt.s32.totalorder %s3032_s24, 3 }
   0x4   : > { %p243_p2 = pnand %p2281_p0, %p242_p1 }
   0x6   : > { %246 = sbr.rel (%p243_p2) target bundleno = 511 (0x1ff), region = 40 }
   0xd   : > { %p284_p3 = scmp.lt.s32.totalorder %s2277_s25, 1  ;;  %v2978_v0 = vld [vmem:[%s3766_s1] sm:$0xff]   ;;  %v3034_v2 = vmov 0   ;;  %v323_v11 = vld [vmem:[%s3769_s4 + $0x10] sm:$0xff]  ;;  %v2980_v13 = vld [vmem:[%s3766_s1 + $0x8] sm:$0xff]   ;;  %s3035_s13 = smov 127  }
   0xe   : > { %v2979_v1 = vld [vmem:[%s3767_s2] sm:$0xff]   ;;  %2781 = vmatprep.mubr.bf16.mxu0 %v2978_v0  ;;  %2969 = vset.pattern.permute.xlu1 %v3034_v2  ;;  %v2981_v14 = vld [vmem:[%s3767_s2 + $0x8] sm:$0xff]   ;;  %v324_v15 = vld [vmem:[%s3769_s4 + $0x18] sm:$0xff]  ;;  %s3036_s14 = smov 126  }
   0xf   : > { %s3776_s25 = smov (!%p284_p3, %s2277_s25), 1  ;;  %2813 = vmatprep.mubr.bf16.mxu1 %v2979_v1  ;;  %2968 = vset.pattern.permute.xlu0 %v3034_v2  ;;  %v321_v12 = vld [vmem:[%s3769_s4] sm:$0xff]  ;;  %v322_v16 = vld [vmem:[%s3769_s4 + $0x8] sm:$0xff]  ;;  %v2982_v17 = vld [vmem:[%s3766_s1 + $0x10] sm:$0xff]  }
  0x10   : > { %s3091_s30 = sshll.u32 %s3776_s25, 6  ;;  %349 = vperm.xlu1 %2969, %v323_v11   ;;  %339 = vperm.xlu0 %2968, %v321_v12   ;;  %v2983_v18 = vld [vmem:[%s3767_s2 + $0x10] sm:$0xff]   ;;  %v326_v19 = vld [vmem:[%s3769_s4 + $0x28] sm:$0xff]  ;;  %v325_v20 = vld [vmem:[%s3769_s4 + $0x20] sm:$0xff] }
  0x11   : > { %s3097_s10 = scalar_lea.vmem %s3765_s0, %s3091_s30  ;;  %v2984_v21 = vld [vmem:[%s3766_s1 + $0x18] sm:$0xff]   ;;  %v2986_v23 = vld [vmem:[%s3766_s1 + $0x20] sm:$0xff]   ;;  %v327_v26 = vld [vmem:[%s3769_s4 + $0x30] sm:$0xff]  ;;  %s3549_s12 = scalar_lea.vmem %s3770_s5, %s3091_s30 }
  0x12   : > { %v3100_v3 = vld [vmem:[%s3097_s10] sm:$0xff]   ;;  %v3103_v4 = vld [vmem:[%s3097_s10 + $0x8] sm:$0xff]   ;;  %v3112_v5 = vld [vmem:[%s3097_s10 + $0x10] sm:$0xff]   ;;  %s3699_s17 = scalar_lea.vmem %s3771_s6, %s3091_s30  ;;  %s3736_s20 = scalar_lea.vmem %s3772_s7, %s3091_s30 }
  0x13   : > { %2765 = vmatprep.subr.bf16.mxu0 %v3100_v3  ;;  %2797 = vmatprep.subr.bf16.mxu1 %v3100_v3  ;;  %v3119_v6 = vld [vmem:[%s3097_s10 + $0x18] sm:$0xff]   ;;  %v3126_v7 = vld [vmem:[%s3097_s10 + $0x20] sm:$0xff]   ;;  %v3133_v8 = vld [vmem:[%s3097_s10 + $0x28] sm:$0xff]  }
  0x14   : > { %2766 = vmatpush3.bf16.msra.mxu0 %v3100_v3  ;;  %2798 = vmatpush3.bf16.msra.mxu1 %v3100_v3  ;;  %v3140_v9 = vld [vmem:[%s3097_s10 + $0x30] sm:$0xff]   ;;  %v3147_v10 = vld [vmem:[%s3097_s10 + $0x38] sm:$0xff]   ;;  %v2987_v24 = vld [vmem:[%s3767_s2 + $0x20] sm:$0xff]  }
  0x15   : > { %2767 = vmatprep.subr.bf16.mxu0 %v3103_v4  ;;  %2799 = vmatprep.subr.bf16.mxu1 %v3103_v4  ;;  %v2985_v22 = vld [vmem:[%s3767_s2 + $0x18] sm:$0xff]   ;;  %v2988_v27 = vld [vmem:[%s3766_s1 + $0x28] sm:$0xff]   ;;  %v2990_v29 = vld [vmem:[%s3766_s1 + $0x30] sm:$0xff]  }
  0x16   : > { %354 = vperm.xlu1 %2969, %v324_v15   ;;  %344 = vperm.xlu0 %2968, %v322_v16   ;;  %v328_v25 = vld [vmem:[%s3769_s4 + $0x38] sm:$0xff]  ;;  %v2989_v28 = vld [vmem:[%s3767_s2 + $0x28] sm:$0xff]   ;;  %v2991_v30 = vld [vmem:[%s3767_s2 + $0x30] sm:$0xff]  }
  0x17   : > { %v330_v31 = vld [vmem:[%s3769_s4 + $0x48] sm:$0xff]  ;;  %v329_v32 = vld [vmem:[%s3769_s4 + $0x40] sm:$0xff]  ;;  %v2992_v33 = vld [vmem:[%s3766_s1 + $0x38] sm:$0xff]  }
  0x18   : > { %2768 = vmatpush3.bf16.msra.mxu0 %v3103_v4  ;;  %2800 = vmatpush3.bf16.msra.mxu1 %v3103_v4  ;;  %v2993_v34 = vld [vmem:[%s3767_s2 + $0x38] sm:$0xff]   ;;  %v2994_v35 = vld [vmem:[%s3767_s2 + $0x40] sm:$0xff]   ;;  %v331_v38 = vld [vmem:[%s3769_s4 + $0x50] sm:$0xff] }
  0x19   : > { %2769 = vmatprep.subr.bf16.mxu0 %v3112_v5  ;;  %2801 = vmatprep.subr.bf16.mxu1 %v3112_v5  ;;  %v2995_v36 = vld [vmem:[%s3768_s3] sm:$0xff]   ;;  %v332_v37 = vld [vmem:[%s3769_s4 + $0x58] sm:$0xff]  ;;  %v2996_v39 = vld [vmem:[%s3767_s2 + $0x48] sm:$0xff]  }
  0x1a   : > { %364 = vperm.xlu1 %2969, %v326_v19   ;;  %359 = vperm.xlu0 %2968, %v325_v20   ;;  %v2997_v40 = vld [vmem:[%s3768_s3 + $0x8] sm:$0xff]   ;;  %v2998_v41 = vld [vmem:[%s3767_s2 + $0x50] sm:$0xff]   ;;  %v333_v44 = vld [vmem:[%s3769_s4 + $0x60] sm:$0xff] }
  0x1b   : > { %v2999_v42 = vld [vmem:[%s3768_s3 + $0x10] sm:$0xff]   ;;  %v334_v43 = vld [vmem:[%s3769_s4 + $0x68] sm:$0xff]  ;;  %v3000_v45 = vld [vmem:[%s3767_s2 + $0x58] sm:$0xff]  }
  0x1c   : > { %2770 = vmatpush3.bf16.msra.mxu0 %v3112_v5  ;;  %2802 = vmatpush3.bf16.msra.mxu1 %v3112_v5  ;;  %v3001_v46 = vld [vmem:[%s3768_s3 + $0x18] sm:$0xff]   ;;  %v3002_v47 = vld [vmem:[%s3767_s2 + $0x60] sm:$0xff]   ;;  %v335_v50 = vld [vmem:[%s3769_s4 + $0x70] sm:$0xff] }
  0x1d   : > { %2771 = vmatprep.subr.bf16.mxu0 %v3119_v6  ;;  %2803 = vmatprep.subr.bf16.mxu1 %v3119_v6  ;;  %v3003_v48 = vld [vmem:[%s3768_s3 + $0x20] sm:$0xff]   ;;  %v336_v49 = vld [vmem:[%s3769_s4 + $0x78] sm:$0xff]  ;;  %v3004_v51 = vld [vmem:[%s3767_s2 + $0x68] sm:$0xff]  }
  0x1e   : > { %374 = vperm.xlu1 %2969, %v328_v25   ;;  %369 = vperm.xlu0 %2968, %v327_v26   ;;  %v3005_v52 = vld [vmem:[%s3768_s3 + $0x28] sm:$0xff]   ;;  %v3006_v53 = vld [vmem:[%s3767_s2 + $0x70] sm:$0xff]   ;;  %v2322_v56 = vld [vmem:[%s3769_s4 + $0x80] sm:$0xff] }
  0x1f   : > { %v3007_v54 = vld [vmem:[%s3768_s3 + $0x30] sm:$0xff]   ;;  %v2323_v55 = vld [vmem:[%s3769_s4 + $0x88] sm:$0xff]  ;;  %v3008_v57 = vld [vmem:[%s3767_s2 + $0x78] sm:$0xff]  }
  0x20   : > { %2772 = vmatpush3.bf16.msra.mxu0 %v3119_v6  ;;  %2804 = vmatpush3.bf16.msra.mxu1 %v3119_v6  ;;  %v3009_v58 = vld [vmem:[%s3768_s3 + $0x38] sm:$0xff]   ;;  %v3010_v59 = vld [vmem:[%s3768_s3 + $0x40] sm:$0xff]   ;;  %v2324_v62 = vld [vmem:[%s3769_s4 + $0x90] sm:$0xff] }
  0x21   : > { %2773 = vmatprep.subr.bf16.mxu0 %v3126_v7  ;;  %2805 = vmatprep.subr.bf16.mxu1 %v3126_v7  ;;  %v3012_v60 = vld [vmem:[%s3768_s3 + $0x80] sm:$0xff]   ;;  %v2325_v61 = vld [vmem:[%s3769_s4 + $0x98] sm:$0xff]  ;;  %v3011_v63 = vld [vmem:[%s3768_s3 + $0x48] sm:$0xff]  }
  0x22   : > { %384 = vperm.xlu1 %2969, %v330_v31   ;;  %379 = vperm.xlu0 %2968, %v329_v32   ;;  %v3013_v0 = vld [vmem:[%s3768_s3 + $0x88] sm:$0xff]   ;;  %v3014_v1 = vld [vmem:[%s3768_s3 + $0x50] sm:$0xff]   ;;  %v2330_v12 = vld [vmem:[%s3769_s4 + $0xc0] sm:$0xff] }
  0x23   : > { %v3016_v2 = vld [vmem:[%s3768_s3 + $0x90] sm:$0xff]   ;;  %v2331_v11 = vld [vmem:[%s3769_s4 + $0xc8] sm:$0xff]  ;;  %v2334_v20 = vld [vmem:[%s3769_s4 + $0xe0] sm:$0xff] }
  0x24   : > { %2774 = vmatpush3.bf16.msra.mxu0 %v3126_v7  ;;  %2806 = vmatpush3.bf16.msra.mxu1 %v3126_v7  ;;  %v3019_v15 = vld [vmem:[%s3768_s3 + $0x68] sm:$0xff]   ;;  %v2386_v26 = vld [vmem:[%s3769_s4 + $0x100] sm:$0xff]  ;;  %v2393_v31 = vld [vmem:[%s3769_s4 + $0x138] sm:$0xff] }
  0x25   : > { %2775 = vmatprep.subr.bf16.mxu0 %v3133_v8  ;;  %2807 = vmatprep.subr.bf16.mxu1 %v3133_v8  ;;  %v3021_v16 = vld [vmem:[%s3768_s3 + $0xa8] sm:$0xff]   ;;  %v2392_v32 = vld [vmem:[%s3769_s4 + $0x130] sm:$0xff] }
  0x26   : > { %394 = vperm.xlu1 %2969, %v332_v37   ;;  %389 = vperm.xlu0 %2968, %v331_v38   ;;  %v2335_v19 = vld [vmem:[%s3769_s4 + $0xe8] sm:$0xff]  ;;  %v2398_v38 = vld [vmem:[%s3769_s4 + $0x160] sm:$0xff] }
  0x27   : > { %v2387_v25 = vld [vmem:[%s3769_s4 + $0x108] sm:$0xff] }
  0x28   : > { %2776 = vmatpush3.bf16.msra.mxu0 %v3133_v8  ;;  %2808 = vmatpush3.bf16.msra.mxu1 %v3133_v8  ;;  %v2399_v37 = vld [vmem:[%s3769_s4 + $0x168] sm:$0xff] }
  0x29   : > { %2777 = vmatprep.subr.bf16.mxu0 %v3140_v9  ;;  %2809 = vmatprep.subr.bf16.mxu1 %v3140_v9 }
  0x2a   : > { %404 = vperm.xlu1 %2969, %v334_v43   ;;  %399 = vperm.xlu0 %2968, %v333_v44  }
  0x2c   : > { %2778 = vmatpush3.bf16.msra.mxu0 %v3140_v9  ;;  %2810 = vmatpush3.bf16.msra.mxu1 %v3140_v9 }
  0x2d   : > { %2779 = vmatprep.subr.bf16.mxu0 %v3147_v10  ;;  %2811 = vmatprep.subr.bf16.mxu1 %v3147_v10 }
  0x2e   : > { %414 = vperm.xlu1 %2969, %v336_v49   ;;  %409 = vperm.xlu0 %2968, %v335_v50  }
  0x30   : > { %2780 = vmatpush3.bf16.msra.mxu0 %v3147_v10  ;;  %2812 = vmatpush3.bf16.msra.mxu1 %v3147_v10 }
  0x31   : > { %2829 = vmatprep.subr.bf16.mxu0 %v3100_v3  ;;  %2861 = vmatprep.subr.bf16.mxu1 %v3100_v3 }
  0x32   : > { %778 = vperm.xlu1 %2969, %v2323_v55   ;;  %773 = vperm.xlu0 %2968, %v2322_v56  }
  0x33   : > { %2782 = vmatmul.mubr.bf16.vlgmr.msra.gmra.mrb[0].mxu0 %v2980_v13  ;;  %2814 = vmatmul.mubr.bf16.vlgmr.msra.gmra.mrb[0].mxu1 %v2981_v14  ;;  %v2333_v13 = vld [vmem:[%s3769_s4 + $0xd8] sm:$0xff]  ;;  %v2332_v14 = vld [vmem:[%s3769_s4 + $0xd0] sm:$0xff] }
  0x34   : > { %2830 = vmatpush3.bf16.msra.mxu0 %v3100_v3  ;;  %2862 = vmatpush3.bf16.msra.mxu1 %v3100_v3 }
  0x35   : > { %2831 = vmatprep.subr.bf16.mxu0 %v3103_v4  ;;  %2863 = vmatprep.subr.bf16.mxu1 %v3103_v4 }
  0x36   : > { %2785 = vmatprep.mubr.bf16.mxu0 %v2982_v17  ;;  %2817 = vmatprep.mubr.bf16.mxu1 %v2983_v18  ;;  %v3022_v17 = vld [vmem:[%s3768_s3 + $0x70] sm:$0xff]  }
  0x37   : > { %788 = vperm.xlu1 %2969, %v2325_v61   ;;  %783 = vperm.xlu0 %2968, %v2324_v62   ;;  %v3024_v18 = vld [vmem:[%s3768_s3 + $0xb0] sm:$0xff]  }
  0x38   : > { %2832 = vmatpush3.bf16.msra.mxu0 %v3103_v4  ;;  %2864 = vmatpush3.bf16.msra.mxu1 %v3103_v4 }
  0x39   : > { %2833 = vmatprep.subr.bf16.mxu0 %v3112_v5  ;;  %2865 = vmatprep.subr.bf16.mxu1 %v3112_v5 }
  0x3b   : > { %2786 = vmatmul.mubr.bf16.gmra.mrb[4].mxu0 %v2984_v21  ;;  %2818 = vmatmul.mubr.bf16.gmra.mrb[4].mxu1 %v2985_v22  ;;  %v2337_v21 = vld [vmem:[%s3769_s4 + $0xf8] sm:$0xff]  ;;  %v2336_v22 = vld [vmem:[%s3769_s4 + $0xf0] sm:$0xff] }
  0x3c   : > { %2834 = vmatpush3.bf16.msra.mxu0 %v3112_v5  ;;  %2866 = vmatpush3.bf16.msra.mxu1 %v3112_v5 }
  0x3d   : > { %2835 = vmatprep.subr.bf16.mxu0 %v3119_v6  ;;  %2867 = vmatprep.subr.bf16.mxu1 %v3119_v6 }
  0x3e   : > { %2789 = vmatprep.mubr.bf16.mxu0 %v2986_v23  ;;  %2821 = vmatprep.mubr.bf16.mxu1 %v2987_v24  ;;  %v3023_v23 = vld [vmem:[%s3768_s3 + $0x78] sm:$0xff]  }
  0x3f   : > { %v3025_v24 = vld [vmem:[%s3768_s3 + $0xb8] sm:$0xff]  }
  0x40   : > { %2836 = vmatpush3.bf16.msra.mxu0 %v3119_v6  ;;  %2868 = vmatpush3.bf16.msra.mxu1 %v3119_v6 }
  0x41   : > { %2837 = vmatprep.subr.bf16.mxu0 %v3126_v7  ;;  %2869 = vmatprep.subr.bf16.mxu1 %v3126_v7 }
  0x43   : > { %2790 = vmatmul.mubr.bf16.gmra.mrb[8].mxu0 %v2988_v27  ;;  %2822 = vmatmul.mubr.bf16.gmra.mrb[8].mxu1 %v2989_v28  ;;  %v2389_v27 = vld [vmem:[%s3769_s4 + $0x118] sm:$0xff]  ;;  %v2388_v28 = vld [vmem:[%s3769_s4 + $0x110] sm:$0xff] }
  0x44   : > { %2838 = vmatpush3.bf16.msra.mxu0 %v3126_v7  ;;  %2870 = vmatpush3.bf16.msra.mxu1 %v3126_v7 }
  0x45   : > { %2839 = vmatprep.subr.bf16.mxu0 %v3133_v8  ;;  %2871 = vmatprep.subr.bf16.mxu1 %v3133_v8 }
  0x46   : > { %2793 = vmatprep.mubr.bf16.mxu0 %v2990_v29  ;;  %2825 = vmatprep.mubr.bf16.mxu1 %v2991_v30  ;;  %v2391_v29 = vld [vmem:[%s3769_s4 + $0x128] sm:$0xff]  ;;  %v2390_v30 = vld [vmem:[%s3769_s4 + $0x120] sm:$0xff] }
  0x48   : > { %2840 = vmatpush3.bf16.msra.mxu0 %v3133_v8  ;;  %2872 = vmatpush3.bf16.msra.mxu1 %v3133_v8 }
  0x49   : > { %2841 = vmatprep.subr.bf16.mxu0 %v3140_v9  ;;  %2873 = vmatprep.subr.bf16.mxu1 %v3140_v9 }
  0x4b   : > { %2794 = vmatmul.mubr.bf16.gmra.mrb[12].mxu0 %v2992_v33  ;;  %2826 = vmatmul.mubr.bf16.gmra.mrb[12].mxu1 %v2993_v34  ;;  %v2395_v33 = vld [vmem:[%s3769_s4 + $0x148] sm:$0xff]  ;;  %v2394_v34 = vld [vmem:[%s3769_s4 + $0x140] sm:$0xff] }
  0x4c   : > { %2842 = vmatpush3.bf16.msra.mxu0 %v3140_v9  ;;  %2874 = vmatpush3.bf16.msra.mxu1 %v3140_v9 }
  0x4d   : > { %2843 = vmatprep.subr.bf16.mxu0 %v3147_v10  ;;  %2875 = vmatprep.subr.bf16.mxu1 %v3147_v10 }
  0x4e   : > { %2845 = vmatprep.mubr.bf16.mxu0 %v2994_v35  ;;  %2877 = vmatprep.mubr.bf16.mxu1 %v2995_v36  ;;  %v2397_v35 = vld [vmem:[%s3769_s4 + $0x158] sm:$0xff]  ;;  %v2396_v36 = vld [vmem:[%s3769_s4 + $0x150] sm:$0xff] }
  0x50   : > { %2844 = vmatpush3.bf16.msra.mxu0 %v3147_v10  ;;  %2876 = vmatpush3.bf16.msra.mxu1 %v3147_v10 }
  0x51   : > { %2893 = vmatprep.subr.bf16.mxu0 %v3100_v3  ;;  %2925 = vmatprep.subr.bf16.mxu1 %v3100_v3 }
  0x53   : > { %2846 = vmatmul.mubr.bf16.vlgmr.msra.gmra.mrb[16].mxu0 %v2996_v39  ;;  %2878 = vmatmul.mubr.bf16.vlgmr.msra.gmra.mrb[16].mxu1 %v2997_v40  ;;  %v2401_v39 = vld [vmem:[%s3769_s4 + $0x178] sm:$0xff]  ;;  %v2400_v40 = vld [vmem:[%s3769_s4 + $0x170] sm:$0xff] }
  0x54   : > { %2894 = vmatpush3.bf16.msra.mxu0 %v3100_v3  ;;  %2926 = vmatpush3.bf16.msra.mxu1 %v3100_v3  ;;  %v2327_v3 = vld [vmem:[%s3769_s4 + $0xa8] sm:$0xff] }
  0x55   : > { %2895 = vmatprep.subr.bf16.mxu0 %v3103_v4  ;;  %2927 = vmatprep.subr.bf16.mxu1 %v3103_v4 }
  0x56   : > { %2849 = vmatprep.mubr.bf16.mxu0 %v2998_v41  ;;  %2881 = vmatprep.mubr.bf16.mxu1 %v2999_v42 }
  0x57   : > { %798 = vperm.xlu1 %2969, %v2327_v3  }
  0x58   : > { %2896 = vmatpush3.bf16.msra.mxu0 %v3103_v4  ;;  %2928 = vmatpush3.bf16.msra.mxu1 %v3103_v4  ;;  %v2326_v4 = vld [vmem:[%s3769_s4 + $0xa0] sm:$0xff] }
  0x59   : > { %2897 = vmatprep.subr.bf16.mxu0 %v3112_v5  ;;  %2929 = vmatprep.subr.bf16.mxu1 %v3112_v5 }
  0x5a   : > { %793 = vperm.xlu0 %2968, %v2326_v4  }
  0x5b   : > { %2850 = vmatmul.mubr.bf16.gmra.mrb[20].mxu0 %v3000_v45  ;;  %2882 = vmatmul.mubr.bf16.gmra.mrb[20].mxu1 %v3001_v46 }
  0x5c   : > { %2898 = vmatpush3.bf16.msra.mxu0 %v3112_v5  ;;  %2930 = vmatpush3.bf16.msra.mxu1 %v3112_v5  ;;  %v2329_v5 = vld [vmem:[%s3769_s4 + $0xb8] sm:$0xff] }
  0x5d   : > { %2899 = vmatprep.subr.bf16.mxu0 %v3119_v6  ;;  %2931 = vmatprep.subr.bf16.mxu1 %v3119_v6 }
  0x5e   : > { %2853 = vmatprep.mubr.bf16.mxu0 %v3002_v47  ;;  %2885 = vmatprep.mubr.bf16.mxu1 %v3003_v48 }
  0x5f   : > { %808 = vperm.xlu1 %2969, %v2329_v5  }
  0x60   : > { %2900 = vmatpush3.bf16.msra.mxu0 %v3119_v6  ;;  %2932 = vmatpush3.bf16.msra.mxu1 %v3119_v6  ;;  %v2328_v6 = vld [vmem:[%s3769_s4 + $0xb0] sm:$0xff] }
  0x61   : > { %2901 = vmatprep.subr.bf16.mxu0 %v3126_v7  ;;  %2933 = vmatprep.subr.bf16.mxu1 %v3126_v7 }
  0x62   : > { %803 = vperm.xlu0 %2968, %v2328_v6  }
  0x63   : > { %2854 = vmatmul.mubr.bf16.gmra.mrb[24].mxu0 %v3004_v51  ;;  %2886 = vmatmul.mubr.bf16.gmra.mrb[24].mxu1 %v3005_v52 }
  0x64   : > { %2902 = vmatpush3.bf16.msra.mxu0 %v3126_v7  ;;  %2934 = vmatpush3.bf16.msra.mxu1 %v3126_v7  ;;  %v3015_v7 = vld [vmem:[%s3768_s3 + $0x58] sm:$0xff]  }
  0x65   : > { %2903 = vmatprep.subr.bf16.mxu0 %v3133_v8  ;;  %2935 = vmatprep.subr.bf16.mxu1 %v3133_v8 }
  0x66   : > { %2857 = vmatprep.mubr.bf16.mxu0 %v3006_v53  ;;  %2889 = vmatprep.mubr.bf16.mxu1 %v3007_v54 }
  0x67   : > { %818 = vperm.xlu1 %2969, %v2331_v11   ;;  %813 = vperm.xlu0 %2968, %v2330_v12  }
  0x68   : > { %2904 = vmatpush3.bf16.msra.mxu0 %v3133_v8  ;;  %2936 = vmatpush3.bf16.msra.mxu1 %v3133_v8  ;;  %v3017_v8 = vld [vmem:[%s3768_s3 + $0x98] sm:$0xff]  }
  0x69   : > { %2905 = vmatprep.subr.bf16.mxu0 %v3140_v9  ;;  %2937 = vmatprep.subr.bf16.mxu1 %v3140_v9 }
  0x6b   : > { %2858 = vmatmul.mubr.bf16.gmra.mrb[28].mxu0 %v3008_v57  ;;  %2890 = vmatmul.mubr.bf16.gmra.mrb[28].mxu1 %v3009_v58 }
  0x6c   : > { %2906 = vmatpush3.bf16.msra.mxu0 %v3140_v9  ;;  %2938 = vmatpush3.bf16.msra.mxu1 %v3140_v9  ;;  %v3018_v9 = vld [vmem:[%s3768_s3 + $0x60] sm:$0xff]  }
  0x6d   : > { %2907 = vmatprep.subr.bf16.mxu0 %v3147_v10  ;;  %2939 = vmatprep.subr.bf16.mxu1 %v3147_v10 }
  0x6e   : > { %2909 = vmatprep.mubr.bf16.mxu0 %v3010_v59  ;;  %2941 = vmatprep.mubr.bf16.mxu1 %v3012_v60 }
  0x6f   : > { %828 = vperm.xlu1 %2969, %v2333_v13   ;;  %823 = vperm.xlu0 %2968, %v2332_v14  }
  0x70   : > { %2908 = vmatpush3.bf16.msra.mxu0 %v3147_v10  ;;  %2940 = vmatpush3.bf16.msra.mxu1 %v3147_v10  ;;  %v3020_v10 = vld [vmem:[%s3768_s3 + $0xa0] sm:$0xff]  }
  0x73   : > { %2910 = vmatmul.mubr.bf16.vlgmr.msra.gmra.mrb[32].mxu0 %v3011_v63  ;;  %2942 = vmatmul.mubr.bf16.vlgmr.msra.gmra.mrb[32].mxu1 %v3013_v0 }
  0x74   : > { %2913 = vmatprep.mubr.bf16.mxu0 %v3014_v1  ;;  %2945 = vmatprep.mubr.bf16.mxu1 %v3016_v2 }
  0x75   : > { %838 = vperm.xlu1 %2969, %v2335_v19   ;;  %833 = vperm.xlu0 %2968, %v2334_v20  }
  0x79   : > { %848 = vperm.xlu1 %2969, %v2337_v21   ;;  %843 = vperm.xlu0 %2968, %v2336_v22  }
  0x7b   : > { %2914 = vmatmul.mubr.bf16.gmra.mrb[36].mxu0 %v3015_v7  ;;  %2946 = vmatmul.mubr.bf16.gmra.mrb[36].mxu1 %v3017_v8 }
  0x7c   : > { %2917 = vmatprep.mubr.bf16.mxu0 %v3018_v9  ;;  %2949 = vmatprep.mubr.bf16.mxu1 %v3020_v10 }
  0x7d   : > { %1374 = vperm.xlu1 %2969, %v2387_v25   ;;  %1369 = vperm.xlu0 %2968, %v2386_v26  }
  0x81   : > { %1384 = vperm.xlu1 %2969, %v2389_v27   ;;  %1379 = vperm.xlu0 %2968, %v2388_v28  }
  0x83   : > { %2918 = vmatmul.mubr.bf16.gmra.mrb[40].mxu0 %v3019_v15  ;;  %2950 = vmatmul.mubr.bf16.gmra.mrb[40].mxu1 %v3021_v16 }
  0x84   : > { %2921 = vmatprep.mubr.bf16.mxu0 %v3022_v17  ;;  %2953 = vmatprep.mubr.bf16.mxu1 %v3024_v18 }
  0x85   : > { %1394 = vperm.xlu1 %2969, %v2391_v29   ;;  %1389 = vperm.xlu0 %2968, %v2390_v30  }
  0x89   : > { %1404 = vperm.xlu1 %2969, %v2393_v31   ;;  %1399 = vperm.xlu0 %2968, %v2392_v32  }
  0x8b   : > { %2922 = vmatmul.mubr.bf16.gmra.mrb[44].mxu0 %v3023_v23  ;;  %2954 = vmatmul.mubr.bf16.gmra.mrb[44].mxu1 %v3025_v24 }
  0x8d   : > { %1414 = vperm.xlu1 %2969, %v2395_v33   ;;  %1409 = vperm.xlu0 %2968, %v2394_v34  }
  0x8f   : > { %v350_v41 = vpop.permute.xlu1 %349  ;;  %v340_v42 = vpop.permute.xlu0 %339 }
  0x91   : > { %1424 = vperm.xlu1 %2969, %v2397_v35   ;;  %1419 = vperm.xlu0 %2968, %v2396_v36  }
  0x95   : > { %1434 = vperm.xlu1 %2969, %v2399_v37   ;;  %1429 = vperm.xlu0 %2968, %v2398_v38   ;;  %v355_v43 = vpop.permute.xlu1 %354  ;;  %v345_v44 = vpop.permute.xlu0 %344 }
  0x99   : > { %1444 = vperm.xlu1 %2969, %v2401_v39   ;;  %1439 = vperm.xlu0 %2968, %v2400_v40   ;;  %v3501_v45 = vpop.permute.xlu1 %364  ;;  %v360_v46 = vpop.permute.xlu0 %359 }
  0x9d   : > { %v375_v47 = vpop.permute.xlu1 %374  ;;  %v370_v48 = vpop.permute.xlu0 %369 }
  0xa1   : > { %v3503_v49 = vpop.permute.xlu1 %384  ;;  %v3505_v50 = vpop.permute.xlu0 %379 }
  0xa5   : > { %v3507_v51 = vpop.permute.xlu1 %394  ;;  %v3509_v52 = vpop.permute.xlu0 %389 }
  0xa9   : > { %v3511_v53 = vpop.permute.xlu1 %404  ;;  %v3513_v54 = vpop.permute.xlu0 %399 }
  0xad   : > { %v3515_v55 = vpop.permute.xlu1 %414  ;;  %v3517_v56 = vpop.permute.xlu0 %409 }
  0xb1   : > { %v779_v57 = vpop.permute.xlu1 %778  ;;  %v774_v58 = vpop.permute.xlu0 %773 }
  0xb6   : > { %v3519_v59 = vpop.permute.xlu1 %788  ;;  %v3521_v60 = vpop.permute.xlu0 %783 }
  0xd6   : > { %v799_v61 = vpop.permute.xlu1 %798 }
  0xd9   : > { %v794_v62 = vpop.permute.xlu0 %793 }
  0xde   : > { %v3523_v63 = vpop.permute.xlu1 %808 }
  0xe1   : > { %v3525_v0 = vpop.permute.xlu0 %803 }
  0xe6   : > { %v3527_v1 = vpop.permute.xlu1 %818  ;;  %v814_v2 = vpop.permute.xlu0 %813 }
  0xee   : > { %v3529_v3 = vpop.permute.xlu1 %828  ;;  %v3531_v4 = vpop.permute.xlu0 %823 }
  0xf4   : > { %v3533_v5 = vpop.permute.xlu1 %838  ;;  %v3535_v6 = vpop.permute.xlu0 %833 }
  0xf8   : > { %v3551_v26 = vpop.permute.xlu1 %848  ;;  %v3553_v27 = vpop.permute.xlu0 %843 }
 0x106   : > { %v2783_v7 = vpop.f32.mrb[0].mxu0  ;;  %v3537_v8 = vpop.f32.mrb[0].mxu1 }
 0x107   : > { %v644_v9 = vadd.f32 %v2783_v7, %v350_v41  ;;  %v579_v10 = vpop.f32.mrb[1].mxu0  ;;  %v965_v11 = vpop.f32.mrb[1].mxu1 }
 0x108   : > { %v642_v12 = vadd.f32 %v579_v10, %v340_v42  ;;  %v2784_v13 = vpop.f32.mrb[2].mxu0  ;;  %v3539_v14 = vadd.f32 %v965_v11, %v774_v58  ;;  %v3541_v15 = vpop.f32.mrb[2].mxu1 }
 0x109   : > { %v645_v16 = vadd.f32 %v2784_v13, %v355_v43  ;;  %v582_v17 = vpop.f32.mrb[3].mxu0  ;;  %v968_v18 = vpop.f32.mrb[3].mxu1  ;;  %v660_v21 = vmax.f32 %v644_v9, 0.0 }
 0x10a   : > { %v643_v19 = vadd.f32 %v582_v17, %v345_v44  ;;  %v3543_v20 = vadd.f32 %v968_v18, %v779_v57  ;;  %v658_v23 = vmax.f32 %v642_v12, 0.0 }
 0x10b   : > { %v661_v22 = vmax.f32 %v645_v16, 0.0 }
 0x10c   : > { %v659_v24 = vmax.f32 %v643_v19, 0.0 }
 0x10d   : > { %v2536_v25 = vpack.c.bf16 %v661_v22, %v660_v21 }
 0x10e   : > { %v2531_v28 = vpack.c.bf16 %v659_v24, %v658_v23  ;;  %v2787_v29 = vpop.f32.mrb[4].mxu0  ;;  %v3555_v30 = vpop.f32.mrb[4].mxu1 }
 0x10f   : > { %2648 = vst [vmem:[%s3549_s12 + $0x8] sm:$0xff] %v2536_v25   ;;  %v648_v31 = vadd.f32 %v2787_v29, %v370_v48  ;;  %v595_v32 = vpop.f32.mrb[5].mxu0  ;;  %v981_v33 = vpop.f32.mrb[5].mxu1 }
 0x110   : > { %2532 = vst [vmem:[%s3549_s12] sm:$0xff] %v2531_v28   ;;  %v646_v34 = vadd.f32 %v595_v32, %v360_v46  ;;  %v2788_v35 = vpop.f32.mrb[6].mxu0  ;;  %v3559_v36 = vadd.f32 %v981_v33, %v794_v62  ;;  %v3561_v37 = vpop.f32.mrb[6].mxu1 }
 0x111   : > { %v649_v38 = vadd.f32 %v2788_v35, %v375_v47  ;;  %v598_v39 = vpop.f32.mrb[7].mxu0  ;;  %v984_v40 = vpop.f32.mrb[7].mxu1  ;;  %v664_v43 = vmax.f32 %v648_v31, 0.0 }
 0x112   : > { %v647_v41 = vadd.f32 %v598_v39, %v3501_v45  ;;  %v3564_v42 = vadd.f32 %v984_v40, %v799_v61  ;;  %v662_v48 = vmax.f32 %v646_v34, 0.0  ;;  %v3566_v46 = vpop.permute.xlu1 %1374  ;;  %v1370_v62 = vpop.permute.xlu0 %1369 }
 0x113   : > { %v665_v44 = vmax.f32 %v649_v38, 0.0 }
 0x114   : > { %v663_v57 = vmax.f32 %v647_v41, 0.0 }
 0x115   : > { %v2546_v58 = vpack.c.bf16 %v665_v44, %v664_v43 }
 0x116   : > { %v2541_v7 = vpack.c.bf16 %v663_v57, %v662_v48  ;;  %v2791_v9 = vpop.f32.mrb[8].mxu0  ;;  %v3568_v10 = vpop.f32.mrb[8].mxu1 }
 0x117   : > { %2650 = vst [vmem:[%s3549_s12 + $0x18] sm:$0xff] %v2546_v58   ;;  %v652_v47 = vadd.f32 %v2791_v9, %v3509_v52  ;;  %v611_v11 = vpop.f32.mrb[9].mxu0  ;;  %v997_v45 = vpop.f32.mrb[9].mxu1 }
 0x118   : > { %2649 = vst [vmem:[%s3549_s12 + $0x10] sm:$0xff] %v2541_v7   ;;  %v650_v61 = vadd.f32 %v611_v11, %v3505_v50  ;;  %v2792_v12 = vpop.f32.mrb[10].mxu0  ;;  %v3574_v13 = vadd.f32 %v997_v45, %v814_v2  ;;  %v3576_v16 = vpop.f32.mrb[10].mxu1 }
 0x119   : > { %v653_v17 = vadd.f32 %v2792_v12, %v3507_v51  ;;  %v614_v18 = vpop.f32.mrb[11].mxu0  ;;  %v1000_v19 = vpop.f32.mrb[11].mxu1  ;;  %v668_v22 = vmax.f32 %v652_v47, 0.0 }
 0x11a   : > { %v651_v21 = vadd.f32 %v614_v18, %v3503_v49  ;;  %v3581_v52 = vadd.f32 %v1000_v19, %v3527_v1  ;;  %v666_v24 = vmax.f32 %v650_v61, 0.0  ;;  %v3583_v2 = vpop.permute.xlu1 %1384  ;;  %v3585_v28 = vpop.permute.xlu0 %1379 }
 0x11b   : > { %v669_v23 = vmax.f32 %v653_v17, 0.0 }
 0x11c   : > { %v667_v50 = vmax.f32 %v651_v21, 0.0 }
 0x11d   : > { %v2556_v25 = vpack.c.bf16 %v669_v23, %v668_v22 }
 0x11e   : > { %v2551_v29 = vpack.c.bf16 %v667_v50, %v666_v24  ;;  %v2795_v31 = vpop.f32.mrb[12].mxu0  ;;  %v3587_v51 = vpop.f32.mrb[12].mxu1 }
 0x11f   : > { %2652 = vst [vmem:[%s3549_s12 + $0x28] sm:$0xff] %v2556_v25   ;;  %v656_v49 = vadd.f32 %v2795_v31, %v3517_v56  ;;  %v627_v32 = vpop.f32.mrb[13].mxu0  ;;  %v1013_v33 = vpop.f32.mrb[13].mxu1 }
 0x120   : > { %2651 = vst [vmem:[%s3549_s12 + $0x20] sm:$0xff] %v2551_v29   ;;  %v654_v1 = vadd.f32 %v627_v32, %v3513_v54  ;;  %v2796_v34 = vpop.f32.mrb[14].mxu0  ;;  %v3594_v35 = vadd.f32 %v1013_v33, %v3535_v6  ;;  %v3596_v38 = vpop.f32.mrb[14].mxu1 }
 0x121   : > { %v657_v39 = vadd.f32 %v2796_v34, %v3515_v55  ;;  %v630_v40 = vpop.f32.mrb[15].mxu0  ;;  %v1016_v41 = vpop.f32.mrb[15].mxu1  ;;  %v672_v44 = vmax.f32 %v656_v49, 0.0 }
 0x122   : > { %v655_v43 = vadd.f32 %v630_v40, %v3511_v53  ;;  %v3601_v56 = vadd.f32 %v1016_v41, %v3533_v5  ;;  %v670_v54 = vmax.f32 %v654_v1, 0.0  ;;  %v1395_v58 = vpop.permute.xlu1 %1394  ;;  %v1390_v6 = vpop.permute.xlu0 %1389 }
 0x123   : > { %v673_v48 = vmax.f32 %v657_v39, 0.0 }
 0x124   : > { %v671_v57 = vmax.f32 %v655_v43, 0.0 }
 0x125   : > { %v2566_v7 = vpack.c.bf16 %v673_v48, %v672_v44 }
 0x126   : > { %v2561_v9 = vpack.c.bf16 %v671_v57, %v670_v54  ;;  %v2847_v47 = vpop.f32.mrb[16].mxu0  ;;  %v3603_v11 = vpop.f32.mrb[16].mxu1 }
 0x127   : > { %2654 = vst [vmem:[%s3549_s12 + $0x38] sm:$0xff] %v2566_v7   ;;  %1210 = vrot.lane.b32.xlu0 %v2847_v47, %s3035_s13  ;;  %v1143_v53 = vpop.f32.mrb[17].mxu0  ;;  %v1561_v55 = vpop.f32.mrb[17].mxu1 }
 0x128   : > { %2653 = vst [vmem:[%s3549_s12 + $0x30] sm:$0xff] %v2561_v9   ;;  %v2848_v5 = vpop.f32.mrb[18].mxu0  ;;  %v3608_v45 = vadd.f32 %v1561_v55, %v1370_v62  ;;  %v3610_v61 = vpop.f32.mrb[18].mxu1 }
 0x129   : > { %1212 = vrot.lane.b32.xlu1 %v2848_v5, %s3035_s13  ;;  %v1146_v12 = vpop.f32.mrb[19].mxu0  ;;  %v1564_v17 = vpop.f32.mrb[19].mxu1 }
 0x12a   : > { %v3614_v18 = vadd.f32 %v1564_v17, %v3566_v46  ;;  %v1405_v19 = vpop.permute.xlu1 %1404  ;;  %v1400_v21 = vpop.permute.xlu0 %1399 }
 0x12b   : > { %1206 = vrot.lane.b32.xlu0 %v1143_v53, %s3035_s13 }
 0x12d   : > { %1208 = vrot.lane.b32.xlu1 %v1146_v12, %s3035_s13 }
 0x12e   : > { %v2851_v22 = vpop.f32.mrb[20].mxu0  ;;  %v1415_v23 = vpop.permute.xlu1 %1414 }
 0x12f   : > { %1218 = vrot.lane.b32.xlu0 %v2851_v22, %s3035_s13  ;;  %v1159_v62 = vpop.f32.mrb[21].mxu0  ;;  %v1410_v24 = vpop.permute.xlu0 %1409 }
 0x130   : > { %v2852_v50 = vpop.f32.mrb[22].mxu0  ;;  %v2883_v25 = vpop.f32.mrb[20].mxu1 }
 0x131   : > { %v3619_v29 = vadd.f32 %v2883_v25, %v1400_v21  ;;  %v1577_v31 = vpop.f32.mrb[21].mxu1  ;;  %1220 = vrot.lane.b32.xlu1 %v2852_v50, %s3035_s13  ;;  %v1162_v46 = vpop.f32.mrb[23].mxu0 }
 0x132   : > { %v3622_v49 = vadd.f32 %v1577_v31, %v1390_v6  ;;  %v2884_v32 = vpop.f32.mrb[22].mxu1  ;;  %v1425_v39 = vpop.permute.xlu1 %1424 }
 0x133   : > { %v3624_v33 = vadd.f32 %v2884_v32, %v1405_v19  ;;  %v1580_v1 = vpop.f32.mrb[23].mxu1  ;;  %1214 = vrot.lane.b32.xlu0 %v1159_v62, %s3035_s13  ;;  %v1420_v41 = vpop.permute.xlu0 %1419 }
 0x134   : > { %v3627_v34 = vadd.f32 %v1580_v1, %v1395_v58 }
 0x135   : > { %1216 = vrot.lane.b32.xlu1 %v1162_v46, %s3035_s13 }
 0x136   : > { %v2855_v40 = vpop.f32.mrb[24].mxu0  ;;  %v2887_v48 = vpop.f32.mrb[24].mxu1 }
 0x137   : > { %1226 = vrot.lane.b32.xlu0 %v2855_v40, %s3035_s13  ;;  %v1175_v43 = vpop.f32.mrb[25].mxu0  ;;  %v3631_v54 = vadd.f32 %v2887_v48, %v1420_v41  ;;  %v1593_v57 = vpop.f32.mrb[25].mxu1 }
 0x138   : > { %v2856_v44 = vpop.f32.mrb[26].mxu0  ;;  %v3634_v7 = vadd.f32 %v1593_v57, %v1410_v24  ;;  %v2888_v58 = vpop.f32.mrb[26].mxu1 }
 0x139   : > { %1228 = vrot.lane.b32.xlu1 %v2856_v44, %s3035_s13  ;;  %v1178_v6 = vpop.f32.mrb[27].mxu0  ;;  %v3636_v9 = vadd.f32 %v2888_v58, %v1425_v39  ;;  %v1596_v47 = vpop.f32.mrb[27].mxu1 }
 0x13a   : > { %v3639_v53 = vadd.f32 %v1596_v47, %v1415_v23  ;;  %v1435_v55 = vpop.permute.xlu1 %1434  ;;  %v1430_v5 = vpop.permute.xlu0 %1429 }
 0x13b   : > { %1222 = vrot.lane.b32.xlu0 %v1175_v43, %s3035_s13 }
 0x13d   : > { %1224 = vrot.lane.b32.xlu1 %v1178_v6, %s3035_s13 }
 0x13e   : > { %v2859_v12 = vpop.f32.mrb[28].mxu0  ;;  %v3642_v17 = vpop.f32.mrb[28].mxu1 }
 0x13f   : > { %v1609_v19 = vpop.f32.mrb[29].mxu1  ;;  %1234 = vrot.lane.b32.xlu0 %v2859_v12, %s3035_s13  ;;  %v1191_v21 = vpop.f32.mrb[29].mxu0 }
 0x140   : > { %v3645_v22 = vadd.f32 %v1609_v19, %v1430_v5  ;;  %v2860_v62 = vpop.f32.mrb[30].mxu0  ;;  %v3647_v24 = vpop.f32.mrb[30].mxu1 }
 0x141   : > { %3773 = vst [vmem:[#allocation2_spill] sm:$0xff] %v3647_v24  ;;  %v1612_v50 = vpop.f32.mrb[31].mxu1  ;;  %1236 = vrot.lane.b32.xlu1 %v2860_v62, %s3035_s13  ;;  %v1194_v23 = vpop.f32.mrb[31].mxu0 }
 0x142   : > { %v3650_v25 = vadd.f32 %v1612_v50, %v1435_v55 }
 0x143   : > { %1230 = vrot.lane.b32.xlu0 %v1191_v21, %s3035_s13 }
 0x145   : > { %1232 = vrot.lane.b32.xlu1 %v1194_v23, %s3035_s13 }
 0x146   : > { %v2911_v31 = vpop.f32.mrb[32].mxu0  ;;  %v2943_v46 = vpop.f32.mrb[32].mxu1 }
 0x147   : > { %1806 = vrot.lane.b32.xlu0 %v2911_v31, %s3035_s13  ;;  %v1739_v32 = vpop.f32.mrb[33].mxu0  ;;  %v1949_v1 = vpop.f32.mrb[33].mxu1 }
 0x148   : > { %v2912_v39 = vpop.f32.mrb[34].mxu0  ;;  %v2944_v40 = vpop.f32.mrb[34].mxu1 }
 0x149   : > { %1808 = vrot.lane.b32.xlu1 %v2912_v39, %s3035_s13  ;;  %v1742_v41 = vpop.f32.mrb[35].mxu0  ;;  %v1952_v43 = vpop.f32.mrb[35].mxu1 }
 0x14b   : > { %2016 = vrot.lane.b32.xlu0 %v2943_v46, %s3036_s14 }
 0x14d   : > { %2018 = vrot.lane.b32.xlu1 %v2944_v40, %s3036_s14 }
 0x14e   : > { %v2915_v44 = vpop.f32.mrb[36].mxu0  ;;  %v2947_v48 = vpop.f32.mrb[36].mxu1 }
 0x14f   : > { %1802 = vrot.lane.b32.xlu0 %v1739_v32, %s3035_s13  ;;  %v1755_v57 = vpop.f32.mrb[37].mxu0  ;;  %v1965_v6 = vpop.f32.mrb[37].mxu1 }
 0x150   : > { %v2916_v58 = vpop.f32.mrb[38].mxu0  ;;  %v2948_v47 = vpop.f32.mrb[38].mxu1 }
 0x151   : > { %1804 = vrot.lane.b32.xlu1 %v1742_v41, %s3035_s13  ;;  %v1758_v55 = vpop.f32.mrb[39].mxu0  ;;  %v1968_v5 = vpop.f32.mrb[39].mxu1 }
 0x153   : > { %2012 = vrot.lane.b32.xlu0 %v1949_v1, %s3036_s14 }
 0x155   : > { %2014 = vrot.lane.b32.xlu1 %v1952_v43, %s3036_s14 }
 0x156   : > { %v2919_v12 = vpop.f32.mrb[40].mxu0  ;;  %v2951_v19 = vpop.f32.mrb[40].mxu1 }
 0x157   : > { %1814 = vrot.lane.b32.xlu0 %v2915_v44, %s3035_s13  ;;  %v1771_v21 = vpop.f32.mrb[41].mxu0  ;;  %v1981_v62 = vpop.f32.mrb[41].mxu1 }
 0x158   : > { %v2920_v50 = vpop.f32.mrb[42].mxu0  ;;  %v2952_v23 = vpop.f32.mrb[42].mxu1 }
 0x159   : > { %1816 = vrot.lane.b32.xlu1 %v2916_v58, %s3035_s13  ;;  %v1774_v31 = vpop.f32.mrb[43].mxu0  ;;  %v1984_v46 = vpop.f32.mrb[43].mxu1 }
 0x15b   : > { %2024 = vrot.lane.b32.xlu0 %v2947_v48, %s3036_s14  ;;  %v3686_v48 = vpop.permute.xlu0 %1439 }
 0x15d   : > { %2026 = vrot.lane.b32.xlu1 %v2948_v47, %s3036_s14  ;;  %v1031_v47 = vadd.f32 %v3541_v15, %v3519_v59 }
 0x15e   : > { %v2923_v32 = vpop.f32.mrb[44].mxu0  ;;  %v2955_v1 = vpop.f32.mrb[44].mxu1 }
 0x15f   : > { %1810 = vrot.lane.b32.xlu0 %v1755_v57, %s3035_s13  ;;  %v1787_v39 = vpop.f32.mrb[45].mxu0  ;;  %v1997_v40 = vpop.f32.mrb[45].mxu1 }
 0x160   : > { %v2924_v41 = vpop.f32.mrb[46].mxu0  ;;  %v2956_v43 = vpop.f32.mrb[46].mxu1 }
 0x161   : > { %1812 = vrot.lane.b32.xlu1 %v1758_v55, %s3035_s13  ;;  %v1790_v44 = vpop.f32.mrb[47].mxu0  ;;  %v2000_v24 = vpop.f32.mrb[47].mxu1 }
 0x162   : > { %v3688_v57 = vpop.permute.xlu1 %1444 }
 0x163   : > { %2020 = vrot.lane.b32.xlu0 %v1965_v6, %s3036_s14  ;;  %v1030_v6 = vadd.f32 %v3537_v8, %v3521_v60  ;;  %v1034_v8 = vadd.f32 %v3555_v30, %v3525_v0  ;;  %v1038_v30 = vadd.f32 %v3568_v10, %v3531_v4  ;;  %v1042_v10 = vadd.f32 %v3587_v51, %v3553_v27 }
 0x165   : > { %2022 = vrot.lane.b32.xlu1 %v1968_v5, %s3036_s14 }
 0x167   : > { %1822 = vrot.lane.b32.xlu0 %v2919_v12, %s3035_s13 }
 0x169   : > { %1824 = vrot.lane.b32.xlu1 %v2920_v50, %s3035_s13 }
 0x16b   : > { %2032 = vrot.lane.b32.xlu0 %v2951_v19, %s3036_s14 }
 0x16d   : > { %2034 = vrot.lane.b32.xlu1 %v2952_v23, %s3036_s14  ;;  %v1035_v23 = vadd.f32 %v3561_v37, %v3523_v63 }
 0x16f   : > { %1818 = vrot.lane.b32.xlu0 %v1771_v21, %s3035_s13 }
 0x171   : > { %1820 = vrot.lane.b32.xlu1 %v1774_v31, %s3035_s13 }
 0x173   : > { %2028 = vrot.lane.b32.xlu0 %v1981_v62, %s3036_s14 }
 0x175   : > { %2030 = vrot.lane.b32.xlu1 %v1984_v46, %s3036_s14 }
 0x177   : > { %1830 = vrot.lane.b32.xlu0 %v2923_v32, %s3035_s13 }
 0x179   : > { %1832 = vrot.lane.b32.xlu1 %v2924_v41, %s3035_s13 }
 0x17b   : > { %1826 = vrot.lane.b32.xlu0 %v1787_v39, %s3035_s13 }
 0x17d   : > { %1828 = vrot.lane.b32.xlu1 %v1790_v44, %s3035_s13 }
 0x17f   : > { %2036 = vrot.lane.b32.xlu0 %v1997_v40, %s3036_s14 }
 0x181   : > { %2038 = vrot.lane.b32.xlu1 %v2000_v24, %s3036_s14 }
 0x183   : > { %2040 = vrot.lane.b32.xlu0 %v2955_v1, %s3036_s14 }
 0x185   : > { %2042 = vrot.lane.b32.xlu1 %v2956_v43, %s3036_s14 }
 0x199   : > { %v1211_v58 = vpop.permute.xlu0 %1210 }
 0x19a   : > { %v1240_v55 = vadd.f32 %v1211_v58, %v1030_v6  ;;  %v1039_v6 = vadd.f32 %v3576_v16, %v3529_v3 }
 0x19b   : > { %v1213_v5 = vpop.permute.xlu1 %1212 }
 0x19c   : > { %v1241_v12 = vadd.f32 %v1213_v5, %v1031_v47  ;;  %v1256_v24 = vmax.f32 %v1240_v55, 0.0 }
 0x19d   : > { %v1207_v19 = vpop.permute.xlu0 %1206 }
 0x19e   : > { %v1257_v21 = vmax.f32 %v1241_v12, 0.0  ;;  %v1238_v62 = vadd.f32 %v1207_v19, %v3539_v14 }
 0x19f   : > { %v1209_v60 = vpop.permute.xlu1 %1208 }
 0x1a0   : > { %v2576_v59 = vpack.c.bf16 %v1257_v21, %v1256_v24  ;;  %v1239_v15 = vadd.f32 %v1209_v60, %v3543_v20  ;;  %v1254_v14 = vmax.f32 %v1238_v62, 0.0  ;;  %v1043_v60 = vadd.f32 %v3596_v38, %v3551_v26 }
 0x1a1   : > { %v1219_v50 = vpop.permute.xlu0 %1218  ;;  %v1626_v38 = vadd.f32 %v3603_v11, %v3585_v28 }
 0x1a2   : > { %2655 = vst [vmem:[%s3699_s17 + $0x8] sm:$0xff] %v2576_v59   ;;  %v1255_v31 = vmax.f32 %v1239_v15, 0.0  ;;  %v1244_v46 = vadd.f32 %v1219_v50, %v1034_v8 }
 0x1a3   : > { %v1221_v32 = vpop.permute.xlu1 %1220 }
 0x1a4   : > { %v2571_v1 = vpack.c.bf16 %v1255_v31, %v1254_v14  ;;  %v1245_v39 = vadd.f32 %v1221_v32, %v1035_v23  ;;  %v1260_v41 = vmax.f32 %v1244_v46, 0.0 }
 0x1a5   : > { %v1215_v40 = vpop.permute.xlu0 %1214 }
 0x1a6   : > { %2572 = vst [vmem:[%s3699_s17] sm:$0xff] %v2571_v1   ;;  %v1261_v43 = vmax.f32 %v1245_v39, 0.0  ;;  %v1242_v0 = vadd.f32 %v1215_v40, %v3559_v36 }
 0x1a7   : > { %v1217_v20 = vpop.permute.xlu1 %1216 }
 0x1a8   : > { %v2586_v63 = vpack.c.bf16 %v1261_v43, %v1260_v41  ;;  %v1243_v37 = vadd.f32 %v1217_v20, %v3564_v42  ;;  %v1258_v58 = vmax.f32 %v1242_v0, 0.0  ;;  %v1627_v41 = vadd.f32 %v3610_v61, %v3583_v2 }
 0x1a9   : > { %v1227_v44 = vpop.permute.xlu0 %1226 }
 0x1aa   : > { %2657 = vst [vmem:[%s3699_s17 + $0x18] sm:$0xff] %v2586_v63   ;;  %v1259_v47 = vmax.f32 %v1243_v37, 0.0  ;;  %v1248_v55 = vadd.f32 %v1227_v44, %v1038_v30 }
 0x1ab   : > { %v1229_v5 = vpop.permute.xlu1 %1228 }
 0x1ac   : > { %v2581_v12 = vpack.c.bf16 %v1259_v47, %v1258_v58  ;;  %v1249_v19 = vadd.f32 %v1229_v5, %v1039_v6  ;;  %v1264_v24 = vmax.f32 %v1248_v55, 0.0 }
 0x1ad   : > { %v1223_v36 = vpop.permute.xlu0 %1222 }
 0x1ae   : > { %2656 = vst [vmem:[%s3699_s17 + $0x10] sm:$0xff] %v2581_v12   ;;  %v1265_v21 = vmax.f32 %v1249_v19, 0.0  ;;  %v1246_v4 = vadd.f32 %v1223_v36, %v3574_v13 }
 0x1af   : > { %v1225_v42 = vpop.permute.xlu1 %1224 }
 0x1b0   : > { %v2596_v3 = vpack.c.bf16 %v1265_v21, %v1264_v24  ;;  %v1247_v16 = vadd.f32 %v1225_v42, %v3581_v52  ;;  %v1262_v8 = vmax.f32 %v1246_v4, 0.0 }
 0x1b1   : > { %v1235_v62 = vpop.permute.xlu0 %1234 }
 0x1b2   : > { %2659 = vst [vmem:[%s3699_s17 + $0x28] sm:$0xff] %v2596_v3   ;;  %v1263_v59 = vmax.f32 %v1247_v16, 0.0  ;;  %v1252_v15 = vadd.f32 %v1235_v62, %v1042_v10 }
 0x1b3   : > { %v1237_v50 = vpop.permute.xlu1 %1236 }
 0x1b4   : > { %v2591_v23 = vpack.c.bf16 %v1263_v59, %v1262_v8  ;;  %v1253_v14 = vadd.f32 %v1237_v50, %v1043_v60  ;;  %v1268_v31 = vmax.f32 %v1252_v15, 0.0 }
 0x1b5   : > { %v1231_v13 = vpop.permute.xlu0 %1230 }
 0x1b6   : > { %2658 = vst [vmem:[%s3699_s17 + $0x20] sm:$0xff] %v2591_v23   ;;  %v1269_v27 = vmax.f32 %v1253_v14, 0.0  ;;  %v1250_v51 = vadd.f32 %v1231_v13, %v3594_v35 }
 0x1b7   : > { %v1233_v52 = vpop.permute.xlu1 %1232 }
 0x1b8   : > { %v2606_v46 = vpack.c.bf16 %v1269_v27, %v1268_v31  ;;  %v1251_v32 = vadd.f32 %v1233_v52, %v3601_v56  ;;  %v1266_v1 = vmax.f32 %v1250_v51, 0.0 }
 0x1b9   : > { %v1807_v26 = vpop.permute.xlu0 %1806 }
 0x1ba   : > { %2661 = vst [vmem:[%s3699_s17 + $0x38] sm:$0xff] %v2606_v46   ;;  %v1267_v39 = vmax.f32 %v1251_v32, 0.0  ;;  %v1836_v0 = vadd.f32 %v1807_v26, %v1626_v38 }
 0x1bb   : > { %v1809_v40 = vpop.permute.xlu1 %1808 }
 0x1bc   : > { %v2601_v43 = vpack.c.bf16 %v1267_v39, %v1266_v1  ;;  %v1837_v35 = vadd.f32 %v1809_v40, %v1627_v41 }
 0x1bd   : > { %v2017_v20 = vpop.permute.xlu0 %2016 }
 0x1be   : > { %2660 = vst [vmem:[%s3699_s17 + $0x30] sm:$0xff] %v2601_v43   ;;  %v2046_v30 = vadd.f32 %v2017_v20, %v1836_v0 }
 0x1bf   : > { %v2019_v63 = vpop.permute.xlu1 %2018 }
 0x1c0   : > { %v2047_v56 = vadd.f32 %v2019_v63, %v1837_v35  ;;  %v2062_v44 = vmax.f32 %v2046_v30, 0.0 }
 0x1c1   : > { %v1803_v37 = vpop.permute.xlu0 %1802 }
 0x1c2   : > { %v2063_v6 = vmax.f32 %v2047_v56, 0.0  ;;  %v1834_v11 = vadd.f32 %v1803_v37, %v3608_v45 }
 0x1c3   : > { %v1805_v28 = vpop.permute.xlu1 %1804 }
 0x1c4   : > { %v2616_v2 = vpack.c.bf16 %v2063_v6, %v2062_v44  ;;  %v1835_v58 = vadd.f32 %v1805_v28, %v3614_v18 }
 0x1c5   : > { %v2013_v61 = vpop.permute.xlu0 %2012 }
 0x1c6   : > { %2662 = vst [vmem:[%s3736_s20 + $0x8] sm:$0xff] %v2616_v2   ;;  %v2044_v47 = vadd.f32 %v2013_v61, %v1834_v11 }
 0x1c7   : > { %v2015_v55 = vpop.permute.xlu1 %2014 }
 0x1c8   : > { %v2045_v5 = vadd.f32 %v2015_v55, %v1835_v58  ;;  %v2060_v19 = vmax.f32 %v2044_v47, 0.0  ;;  %v3774_v55 = vld [vmem:[#allocation2_spill] sm:$0xff] }
 0x1c9   : > { %v1815_v12 = vpop.permute.xlu0 %1814 }
 0x1ca   : > { %v2061_v36 = vmax.f32 %v2045_v5, 0.0  ;;  %v1840_v4 = vadd.f32 %v1815_v12, %v3619_v29  ;;  %v1639_v5 = vadd.f32 %v3774_v55, %v3688_v57 }
 0x1cb   : > { %v1817_v24 = vpop.permute.xlu1 %1816 }
 0x1cc   : > { %v2611_v21 = vpack.c.bf16 %v2061_v36, %v2060_v19  ;;  %v1841_v10 = vadd.f32 %v1817_v24, %v3624_v33 }
 0x1cd   : > { %v2025_v42 = vpop.permute.xlu0 %2024 }
 0x1ce   : > { %2612 = vst [vmem:[%s3736_s20] sm:$0xff] %v2611_v21   ;;  %v2050_v45 = vadd.f32 %v2025_v42, %v1840_v4 }
 0x1cf   : > { %v2027_v3 = vpop.permute.xlu1 %2026 }
 0x1d0   : > { %v2051_v16 = vadd.f32 %v2027_v3, %v1841_v10  ;;  %v2066_v18 = vmax.f32 %v2050_v45, 0.0 }
 0x1d1   : > { %v1811_v62 = vpop.permute.xlu0 %1810 }
 0x1d2   : > { %v2067_v60 = vmax.f32 %v2051_v16, 0.0  ;;  %v1838_v15 = vadd.f32 %v1811_v62, %v3622_v49 }
 0x1d3   : > { %v1813_v8 = vpop.permute.xlu1 %1812 }
 0x1d4   : > { %v2626_v59 = vpack.c.bf16 %v2067_v60, %v2066_v18  ;;  %v1839_v23 = vadd.f32 %v1813_v8, %v3627_v34 }
 0x1d5   : > { %v2021_v50 = vpop.permute.xlu0 %2020 }
 0x1d6   : > { %2664 = vst [vmem:[%s3736_s20 + $0x18] sm:$0xff] %v2626_v59   ;;  %v2048_v29 = vadd.f32 %v2021_v50, %v1838_v15 }
 0x1d7   : > { %v2023_v14 = vpop.permute.xlu1 %2022 }
 0x1d8   : > { %v2049_v13 = vadd.f32 %v2023_v14, %v1839_v23  ;;  %v2064_v33 = vmax.f32 %v2048_v29, 0.0 }
 0x1d9   : > { %v1823_v31 = vpop.permute.xlu0 %1822 }
 0x1da   : > { %v2065_v27 = vmax.f32 %v2049_v13, 0.0  ;;  %v1844_v46 = vadd.f32 %v1823_v31, %v3631_v54 }
 0x1db   : > { %v1825_v51 = vpop.permute.xlu1 %1824 }
 0x1dc   : > { %v2621_v52 = vpack.c.bf16 %v2065_v27, %v2064_v33  ;;  %v1845_v26 = vadd.f32 %v1825_v51, %v3636_v9 }
 0x1dd   : > { %v2033_v32 = vpop.permute.xlu0 %2032 }
 0x1de   : > { %2663 = vst [vmem:[%s3736_s20 + $0x10] sm:$0xff] %v2621_v52   ;;  %v2054_v49 = vadd.f32 %v2033_v32, %v1844_v46 }
 0x1df   : > { %v2035_v38 = vpop.permute.xlu1 %2034 }
 0x1e0   : > { %v2055_v1 = vadd.f32 %v2035_v38, %v1845_v26  ;;  %v2070_v34 = vmax.f32 %v2054_v49, 0.0 }
 0x1e1   : > { %v1819_v39 = vpop.permute.xlu0 %1818 }
 0x1e2   : > { %v2071_v40 = vmax.f32 %v2055_v1, 0.0  ;;  %v1842_v0 = vadd.f32 %v1819_v39, %v3634_v7  ;;  %v1638_v7 = vadd.f32 %v3642_v17, %v3686_v48 }
 0x1e3   : > { %v1821_v41 = vpop.permute.xlu1 %1820 }
 0x1e4   : > { %v2636_v43 = vpack.c.bf16 %v2071_v40, %v2070_v34  ;;  %v1843_v35 = vadd.f32 %v1821_v41, %v3639_v53 }
 0x1e5   : > { %v2029_v20 = vpop.permute.xlu0 %2028 }
 0x1e6   : > { %2666 = vst [vmem:[%s3736_s20 + $0x28] sm:$0xff] %v2636_v43   ;;  %v2052_v54 = vadd.f32 %v2029_v20, %v1842_v0 }
 0x1e7   : > { %v2031_v30 = vpop.permute.xlu1 %2030 }
 0x1e8   : > { %v2053_v63 = vadd.f32 %v2031_v30, %v1843_v35  ;;  %v2068_v9 = vmax.f32 %v2052_v54, 0.0 }
 0x1e9   : > { %v1831_v56 = vpop.permute.xlu0 %1830 }
 0x1ea   : > { %v2069_v37 = vmax.f32 %v2053_v63, 0.0  ;;  %v1848_v12 = vadd.f32 %v1831_v56, %v1638_v7 }
 0x1eb   : > { %v1833_v44 = vpop.permute.xlu1 %1832 }
 0x1ec   : > { %v2631_v6 = vpack.c.bf16 %v2069_v37, %v2068_v9  ;;  %v1849_v24 = vadd.f32 %v1833_v44, %v1639_v5 }
 0x1ed   : > { %v1827_v28 = vpop.permute.xlu0 %1826 }
 0x1ee   : > { %2665 = vst [vmem:[%s3736_s20 + $0x20] sm:$0xff] %v2631_v6   ;;  %v1846_v11 = vadd.f32 %v1827_v28, %v3645_v22 }
 0x1ef   : > { %v1829_v2 = vpop.permute.xlu1 %1828 }
 0x1f0   : > { %v1847_v53 = vadd.f32 %v1829_v2, %v3650_v25 }
 0x1f1   : > { %v2037_v61 = vpop.permute.xlu0 %2036 }
 0x1f2   : > { %v2056_v58 = vadd.f32 %v2037_v61, %v1846_v11 }
 0x1f3   : > { %v2039_v47 = vpop.permute.xlu1 %2038 }
 0x1f4   : > { %v2057_v19 = vadd.f32 %v2039_v47, %v1847_v53  ;;  %v2072_v21 = vmax.f32 %v2056_v58, 0.0 }
 0x1f5   : > { %v2041_v36 = vpop.permute.xlu0 %2040 }
 0x1f6   : > { %v2073_v4 = vmax.f32 %v2057_v19, 0.0  ;;  %v2058_v22 = vadd.f32 %v2041_v36, %v1848_v12 }
 0x1f7   : > { %v2043_v42 = vpop.permute.xlu1 %2042 }
 0x1f8   : > { %v2641_v10 = vpack.c.bf16 %v2073_v4, %v2072_v21  ;;  %v2059_v45 = vadd.f32 %v2043_v42, %v1849_v24  ;;  %v2074_v17 = vmax.f32 %v2058_v22, 0.0 }
 0x1fa   : > { %2667 = vst [vmem:[%s3736_s20 + $0x30] sm:$0xff] %v2641_v10   ;;  %v2075_v48 = vmax.f32 %v2059_v45, 0.0 }
 0x1fc   : > { %v2646_v25 = vpack.c.bf16 %v2075_v48, %v2074_v17 }
 0x1fe   : > { %2668 = vst [vmem:[%s3736_s20 + $0x38] sm:$0xff] %v2646_v25  }
 0x1ff PF: > { %s18_s24 = sadd.s32 1, %s3032_s24  }
 0x200   : > { %p15_p4 = scmp.ge.s32.totalorder %s18_s24, 4  }
 0x202   :  { %17 = sbr.rel (!%p15_p4) target bundleno = 1 (0x1), region = 99 }

</bundles_post_ra>
